<compile_context>
chip_gen: v6e
topology: v6e:2x2x1
jax: 0.10.0
libtpu: 0.0.40
codegen_flags: <defaults>
</compile_context>

<pallas_src>
import math

import jax
import jax.numpy as jnp
from jax import lax
from jax.experimental import pallas as pl
from jax.experimental.pallas import tpu as pltpu

# ----------------------------- configuration --------------------------------
NUM_FEATURES = 8
NHID = 32
NUM_CLASSES = 4
POOL_RATIO = 0.5
DROPOUT_RATIO = 0.5        # eval mode (training=False) -> F.dropout is identity
N = 32                     # nodes per graph-batch
B = 2                      # graphs per graph-batch
NEG_BIG = -1e30

# weight-slab row offsets (all multiples of 8 -> sublane-aligned static slices)
ROW_C1 = 0
ROW_C2 = ROW_C1 + NUM_FEATURES          # 8
ROW_C3 = ROW_C2 + NHID                  # 40
ROW_POOL = ROW_C3 + NHID                # 72   (pool{1,2,3} weight vectors in cols 0..2)
ROW_L1 = ROW_POOL + NHID                # 104  (lin1: rows 0..31 -> gmp, 32..63 -> gap)
ROW_L2 = ROW_L1 + 2 * NHID              # 168  (lin2 padded to NHID cols)
ROW_L3 = ROW_L2 + NHID                  # 200  (lin3 padded to NHID x NHID)
W_ROWS = ROW_L3 + NHID                  # 232
B_ROWS = 8                              # bias slab rows


# ----------------------------- fused Pallas kernel ---------------------------
def _sagnet_kernel(x_ref, a_ref, bone_ref, bonet_ref, w_ref, b_ref, o_ref):
    f32 = jnp.float32
    n = a_ref.shape[0]
    nb = bone_ref.shape[0]

    A = a_ref[...]                       # [N, N]
    bone = bone_ref[...]                 # [B, N]
    boneT = bonet_ref[...]               # [N, B]

    row_idx = lax.broadcasted_iota(jnp.int32, (n, n), 0)
    col_idx = lax.broadcasted_iota(jnp.int32, (n, n), 1)
    eye = jnp.where(row_idx == col_idx, f32(1.0), f32(0.0))
    ones_row = jnp.ones((1, n), f32)
    ones_col = jnp.ones((n, 1), f32)
    b_iota = lax.broadcasted_iota(jnp.int32, (nb, 1), 0)

    # loop-invariant structure
    A_plus_eye = A + eye                                            # (A + I), built once
    same_graph = jnp.dot(boneT, bone, preferred_element_type=f32)   # [N, N], MXU

    alive_row = jnp.ones((1, n), f32)
    alive_col = jnp.ones((n, 1), f32)

    h = x_ref[...]                       # [N, F] -> [N, NHID] after first conv
    xr_max = jnp.zeros((nb, NHID), f32)
    xr_mean = jnp.zeros((nb, NHID), f32)

    conv_rows = ((ROW_C1, ROW_C2), (ROW_C2, ROW_C3), (ROW_C3, ROW_POOL))
    for li, (r0, r1) in enumerate(conv_rows):
        # ---- GCN normalization on the alive-induced subgraph:
        #      (A+I)_alive = (A+I)*alive_col*alive_row ; deg = alive * ((A+I) @ alive)
        #      a_norm = D^{-1/2} (A+I)_alive D^{-1/2}   (dead rows/cols end up zero)
        deg_col = alive_col * jnp.dot(A_plus_eye, alive_col, preferred_element_type=f32)
        deg_row = alive_row * jnp.dot(alive_row, A_plus_eye, preferred_element_type=f32)
        dinv_col = jnp.where(deg_col > 0.0, lax.rsqrt(deg_col), 0.0)
        dinv_row = jnp.where(deg_row > 0.0, lax.rsqrt(deg_row), 0.0)
        a_norm = A_plus_eye * dinv_col * dinv_row

        # ---- GCNConv: relu(a_norm @ (h @ Wc) + bc); zero dead rows (bias leak)
        cw = w_ref[r0:r1, :]
        cb = b_ref[li:li + 1, :]
        hw = jnp.dot(h, cw, preferred_element_type=f32)
        h = jnp.maximum(jnp.dot(a_norm, hw, preferred_element_type=f32) + cb, 0.0)
        h = h * alive_col

        # ---- SAGPooling scorer: GCNConv(h) -> one score per node.
        #      All 3 layers' scorer weight vectors live in cols 0..2 of one block;
        #      compute all columns (MXU has slack) and slice column `li`.
        pw = w_ref[ROW_POOL:ROW_L1, :]
        pb = b_ref[3:4, :]
        sc_all = jnp.dot(a_norm, jnp.dot(h, pw, preferred_element_type=f32),
                         preferred_element_type=f32) + pb
        score_col = sc_all[:, li:li + 1]                              # [N, 1]

        # ---- per-graph top-k: keep ceil(ratio * n_alive) best-scoring alive nodes
        s_col = jnp.where(alive_col > 0.0, score_col, NEG_BIG)
        # row layout of the same scores via ones-matvec of the eye-masked column (MXU)
        s_row = jnp.dot(ones_row, eye * s_col, preferred_element_type=f32)   # [1, N]
        # cmp[j, i]: competitor j (sublanes) strictly outranks candidate i (lanes);
        # ties broken by lower node index.
        cmp = ((s_col > s_row) | ((s_col == s_row) & (row_idx < col_idx))).astype(f32)
        contrib = same_graph * alive_col * cmp
        rank_row = jnp.dot(ones_row, contrib, preferred_element_type=f32)    # [1, N]
        # per-node count of alive nodes in its own graph (pre-pool), MXU matvec
        count_node = jnp.dot(alive_row, same_graph, preferred_element_type=f32)
        thresh_row = POOL_RATIO * count_node
        # rank < ceil(r*c)  <=>  rank < r*c   (rank is integer-valued in f32)
        keep = (alive_row > 0.0) & (rank_row < thresh_row)
        alive_row = jnp.where(keep, 1.0, 0.0)
        alive_col = jnp.dot(eye * alive_row, ones_col, preferred_element_type=f32)

        # ---- SAGPool gating by tanh(score), drop pruned nodes
        h = h * jnp.tanh(score_col) * alive_col

        # ---- readout: [global_max_pool || global_mean_pool], accumulated over layers
        mask_bn = bone * alive_row                                     # [B, N]
        mask_nb = boneT * alive_col                                    # [N, B]
        gsum = jnp.dot(mask_bn, h, preferred_element_type=f32)         # [B, H] (MXU)
        cnt = jnp.dot(mask_bn, ones_col, preferred_element_type=f32)   # [B, 1] (MXU)
        gap = gsum / jnp.maximum(cnt, 1.0)                             # exact mean
        gmax = jnp.zeros((nb, NHID), f32)
        for b in range(nb):   # B unrolled 2-D masked maxes (no [B,N,H] intermediate)
            hb = jnp.where(mask_nb[:, b:b + 1] > 0.0, h, NEG_BIG)
            gmax_b = jnp.max(hb, axis=0, keepdims=True)                # [1, H]
            gmax = jnp.where(b_iota == b, gmax_b, gmax)
        gmax = jnp.where(cnt > 0.0, gmax, 0.0)   # guard: empty graph can't poison head
        xr_max = xr_max + gmax
        xr_mean = xr_mean + gap

    # ---- MLP head: lin1+relu -> dropout(identity @eval) -> lin2+relu -> lin3+log_softmax
    #      cat([gmp, gap]) @ W1 realized by splitting W1's rows (no concat needed)
    hh = (jnp.dot(xr_max, w_ref[ROW_L1:ROW_L1 + NHID, :], preferred_element_type=f32)
          + jnp.dot(xr_mean, w_ref[ROW_L1 + NHID:ROW_L2, :], preferred_element_type=f32)
          + b_ref[4:5, :])
    hh = jnp.maximum(hh, 0.0)
    # TODO(synk): training-mode dropout would need pltpu.prng_seed/prng_random_bits.
    hh = jnp.maximum(jnp.dot(hh, w_ref[ROW_L2:ROW_L3, :], preferred_element_type=f32)
                     + b_ref[5:6, :], 0.0)        # lin2 (padded cols stay exactly 0)
    z = jnp.dot(hh, w_ref[ROW_L3:W_ROWS, :], preferred_element_type=f32) + b_ref[6:7, :]
    z = z[:, 0:NUM_CLASSES]
    m = jnp.max(z, axis=-1, keepdims=True)
    lse = m + jnp.log(jnp.sum(jnp.exp(z - m), axis=-1, keepdims=True))
    o_ref[...] = z - lse


# ----------------------------- wrapper ---------------------------------------
def sagnet_forward(x, adj, bone, boneT, w_slab, b_slab):
    G = x.shape[0]
    grid_spec = pltpu.PrefetchScalarGridSpec(
        num_scalar_prefetch=0,
        grid=(G,),
        in_specs=[
            pl.BlockSpec((None, N, NUM_FEATURES), lambda g: (g, 0, 0)),
            pl.BlockSpec((None, N, N), lambda g: (g, 0, 0)),
            pl.BlockSpec((None, B, N), lambda g: (g, 0, 0)),
            pl.BlockSpec((None, N, B), lambda g: (g, 0, 0)),
            pl.BlockSpec((W_ROWS, NHID), lambda g: (0, 0)),   # VMEM-resident weights
            pl.BlockSpec((B_ROWS, NHID), lambda g: (0, 0)),   # VMEM-resident biases
        ],
        out_specs=pl.BlockSpec((None, B, NUM_CLASSES), lambda g: (g, 0, 0)),
    )
    return pl.pallas_call(
        _sagnet_kernel,
        grid_spec=grid_spec,
        out_shape=jax.ShapeDtypeStruct((G, B, NUM_CLASSES), jnp.float32),
        compiler_params=pltpu.CompilerParams(dimension_semantics=("parallel",)),
    )(x, adj, bone, boneT, w_slab, b_slab)


# ----------------------------- parameters ------------------------------------
def init_params(key):
    def dense(k, fan_in, fan_out):
        kw, kb = jax.random.split(k)
        lim = 1.0 / math.sqrt(fan_in)
        w = jax.random.uniform(kw, (fan_in, fan_out), jnp.float32, -lim, lim)
        b = jax.random.uniform(kb, (1, fan_out), jnp.float32, -lim, lim)
        return w, b

    keys = jax.random.split(key, 9)
    p = {}
    p["conv1_w"], p["conv1_b"] = dense(keys[0], NUM_FEATURES, NHID)
    p["conv2_w"], p["conv2_b"] = dense(keys[1], NHID, NHID)
    p["conv3_w"], p["conv3_b"] = dense(keys[2], NHID, NHID)
    p["pool1_w"], p["pool1_b"] = dense(keys[3], NHID, 1)
    p["pool2_w"], p["pool2_b"] = dense(keys[4], NHID, 1)
    p["pool3_w"], p["pool3_b"] = dense(keys[5], NHID, 1)
    p["lin1_w"], p["lin1_b"] = dense(keys[6], NHID * 2, NHID)
    p["lin2_w"], p["lin2_b"] = dense(keys[7], NHID, NHID // 2)
    p["lin3_w"], p["lin3_b"] = dense(keys[8], NHID // 2, NUM_CLASSES)
    return p


def pack_params(p):
    """Pack the 18 small tensors into two VMEM slabs (one weight, one bias)."""
    def pad_cols(w):
        return jnp.pad(w, ((0, 0), (0, NHID - w.shape[1])))

    pool_block = pad_cols(jnp.concatenate(
        [p["pool1_w"], p["pool2_w"], p["pool3_w"]], axis=1))              # [NHID, NHID]
    lin3_block = jnp.pad(pad_cols(p["lin3_w"]),
                         ((0, NHID - NHID // 2), (0, 0)))                 # [NHID, NHID]
    w_slab = jnp.concatenate([
        p["conv1_w"], p["conv2_w"], p["conv3_w"],
        pool_block, p["lin1_w"], pad_cols(p["lin2_w"]), lin3_block,
    ], axis=0).astype(jnp.float32)

    pool_b = jnp.concatenate([p["pool1_b"], p["pool2_b"], p["pool3_b"]], axis=1)
    b_slab = jnp.concatenate([
        p["conv1_b"], p["conv2_b"], p["conv3_b"], pad_cols(pool_b),
        p["lin1_b"], pad_cols(p["lin2_b"]), pad_cols(p["lin3_b"]),
        jnp.zeros((1, NHID), jnp.float32),
    ], axis=0).astype(jnp.float32)

    assert w_slab.shape == (W_ROWS, NHID), w_slab.shape
    assert b_slab.shape == (B_ROWS, NHID), b_slab.shape
    return w_slab, b_slab


# ----------------------------- main -------------------------------------------
if __name__ == "__main__":
    key = jax.random.PRNGKey(0)
    kx, ka, kp = jax.random.split(key, 3)

    G = 8   # independent graph-batches -> leading "parallel" grid axis

    # batch assignment (same for every graph-batch): graph 0 = nodes 0..15, graph 1 = 16..31
    batch = jnp.repeat(jnp.arange(B), N // B)
    bone2d = jax.nn.one_hot(batch, B, dtype=jnp.float32).T              # [B, N]
    same2d = bone2d.T @ bone2d                                           # [N, N]

    # random undirected adjacency per graph-batch, no cross-graph edges, no self loops
    triu_mask = jnp.triu(jnp.ones((N, N), jnp.float32), 1)
    rnd = jax.random.bernoulli(ka, 0.3, (G, N, N)).astype(jnp.float32)
    upper = rnd * triu_mask[None]
    adj = (upper + jnp.swapaxes(upper, 1, 2)) * same2d[None]

    x = jax.random.normal(kx, (G, N, NUM_FEATURES), dtype=jnp.float32)
    bone = jnp.broadcast_to(bone2d, (G, B, N))
    boneT = jnp.broadcast_to(bone2d.T, (G, N, B))

    params = init_params(kp)
    w_slab, b_slab = pack_params(params)

    fwd = jax.jit(sagnet_forward)
    out = jax.block_until_ready(fwd(x, adj, bone, boneT, w_slab, b_slab))

    assert out.shape == (G, B, NUM_CLASSES), out.shape
    assert bool(jnp.all(jnp.isfinite(out)))
    # rows of log_softmax should exponentiate-sum to ~1
    assert bool(jnp.all(jnp.abs(jnp.sum(jnp.exp(out), axis=-1) - 1.0) < 1e-4))
    print("KERNEL_OK")
</pallas_src>

<mosaic_0001>
module attributes {stable_mosaic.version = 11 : i64} {
  func.func @_sagnet_kernel(%arg0: i32, %arg1: memref<1x32x8xf32, #tpu.memory_space<vmem>>, %arg2: memref<1x32x32xf32, #tpu.memory_space<vmem>>, %arg3: memref<1x2x32xf32, #tpu.memory_space<vmem>>, %arg4: memref<1x32x2xf32, #tpu.memory_space<vmem>>, %arg5: memref<232x32xf32, #tpu.memory_space<vmem>>, %arg6: memref<8x32xf32, #tpu.memory_space<vmem>>, %arg7: memref<1x2x4xf32, #tpu.memory_space<vmem>>) attributes {dimension_semantics = [#tpu.dimension_semantics<parallel>], iteration_bounds = array<i64: 8>, scalar_prefetch = 0 : i64, scratch_operands = 0 : i64, tpu.core_type = #tpu.core_type<tc>, window_params = [{transform_indices = @transform_0, window_bounds = array<i64: 1, 32, 8>}, {transform_indices = @transform_1, window_bounds = array<i64: 1, 32, 32>}, {transform_indices = @transform_2, window_bounds = array<i64: 1, 2, 32>}, {transform_indices = @transform_3, window_bounds = array<i64: 1, 32, 2>}, {pipeline_mode = #tpu.pipeline_mode<synchronous>, transform_indices = @transform_4, window_bounds = array<i64: 232, 32>}, {pipeline_mode = #tpu.pipeline_mode<synchronous>, transform_indices = @transform_5, window_bounds = array<i64: 8, 32>}, {transform_indices = @transform_6, window_bounds = array<i64: 1, 2, 4>}]} {
    %c0 = arith.constant 0 : index
    %c0_0 = arith.constant 0 : index
    %c0_1 = arith.constant 0 : index
    %0 = vector.load %arg2[%c0, %c0_0, %c0_1] : memref<1x32x32xf32, #tpu.memory_space<vmem>>, vector<1x32x32xf32>
    %1 = vector.shape_cast %0 : vector<1x32x32xf32> to vector<32x32xf32>
    %c0_2 = arith.constant 0 : index
    %c0_3 = arith.constant 0 : index
    %c0_4 = arith.constant 0 : index
    %2 = vector.load %arg3[%c0_2, %c0_3, %c0_4] : memref<1x2x32xf32, #tpu.memory_space<vmem>>, vector<1x2x32xf32>
    %3 = vector.shape_cast %2 : vector<1x2x32xf32> to vector<2x32xf32>
    %c0_5 = arith.constant 0 : index
    %c0_6 = arith.constant 0 : index
    %c0_7 = arith.constant 0 : index
    %4 = vector.load %arg4[%c0_5, %c0_6, %c0_7] : memref<1x32x2xf32, #tpu.memory_space<vmem>>, vector<1x32x2xf32>
    %5 = vector.shape_cast %4 : vector<1x32x2xf32> to vector<32x2xf32>
    %6 = tpu.iota {dimensions = array<i32: 0>} : vector<32x32xi32>
    %7 = tpu.iota {dimensions = array<i32: 1>} : vector<32x32xi32>
    %8 = arith.cmpi eq, %6, %7 : vector<32x32xi32>
    %cst = arith.constant 1.000000e+00 : f32
    %cst_8 = arith.constant 0.000000e+00 : f32
    %9 = vector.broadcast %cst : f32 to vector<32x32xf32>
    %10 = vector.broadcast %cst_8 : f32 to vector<32x32xf32>
    %11 = arith.select %8, %9, %10 : vector<32x32xi1>, vector<32x32xf32>
    %cst_9 = arith.constant 1.000000e+00 : f32
    %12 = vector.broadcast %cst_9 : f32 to vector<1x32xf32>
    %cst_10 = arith.constant 1.000000e+00 : f32
    %13 = vector.broadcast %cst_10 : f32 to vector<32x1xf32>
    %14 = tpu.iota {dimensions = array<i32: 0>} : vector<2x1xi32>
    %15 = arith.addf %1, %11 : vector<32x32xf32>
    %cst_11 = arith.constant dense<0.000000e+00> : vector<32x32xf32>
    %16 = tpu.matmul %5, %3, %cst_11 {dimension_numbers = #tpu.dot_dimension_numbers<[1], [0], [0], [1], [0, 0, 1, 1], [], []>} : vector<32x2xf32>, vector<2x32xf32>, vector<32x32xf32> -> vector<32x32xf32>
    %cst_12 = arith.constant 1.000000e+00 : f32
    %17 = vector.broadcast %cst_12 : f32 to vector<1x32xf32>
    %cst_13 = arith.constant 1.000000e+00 : f32
    %18 = vector.broadcast %cst_13 : f32 to vector<32x1xf32>
    %c0_14 = arith.constant 0 : index
    %c0_15 = arith.constant 0 : index
    %c0_16 = arith.constant 0 : index
    %19 = vector.load %arg1[%c0_14, %c0_15, %c0_16] : memref<1x32x8xf32, #tpu.memory_space<vmem>>, vector<1x32x8xf32>
    %20 = vector.shape_cast %19 : vector<1x32x8xf32> to vector<32x8xf32>
    %cst_17 = arith.constant 0.000000e+00 : f32
    %21 = vector.broadcast %cst_17 : f32 to vector<2x32xf32>
    %cst_18 = arith.constant 0.000000e+00 : f32
    %22 = vector.broadcast %cst_18 : f32 to vector<2x32xf32>
    %cst_19 = arith.constant dense<0.000000e+00> : vector<32x1xf32>
    %23 = tpu.matmul %15, %18, %cst_19 {dimension_numbers = #tpu.dot_dimension_numbers<[1], [0], [0], [1], [0, 0, 1, 1], [], []>} : vector<32x32xf32>, vector<32x1xf32>, vector<32x1xf32> -> vector<32x1xf32>
    %24 = arith.mulf %18, %23 : vector<32x1xf32>
    %cst_20 = arith.constant dense<0.000000e+00> : vector<1x32xf32>
    %25 = tpu.matmul %17, %15, %cst_20 {dimension_numbers = #tpu.dot_dimension_numbers<[1], [0], [0], [1], [0, 0, 1, 1], [], []>} : vector<1x32xf32>, vector<32x32xf32>, vector<1x32xf32> -> vector<1x32xf32>
    %26 = arith.mulf %17, %25 : vector<1x32xf32>
    %cst_21 = arith.constant 0.000000e+00 : f32
    %27 = vector.broadcast %cst_21 : f32 to vector<32x1xf32>
    %28 = arith.cmpf ogt, %24, %27 : vector<32x1xf32>
    %29 = math.rsqrt %24 : vector<32x1xf32>
    %cst_22 = arith.constant 0.000000e+00 : f32
    %30 = vector.broadcast %cst_22 : f32 to vector<32x1xf32>
    %31 = arith.select %28, %29, %30 : vector<32x1xi1>, vector<32x1xf32>
    %cst_23 = arith.constant 0.000000e+00 : f32
    %32 = vector.broadcast %cst_23 : f32 to vector<1x32xf32>
    %33 = arith.cmpf ogt, %26, %32 : vector<1x32xf32>
    %34 = math.rsqrt %26 : vector<1x32xf32>
    %cst_24 = arith.constant 0.000000e+00 : f32
    %35 = vector.broadcast %cst_24 : f32 to vector<1x32xf32>
    %36 = arith.select %33, %34, %35 : vector<1x32xi1>, vector<1x32xf32>
    %37 = vector.broadcast %31 : vector<32x1xf32> to vector<32x32xf32>
    %38 = arith.mulf %15, %37 : vector<32x32xf32>
    %39 = vector.broadcast %36 : vector<1x32xf32> to vector<32x32xf32>
    %40 = arith.mulf %38, %39 : vector<32x32xf32>
    %c0_25 = arith.constant 0 : index
    %c0_26 = arith.constant 0 : index
    %41 = vector.load %arg5[%c0_25, %c0_26] : memref<232x32xf32, #tpu.memory_space<vmem>>, vector<8x32xf32>
    %c0_27 = arith.constant 0 : index
    %c0_28 = arith.constant 0 : index
    %42 = vector.load %arg6[%c0_27, %c0_28] : memref<8x32xf32, #tpu.memory_space<vmem>>, vector<1x32xf32>
    %cst_29 = arith.constant dense<0.000000e+00> : vector<32x32xf32>
    %43 = tpu.matmul %20, %41, %cst_29 {dimension_numbers = #tpu.dot_dimension_numbers<[1], [0], [0], [1], [0, 0, 1, 1], [], []>} : vector<32x8xf32>, vector<8x32xf32>, vector<32x32xf32> -> vector<32x32xf32>
    %cst_30 = arith.constant dense<0.000000e+00> : vector<32x32xf32>
    %44 = tpu.matmul %40, %43, %cst_30 {dimension_numbers = #tpu.dot_dimension_numbers<[1], [0], [0], [1], [0, 0, 1, 1], [], []>} : vector<32x32xf32>, vector<32x32xf32>, vector<32x32xf32> -> vector<32x32xf32>
    %45 = vector.broadcast %42 : vector<1x32xf32> to vector<32x32xf32>
    %46 = arith.addf %44, %45 : vector<32x32xf32>
    %cst_31 = arith.constant 0.000000e+00 : f32
    %47 = vector.broadcast %cst_31 : f32 to vector<32x32xf32>
    %48 = arith.maximumf %46, %47 : vector<32x32xf32>
    %49 = vector.broadcast %18 : vector<32x1xf32> to vector<32x32xf32>
    %50 = arith.mulf %48, %49 : vector<32x32xf32>
    %c72 = arith.constant 72 : index
    %c0_32 = arith.constant 0 : index
    %51 = vector.load %arg5[%c72, %c0_32] : memref<232x32xf32, #tpu.memory_space<vmem>>, vector<32x32xf32>
    %c3 = arith.constant 3 : index
    %c0_33 = arith.constant 0 : index
    %52 = vector.load %arg6[%c3, %c0_33] : memref<8x32xf32, #tpu.memory_space<vmem>>, vector<1x32xf32>
    %cst_34 = arith.constant dense<0.000000e+00> : vector<32x32xf32>
    %53 = tpu.matmul %50, %51, %cst_34 {dimension_numbers = #tpu.dot_dimension_numbers<[1], [0], [0], [1], [0, 0, 1, 1], [], []>} : vector<32x32xf32>, vector<32x32xf32>, vector<32x32xf32> -> vector<32x32xf32>
    %cst_35 = arith.constant dense<0.000000e+00> : vector<32x32xf32>
    %54 = tpu.matmul %40, %53, %cst_35 {dimension_numbers = #tpu.dot_dimension_numbers<[1], [0], [0], [1], [0, 0, 1, 1], [], []>} : vector<32x32xf32>, vector<32x32xf32>, vector<32x32xf32> -> vector<32x32xf32>
    %55 = vector.broadcast %52 : vector<1x32xf32> to vector<32x32xf32>
    %56 = arith.addf %54, %55 : vector<32x32xf32>
    %57 = vector.extract_strided_slice %56 {offsets = [0, 0], sizes = [32, 1], strides = [1, 1]} : vector<32x32xf32> to vector<32x1xf32>
    %cst_36 = arith.constant 0.000000e+00 : f32
    %58 = vector.broadcast %cst_36 : f32 to vector<32x1xf32>
    %59 = arith.cmpf ogt, %18, %58 : vector<32x1xf32>
    %cst_37 = arith.constant -1.000000e+30 : f32
    %60 = vector.broadcast %cst_37 : f32 to vector<32x1xf32>
    %61 = arith.select %59, %57, %60 : vector<32x1xi1>, vector<32x1xf32>
    %62 = vector.broadcast %61 : vector<32x1xf32> to vector<32x32xf32>
    %63 = arith.mulf %11, %62 : vector<32x32xf32>
    %cst_38 = arith.constant dense<0.000000e+00> : vector<1x32xf32>
    %64 = tpu.matmul %12, %63, %cst_38 {dimension_numbers = #tpu.dot_dimension_numbers<[1], [0], [0], [1], [0, 0, 1, 1], [], []>} : vector<1x32xf32>, vector<32x32xf32>, vector<1x32xf32> -> vector<1x32xf32>
    %65 = vector.broadcast %61 : vector<32x1xf32> to vector<32x32xf32>
    %66 = vector.broadcast %64 : vector<1x32xf32> to vector<32x32xf32>
    %67 = arith.cmpf ogt, %65, %66 : vector<32x32xf32>
    %68 = vector.broadcast %61 : vector<32x1xf32> to vector<32x32xf32>
    %69 = vector.broadcast %64 : vector<1x32xf32> to vector<32x32xf32>
    %70 = arith.cmpf oeq, %68, %69 : vector<32x32xf32>
    %71 = arith.cmpi slt, %6, %7 : vector<32x32xi32>
    %72 = arith.andi %70, %71 : vector<32x32xi1>
    %73 = arith.ori %67, %72 : vector<32x32xi1>
    %74 = arith.extui %73 : vector<32x32xi1> to vector<32x32xi32>
    %75 = arith.sitofp %74 : vector<32x32xi32> to vector<32x32xf32>
    %76 = vector.broadcast %18 : vector<32x1xf32> to vector<32x32xf32>
    %77 = arith.mulf %16, %76 : vector<32x32xf32>
    %78 = arith.mulf %77, %75 : vector<32x32xf32>
    %cst_39 = arith.constant dense<0.000000e+00> : vector<1x32xf32>
    %79 = tpu.matmul %12, %78, %cst_39 {dimension_numbers = #tpu.dot_dimension_numbers<[1], [0], [0], [1], [0, 0, 1, 1], [], []>} : vector<1x32xf32>, vector<32x32xf32>, vector<1x32xf32> -> vector<1x32xf32>
    %cst_40 = arith.constant dense<0.000000e+00> : vector<1x32xf32>
    %80 = tpu.matmul %17, %16, %cst_40 {dimension_numbers = #tpu.dot_dimension_numbers<[1], [0], [0], [1], [0, 0, 1, 1], [], []>} : vector<1x32xf32>, vector<32x32xf32>, vector<1x32xf32> -> vector<1x32xf32>
    %cst_41 = arith.constant 5.000000e-01 : f32
    %81 = vector.broadcast %cst_41 : f32 to vector<1x32xf32>
    %82 = arith.mulf %81, %80 : vector<1x32xf32>
    %cst_42 = arith.constant 0.000000e+00 : f32
    %83 = vector.broadcast %cst_42 : f32 to vector<1x32xf32>
    %84 = arith.cmpf ogt, %17, %83 : vector<1x32xf32>
    %85 = arith.cmpf olt, %79, %82 : vector<1x32xf32>
    %86 = arith.andi %84, %85 : vector<1x32xi1>
    %cst_43 = arith.constant 1.000000e+00 : f32
    %cst_44 = arith.constant 0.000000e+00 : f32
    %87 = vector.broadcast %cst_43 : f32 to vector<1x32xf32>
    %88 = vector.broadcast %cst_44 : f32 to vector<1x32xf32>
    %89 = arith.select %86, %87, %88 : vector<1x32xi1>, vector<1x32xf32>
    %90 = vector.broadcast %89 : vector<1x32xf32> to vector<32x32xf32>
    %91 = arith.mulf %11, %90 : vector<32x32xf32>
    %cst_45 = arith.constant dense<0.000000e+00> : vector<32x1xf32>
    %92 = tpu.matmul %91, %13, %cst_45 {dimension_numbers = #tpu.dot_dimension_numbers<[1], [0], [0], [1], [0, 0, 1, 1], [], []>} : vector<32x32xf32>, vector<32x1xf32>, vector<32x1xf32> -> vector<32x1xf32>
    %93 = math.tanh %57 : vector<32x1xf32>
    %94 = vector.broadcast %93 : vector<32x1xf32> to vector<32x32xf32>
    %95 = arith.mulf %50, %94 : vector<32x32xf32>
    %96 = vector.broadcast %92 : vector<32x1xf32> to vector<32x32xf32>
    %97 = arith.mulf %95, %96 : vector<32x32xf32>
    %98 = vector.broadcast %89 : vector<1x32xf32> to vector<2x32xf32>
    %99 = arith.mulf %3, %98 : vector<2x32xf32>
    %100 = vector.broadcast %92 : vector<32x1xf32> to vector<32x2xf32>
    %101 = arith.mulf %5, %100 : vector<32x2xf32>
    %cst_46 = arith.constant dense<0.000000e+00> : vector<2x32xf32>
    %102 = tpu.matmul %99, %97, %cst_46 {dimension_numbers = #tpu.dot_dimension_numbers<[1], [0], [0], [1], [0, 0, 1, 1], [], []>} : vector<2x32xf32>, vector<32x32xf32>, vector<2x32xf32> -> vector<2x32xf32>
    %cst_47 = arith.constant dense<0.000000e+00> : vector<2x1xf32>
    %103 = tpu.matmul %99, %13, %cst_47 {dimension_numbers = #tpu.dot_dimension_numbers<[1], [0], [0], [1], [0, 0, 1, 1], [], []>} : vector<2x32xf32>, vector<32x1xf32>, vector<2x1xf32> -> vector<2x1xf32>
    %cst_48 = arith.constant 1.000000e+00 : f32
    %104 = vector.broadcast %cst_48 : f32 to vector<2x1xf32>
    %105 = arith.maximumf %103, %104 : vector<2x1xf32>
    %106 = vector.broadcast %105 : vector<2x1xf32> to vector<2x32xf32>
    %107 = arith.divf %102, %106 : vector<2x32xf32>
    %cst_49 = arith.constant 0.000000e+00 : f32
    %108 = vector.broadcast %cst_49 : f32 to vector<2x32xf32>
    %109 = vector.extract_strided_slice %101 {offsets = [0, 0], sizes = [32, 1], strides = [1, 1]} : vector<32x2xf32> to vector<32x1xf32>
    %cst_50 = arith.constant 0.000000e+00 : f32
    %110 = vector.broadcast %cst_50 : f32 to vector<32x1xf32>
    %111 = arith.cmpf ogt, %109, %110 : vector<32x1xf32>
    %cst_51 = arith.constant -1.000000e+30 : f32
    %112 = vector.shape_cast %111 : vector<32x1xi1> to vector<32x1xi1>
    %113 = vector.broadcast %112 : vector<32x1xi1> to vector<32x32xi1>
    %114 = vector.broadcast %cst_51 : f32 to vector<32x32xf32>
    %115 = arith.select %113, %97, %114 : vector<32x32xi1>, vector<32x32xf32>
    %cst_52 = arith.constant dense<0xFF800000> : vector<32xf32>
    %116 = vector.multi_reduction <maximumf>, %115, %cst_52 [0] : vector<32x32xf32> to vector<32xf32>
    %117 = vector.shape_cast %116 : vector<32xf32> to vector<1x32xf32>
    %c0_i32 = arith.constant 0 : i32
    %118 = vector.broadcast %c0_i32 : i32 to vector<2x1xi32>
    %119 = arith.cmpi eq, %14, %118 : vector<2x1xi32>
    %120 = vector.shape_cast %119 : vector<2x1xi1> to vector<2x1xi1>
    %121 = vector.broadcast %120 : vector<2x1xi1> to vector<2x32xi1>
    %122 = vector.shape_cast %117 : vector<1x32xf32> to vector<1x32xf32>
    %123 = vector.broadcast %122 : vector<1x32xf32> to vector<2x32xf32>
    %124 = arith.select %121, %123, %108 : vector<2x32xi1>, vector<2x32xf32>
    %125 = vector.extract_strided_slice %101 {offsets = [0, 1], sizes = [32, 1], strides = [1, 1]} : vector<32x2xf32> to vector<32x1xf32>
    %cst_53 = arith.constant 0.000000e+00 : f32
    %126 = vector.broadcast %cst_53 : f32 to vector<32x1xf32>
    %127 = arith.cmpf ogt, %125, %126 : vector<32x1xf32>
    %cst_54 = arith.constant -1.000000e+30 : f32
    %128 = vector.shape_cast %127 : vector<32x1xi1> to vector<32x1xi1>
    %129 = vector.broadcast %128 : vector<32x1xi1> to vector<32x32xi1>
    %130 = vector.broadcast %cst_54 : f32 to vector<32x32xf32>
    %131 = arith.select %129, %97, %130 : vector<32x32xi1>, vector<32x32xf32>
    %cst_55 = arith.constant dense<0xFF800000> : vector<32xf32>
    %132 = vector.multi_reduction <maximumf>, %131, %cst_55 [0] : vector<32x32xf32> to vector<32xf32>
    %133 = vector.shape_cast %132 : vector<32xf32> to vector<1x32xf32>
    %c1_i32 = arith.constant 1 : i32
    %134 = vector.broadcast %c1_i32 : i32 to vector<2x1xi32>
    %135 = arith.cmpi eq, %14, %134 : vector<2x1xi32>
    %136 = vector.shape_cast %135 : vector<2x1xi1> to vector<2x1xi1>
    %137 = vector.broadcast %136 : vector<2x1xi1> to vector<2x32xi1>
    %138 = vector.shape_cast %133 : vector<1x32xf32> to vector<1x32xf32>
    %139 = vector.broadcast %138 : vector<1x32xf32> to vector<2x32xf32>
    %140 = arith.select %137, %139, %124 : vector<2x32xi1>, vector<2x32xf32>
    %cst_56 = arith.constant 0.000000e+00 : f32
    %141 = vector.broadcast %cst_56 : f32 to vector<2x1xf32>
    %142 = arith.cmpf ogt, %103, %141 : vector<2x1xf32>
    %cst_57 = arith.constant 0.000000e+00 : f32
    %143 = vector.shape_cast %142 : vector<2x1xi1> to vector<2x1xi1>
    %144 = vector.broadcast %143 : vector<2x1xi1> to vector<2x32xi1>
    %145 = vector.broadcast %cst_57 : f32 to vector<2x32xf32>
    %146 = arith.select %144, %140, %145 : vector<2x32xi1>, vector<2x32xf32>
    %147 = arith.addf %21, %146 : vector<2x32xf32>
    %148 = arith.addf %22, %107 : vector<2x32xf32>
    %cst_58 = arith.constant dense<0.000000e+00> : vector<32x1xf32>
    %149 = tpu.matmul %15, %92, %cst_58 {dimension_numbers = #tpu.dot_dimension_numbers<[1], [0], [0], [1], [0, 0, 1, 1], [], []>} : vector<32x32xf32>, vector<32x1xf32>, vector<32x1xf32> -> vector<32x1xf32>
    %150 = arith.mulf %92, %149 : vector<32x1xf32>
    %cst_59 = arith.constant dense<0.000000e+00> : vector<1x32xf32>
    %151 = tpu.matmul %89, %15, %cst_59 {dimension_numbers = #tpu.dot_dimension_numbers<[1], [0], [0], [1], [0, 0, 1, 1], [], []>} : vector<1x32xf32>, vector<32x32xf32>, vector<1x32xf32> -> vector<1x32xf32>
    %152 = arith.mulf %89, %151 : vector<1x32xf32>
    %cst_60 = arith.constant 0.000000e+00 : f32
    %153 = vector.broadcast %cst_60 : f32 to vector<32x1xf32>
    %154 = arith.cmpf ogt, %150, %153 : vector<32x1xf32>
    %155 = math.rsqrt %150 : vector<32x1xf32>
    %cst_61 = arith.constant 0.000000e+00 : f32
    %156 = vector.broadcast %cst_61 : f32 to vector<32x1xf32>
    %157 = arith.select %154, %155, %156 : vector<32x1xi1>, vector<32x1xf32>
    %cst_62 = arith.constant 0.000000e+00 : f32
    %158 = vector.broadcast %cst_62 : f32 to vector<1x32xf32>
    %159 = arith.cmpf ogt, %152, %158 : vector<1x32xf32>
    %160 = math.rsqrt %152 : vector<1x32xf32>
    %cst_63 = arith.constant 0.000000e+00 : f32
    %161 = vector.broadcast %cst_63 : f32 to vector<1x32xf32>
    %162 = arith.select %159, %160, %161 : vector<1x32xi1>, vector<1x32xf32>
    %163 = vector.broadcast %157 : vector<32x1xf32> to vector<32x32xf32>
    %164 = arith.mulf %15, %163 : vector<32x32xf32>
    %165 = vector.broadcast %162 : vector<1x32xf32> to vector<32x32xf32>
    %166 = arith.mulf %164, %165 : vector<32x32xf32>
    %c8 = arith.constant 8 : index
    %c0_64 = arith.constant 0 : index
    %167 = vector.load %arg5[%c8, %c0_64] : memref<232x32xf32, #tpu.memory_space<vmem>>, vector<32x32xf32>
    %c1 = arith.constant 1 : index
    %c0_65 = arith.constant 0 : index
    %168 = vector.load %arg6[%c1, %c0_65] : memref<8x32xf32, #tpu.memory_space<vmem>>, vector<1x32xf32>
    %cst_66 = arith.constant dense<0.000000e+00> : vector<32x32xf32>
    %169 = tpu.matmul %97, %167, %cst_66 {dimension_numbers = #tpu.dot_dimension_numbers<[1], [0], [0], [1], [0, 0, 1, 1], [], []>} : vector<32x32xf32>, vector<32x32xf32>, vector<32x32xf32> -> vector<32x32xf32>
    %cst_67 = arith.constant dense<0.000000e+00> : vector<32x32xf32>
    %170 = tpu.matmul %166, %169, %cst_67 {dimension_numbers = #tpu.dot_dimension_numbers<[1], [0], [0], [1], [0, 0, 1, 1], [], []>} : vector<32x32xf32>, vector<32x32xf32>, vector<32x32xf32> -> vector<32x32xf32>
    %171 = vector.broadcast %168 : vector<1x32xf32> to vector<32x32xf32>
    %172 = arith.addf %170, %171 : vector<32x32xf32>
    %cst_68 = arith.constant 0.000000e+00 : f32
    %173 = vector.broadcast %cst_68 : f32 to vector<32x32xf32>
    %174 = arith.maximumf %172, %173 : vector<32x32xf32>
    %175 = vector.broadcast %92 : vector<32x1xf32> to vector<32x32xf32>
    %176 = arith.mulf %174, %175 : vector<32x32xf32>
    %c72_69 = arith.constant 72 : index
    %c0_70 = arith.constant 0 : index
    %177 = vector.load %arg5[%c72_69, %c0_70] : memref<232x32xf32, #tpu.memory_space<vmem>>, vector<32x32xf32>
    %c3_71 = arith.constant 3 : index
    %c0_72 = arith.constant 0 : index
    %178 = vector.load %arg6[%c3_71, %c0_72] : memref<8x32xf32, #tpu.memory_space<vmem>>, vector<1x32xf32>
    %cst_73 = arith.constant dense<0.000000e+00> : vector<32x32xf32>
    %179 = tpu.matmul %176, %177, %cst_73 {dimension_numbers = #tpu.dot_dimension_numbers<[1], [0], [0], [1], [0, 0, 1, 1], [], []>} : vector<32x32xf32>, vector<32x32xf32>, vector<32x32xf32> -> vector<32x32xf32>
    %cst_74 = arith.constant dense<0.000000e+00> : vector<32x32xf32>
    %180 = tpu.matmul %166, %179, %cst_74 {dimension_numbers = #tpu.dot_dimension_numbers<[1], [0], [0], [1], [0, 0, 1, 1], [], []>} : vector<32x32xf32>, vector<32x32xf32>, vector<32x32xf32> -> vector<32x32xf32>
    %181 = vector.broadcast %178 : vector<1x32xf32> to vector<32x32xf32>
    %182 = arith.addf %180, %181 : vector<32x32xf32>
    %183 = vector.extract_strided_slice %182 {offsets = [0, 1], sizes = [32, 1], strides = [1, 1]} : vector<32x32xf32> to vector<32x1xf32>
    %cst_75 = arith.constant 0.000000e+00 : f32
    %184 = vector.broadcast %cst_75 : f32 to vector<32x1xf32>
    %185 = arith.cmpf ogt, %92, %184 : vector<32x1xf32>
    %cst_76 = arith.constant -1.000000e+30 : f32
    %186 = vector.broadcast %cst_76 : f32 to vector<32x1xf32>
    %187 = arith.select %185, %183, %186 : vector<32x1xi1>, vector<32x1xf32>
    %188 = vector.broadcast %187 : vector<32x1xf32> to vector<32x32xf32>
    %189 = arith.mulf %11, %188 : vector<32x32xf32>
    %cst_77 = arith.constant dense<0.000000e+00> : vector<1x32xf32>
    %190 = tpu.matmul %12, %189, %cst_77 {dimension_numbers = #tpu.dot_dimension_numbers<[1], [0], [0], [1], [0, 0, 1, 1], [], []>} : vector<1x32xf32>, vector<32x32xf32>, vector<1x32xf32> -> vector<1x32xf32>
    %191 = vector.broadcast %187 : vector<32x1xf32> to vector<32x32xf32>
    %192 = vector.broadcast %190 : vector<1x32xf32> to vector<32x32xf32>
    %193 = arith.cmpf ogt, %191, %192 : vector<32x32xf32>
    %194 = vector.broadcast %187 : vector<32x1xf32> to vector<32x32xf32>
    %195 = vector.broadcast %190 : vector<1x32xf32> to vector<32x32xf32>
    %196 = arith.cmpf oeq, %194, %195 : vector<32x32xf32>
    %197 = arith.cmpi slt, %6, %7 : vector<32x32xi32>
    %198 = arith.andi %196, %197 : vector<32x32xi1>
    %199 = arith.ori %193, %198 : vector<32x32xi1>
    %200 = arith.extui %199 : vector<32x32xi1> to vector<32x32xi32>
    %201 = arith.sitofp %200 : vector<32x32xi32> to vector<32x32xf32>
    %202 = vector.broadcast %92 : vector<32x1xf32> to vector<32x32xf32>
    %203 = arith.mulf %16, %202 : vector<32x32xf32>
    %204 = arith.mulf %203, %201 : vector<32x32xf32>
    %cst_78 = arith.constant dense<0.000000e+00> : vector<1x32xf32>
    %205 = tpu.matmul %12, %204, %cst_78 {dimension_numbers = #tpu.dot_dimension_numbers<[1], [0], [0], [1], [0, 0, 1, 1], [], []>} : vector<1x32xf32>, vector<32x32xf32>, vector<1x32xf32> -> vector<1x32xf32>
    %cst_79 = arith.constant dense<0.000000e+00> : vector<1x32xf32>
    %206 = tpu.matmul %89, %16, %cst_79 {dimension_numbers = #tpu.dot_dimension_numbers<[1], [0], [0], [1], [0, 0, 1, 1], [], []>} : vector<1x32xf32>, vector<32x32xf32>, vector<1x32xf32> -> vector<1x32xf32>
    %cst_80 = arith.constant 5.000000e-01 : f32
    %207 = vector.broadcast %cst_80 : f32 to vector<1x32xf32>
    %208 = arith.mulf %207, %206 : vector<1x32xf32>
    %cst_81 = arith.constant 0.000000e+00 : f32
    %209 = vector.broadcast %cst_81 : f32 to vector<1x32xf32>
    %210 = arith.cmpf ogt, %89, %209 : vector<1x32xf32>
    %211 = arith.cmpf olt, %205, %208 : vector<1x32xf32>
    %212 = arith.andi %210, %211 : vector<1x32xi1>
    %cst_82 = arith.constant 1.000000e+00 : f32
    %cst_83 = arith.constant 0.000000e+00 : f32
    %213 = vector.broadcast %cst_82 : f32 to vector<1x32xf32>
    %214 = vector.broadcast %cst_83 : f32 to vector<1x32xf32>
    %215 = arith.select %212, %213, %214 : vector<1x32xi1>, vector<1x32xf32>
    %216 = vector.broadcast %215 : vector<1x32xf32> to vector<32x32xf32>
    %217 = arith.mulf %11, %216 : vector<32x32xf32>
    %cst_84 = arith.constant dense<0.000000e+00> : vector<32x1xf32>
    %218 = tpu.matmul %217, %13, %cst_84 {dimension_numbers = #tpu.dot_dimension_numbers<[1], [0], [0], [1], [0, 0, 1, 1], [], []>} : vector<32x32xf32>, vector<32x1xf32>, vector<32x1xf32> -> vector<32x1xf32>
    %219 = math.tanh %183 : vector<32x1xf32>
    %220 = vector.broadcast %219 : vector<32x1xf32> to vector<32x32xf32>
    %221 = arith.mulf %176, %220 : vector<32x32xf32>
    %222 = vector.broadcast %218 : vector<32x1xf32> to vector<32x32xf32>
    %223 = arith.mulf %221, %222 : vector<32x32xf32>
    %224 = vector.broadcast %215 : vector<1x32xf32> to vector<2x32xf32>
    %225 = arith.mulf %3, %224 : vector<2x32xf32>
    %226 = vector.broadcast %218 : vector<32x1xf32> to vector<32x2xf32>
    %227 = arith.mulf %5, %226 : vector<32x2xf32>
    %cst_85 = arith.constant dense<0.000000e+00> : vector<2x32xf32>
    %228 = tpu.matmul %225, %223, %cst_85 {dimension_numbers = #tpu.dot_dimension_numbers<[1], [0], [0], [1], [0, 0, 1, 1], [], []>} : vector<2x32xf32>, vector<32x32xf32>, vector<2x32xf32> -> vector<2x32xf32>
    %cst_86 = arith.constant dense<0.000000e+00> : vector<2x1xf32>
    %229 = tpu.matmul %225, %13, %cst_86 {dimension_numbers = #tpu.dot_dimension_numbers<[1], [0], [0], [1], [0, 0, 1, 1], [], []>} : vector<2x32xf32>, vector<32x1xf32>, vector<2x1xf32> -> vector<2x1xf32>
    %cst_87 = arith.constant 1.000000e+00 : f32
    %230 = vector.broadcast %cst_87 : f32 to vector<2x1xf32>
    %231 = arith.maximumf %229, %230 : vector<2x1xf32>
    %232 = vector.broadcast %231 : vector<2x1xf32> to vector<2x32xf32>
    %233 = arith.divf %228, %232 : vector<2x32xf32>
    %cst_88 = arith.constant 0.000000e+00 : f32
    %234 = vector.broadcast %cst_88 : f32 to vector<2x32xf32>
    %235 = vector.extract_strided_slice %227 {offsets = [0, 0], sizes = [32, 1], strides = [1, 1]} : vector<32x2xf32> to vector<32x1xf32>
    %cst_89 = arith.constant 0.000000e+00 : f32
    %236 = vector.broadcast %cst_89 : f32 to vector<32x1xf32>
    %237 = arith.cmpf ogt, %235, %236 : vector<32x1xf32>
    %cst_90 = arith.constant -1.000000e+30 : f32
    %238 = vector.shape_cast %237 : vector<32x1xi1> to vector<32x1xi1>
    %239 = vector.broadcast %238 : vector<32x1xi1> to vector<32x32xi1>
    %240 = vector.broadcast %cst_90 : f32 to vector<32x32xf32>
    %241 = arith.select %239, %223, %240 : vector<32x32xi1>, vector<32x32xf32>
    %cst_91 = arith.constant dense<0xFF800000> : vector<32xf32>
    %242 = vector.multi_reduction <maximumf>, %241, %cst_91 [0] : vector<32x32xf32> to vector<32xf32>
    %243 = vector.shape_cast %242 : vector<32xf32> to vector<1x32xf32>
    %c0_i32_92 = arith.constant 0 : i32
    %244 = vector.broadcast %c0_i32_92 : i32 to vector<2x1xi32>
    %245 = arith.cmpi eq, %14, %244 : vector<2x1xi32>
    %246 = vector.shape_cast %245 : vector<2x1xi1> to vector<2x1xi1>
    %247 = vector.broadcast %246 : vector<2x1xi1> to vector<2x32xi1>
    %248 = vector.shape_cast %243 : vector<1x32xf32> to vector<1x32xf32>
    %249 = vector.broadcast %248 : vector<1x32xf32> to vector<2x32xf32>
    %250 = arith.select %247, %249, %234 : vector<2x32xi1>, vector<2x32xf32>
    %251 = vector.extract_strided_slice %227 {offsets = [0, 1], sizes = [32, 1], strides = [1, 1]} : vector<32x2xf32> to vector<32x1xf32>
    %cst_93 = arith.constant 0.000000e+00 : f32
    %252 = vector.broadcast %cst_93 : f32 to vector<32x1xf32>
    %253 = arith.cmpf ogt, %251, %252 : vector<32x1xf32>
    %cst_94 = arith.constant -1.000000e+30 : f32
    %254 = vector.shape_cast %253 : vector<32x1xi1> to vector<32x1xi1>
    %255 = vector.broadcast %254 : vector<32x1xi1> to vector<32x32xi1>
    %256 = vector.broadcast %cst_94 : f32 to vector<32x32xf32>
    %257 = arith.select %255, %223, %256 : vector<32x32xi1>, vector<32x32xf32>
    %cst_95 = arith.constant dense<0xFF800000> : vector<32xf32>
    %258 = vector.multi_reduction <maximumf>, %257, %cst_95 [0] : vector<32x32xf32> to vector<32xf32>
    %259 = vector.shape_cast %258 : vector<32xf32> to vector<1x32xf32>
    %c1_i32_96 = arith.constant 1 : i32
    %260 = vector.broadcast %c1_i32_96 : i32 to vector<2x1xi32>
    %261 = arith.cmpi eq, %14, %260 : vector<2x1xi32>
    %262 = vector.shape_cast %261 : vector<2x1xi1> to vector<2x1xi1>
    %263 = vector.broadcast %262 : vector<2x1xi1> to vector<2x32xi1>
    %264 = vector.shape_cast %259 : vector<1x32xf32> to vector<1x32xf32>
    %265 = vector.broadcast %264 : vector<1x32xf32> to vector<2x32xf32>
    %266 = arith.select %263, %265, %250 : vector<2x32xi1>, vector<2x32xf32>
    %cst_97 = arith.constant 0.000000e+00 : f32
    %267 = vector.broadcast %cst_97 : f32 to vector<2x1xf32>
    %268 = arith.cmpf ogt, %229, %267 : vector<2x1xf32>
    %cst_98 = arith.constant 0.000000e+00 : f32
    %269 = vector.shape_cast %268 : vector<2x1xi1> to vector<2x1xi1>
    %270 = vector.broadcast %269 : vector<2x1xi1> to vector<2x32xi1>
    %271 = vector.broadcast %cst_98 : f32 to vector<2x32xf32>
    %272 = arith.select %270, %266, %271 : vector<2x32xi1>, vector<2x32xf32>
    %273 = arith.addf %147, %272 : vector<2x32xf32>
    %274 = arith.addf %148, %233 : vector<2x32xf32>
    %cst_99 = arith.constant dense<0.000000e+00> : vector<32x1xf32>
    %275 = tpu.matmul %15, %218, %cst_99 {dimension_numbers = #tpu.dot_dimension_numbers<[1], [0], [0], [1], [0, 0, 1, 1], [], []>} : vector<32x32xf32>, vector<32x1xf32>, vector<32x1xf32> -> vector<32x1xf32>
    %276 = arith.mulf %218, %275 : vector<32x1xf32>
    %cst_100 = arith.constant dense<0.000000e+00> : vector<1x32xf32>
    %277 = tpu.matmul %215, %15, %cst_100 {dimension_numbers = #tpu.dot_dimension_numbers<[1], [0], [0], [1], [0, 0, 1, 1], [], []>} : vector<1x32xf32>, vector<32x32xf32>, vector<1x32xf32> -> vector<1x32xf32>
    %278 = arith.mulf %215, %277 : vector<1x32xf32>
    %cst_101 = arith.constant 0.000000e+00 : f32
    %279 = vector.broadcast %cst_101 : f32 to vector<32x1xf32>
    %280 = arith.cmpf ogt, %276, %279 : vector<32x1xf32>
    %281 = math.rsqrt %276 : vector<32x1xf32>
    %cst_102 = arith.constant 0.000000e+00 : f32
    %282 = vector.broadcast %cst_102 : f32 to vector<32x1xf32>
    %283 = arith.select %280, %281, %282 : vector<32x1xi1>, vector<32x1xf32>
    %cst_103 = arith.constant 0.000000e+00 : f32
    %284 = vector.broadcast %cst_103 : f32 to vector<1x32xf32>
    %285 = arith.cmpf ogt, %278, %284 : vector<1x32xf32>
    %286 = math.rsqrt %278 : vector<1x32xf32>
    %cst_104 = arith.constant 0.000000e+00 : f32
    %287 = vector.broadcast %cst_104 : f32 to vector<1x32xf32>
    %288 = arith.select %285, %286, %287 : vector<1x32xi1>, vector<1x32xf32>
    %289 = vector.broadcast %283 : vector<32x1xf32> to vector<32x32xf32>
    %290 = arith.mulf %15, %289 : vector<32x32xf32>
    %291 = vector.broadcast %288 : vector<1x32xf32> to vector<32x32xf32>
    %292 = arith.mulf %290, %291 : vector<32x32xf32>
    %c40 = arith.constant 40 : index
    %c0_105 = arith.constant 0 : index
    %293 = vector.load %arg5[%c40, %c0_105] : memref<232x32xf32, #tpu.memory_space<vmem>>, vector<32x32xf32>
    %c2 = arith.constant 2 : index
    %c0_106 = arith.constant 0 : index
    %294 = vector.load %arg6[%c2, %c0_106] : memref<8x32xf32, #tpu.memory_space<vmem>>, vector<1x32xf32>
    %cst_107 = arith.constant dense<0.000000e+00> : vector<32x32xf32>
    %295 = tpu.matmul %223, %293, %cst_107 {dimension_numbers = #tpu.dot_dimension_numbers<[1], [0], [0], [1], [0, 0, 1, 1], [], []>} : vector<32x32xf32>, vector<32x32xf32>, vector<32x32xf32> -> vector<32x32xf32>
    %cst_108 = arith.constant dense<0.000000e+00> : vector<32x32xf32>
    %296 = tpu.matmul %292, %295, %cst_108 {dimension_numbers = #tpu.dot_dimension_numbers<[1], [0], [0], [1], [0, 0, 1, 1], [], []>} : vector<32x32xf32>, vector<32x32xf32>, vector<32x32xf32> -> vector<32x32xf32>
    %297 = vector.broadcast %294 : vector<1x32xf32> to vector<32x32xf32>
    %298 = arith.addf %296, %297 : vector<32x32xf32>
    %cst_109 = arith.constant 0.000000e+00 : f32
    %299 = vector.broadcast %cst_109 : f32 to vector<32x32xf32>
    %300 = arith.maximumf %298, %299 : vector<32x32xf32>
    %301 = vector.broadcast %218 : vector<32x1xf32> to vector<32x32xf32>
    %302 = arith.mulf %300, %301 : vector<32x32xf32>
    %c72_110 = arith.constant 72 : index
    %c0_111 = arith.constant 0 : index
    %303 = vector.load %arg5[%c72_110, %c0_111] : memref<232x32xf32, #tpu.memory_space<vmem>>, vector<32x32xf32>
    %c3_112 = arith.constant 3 : index
    %c0_113 = arith.constant 0 : index
    %304 = vector.load %arg6[%c3_112, %c0_113] : memref<8x32xf32, #tpu.memory_space<vmem>>, vector<1x32xf32>
    %cst_114 = arith.constant dense<0.000000e+00> : vector<32x32xf32>
    %305 = tpu.matmul %302, %303, %cst_114 {dimension_numbers = #tpu.dot_dimension_numbers<[1], [0], [0], [1], [0, 0, 1, 1], [], []>} : vector<32x32xf32>, vector<32x32xf32>, vector<32x32xf32> -> vector<32x32xf32>
    %cst_115 = arith.constant dense<0.000000e+00> : vector<32x32xf32>
    %306 = tpu.matmul %292, %305, %cst_115 {dimension_numbers = #tpu.dot_dimension_numbers<[1], [0], [0], [1], [0, 0, 1, 1], [], []>} : vector<32x32xf32>, vector<32x32xf32>, vector<32x32xf32> -> vector<32x32xf32>
    %307 = vector.broadcast %304 : vector<1x32xf32> to vector<32x32xf32>
    %308 = arith.addf %306, %307 : vector<32x32xf32>
    %309 = vector.extract_strided_slice %308 {offsets = [0, 2], sizes = [32, 1], strides = [1, 1]} : vector<32x32xf32> to vector<32x1xf32>
    %cst_116 = arith.constant 0.000000e+00 : f32
    %310 = vector.broadcast %cst_116 : f32 to vector<32x1xf32>
    %311 = arith.cmpf ogt, %218, %310 : vector<32x1xf32>
    %cst_117 = arith.constant -1.000000e+30 : f32
    %312 = vector.broadcast %cst_117 : f32 to vector<32x1xf32>
    %313 = arith.select %311, %309, %312 : vector<32x1xi1>, vector<32x1xf32>
    %314 = vector.broadcast %313 : vector<32x1xf32> to vector<32x32xf32>
    %315 = arith.mulf %11, %314 : vector<32x32xf32>
    %cst_118 = arith.constant dense<0.000000e+00> : vector<1x32xf32>
    %316 = tpu.matmul %12, %315, %cst_118 {dimension_numbers = #tpu.dot_dimension_numbers<[1], [0], [0], [1], [0, 0, 1, 1], [], []>} : vector<1x32xf32>, vector<32x32xf32>, vector<1x32xf32> -> vector<1x32xf32>
    %317 = vector.broadcast %313 : vector<32x1xf32> to vector<32x32xf32>
    %318 = vector.broadcast %316 : vector<1x32xf32> to vector<32x32xf32>
    %319 = arith.cmpf ogt, %317, %318 : vector<32x32xf32>
    %320 = vector.broadcast %313 : vector<32x1xf32> to vector<32x32xf32>
    %321 = vector.broadcast %316 : vector<1x32xf32> to vector<32x32xf32>
    %322 = arith.cmpf oeq, %320, %321 : vector<32x32xf32>
    %323 = arith.cmpi slt, %6, %7 : vector<32x32xi32>
    %324 = arith.andi %322, %323 : vector<32x32xi1>
    %325 = arith.ori %319, %324 : vector<32x32xi1>
    %326 = arith.extui %325 : vector<32x32xi1> to vector<32x32xi32>
    %327 = arith.sitofp %326 : vector<32x32xi32> to vector<32x32xf32>
    %328 = vector.broadcast %218 : vector<32x1xf32> to vector<32x32xf32>
    %329 = arith.mulf %16, %328 : vector<32x32xf32>
    %330 = arith.mulf %329, %327 : vector<32x32xf32>
    %cst_119 = arith.constant dense<0.000000e+00> : vector<1x32xf32>
    %331 = tpu.matmul %12, %330, %cst_119 {dimension_numbers = #tpu.dot_dimension_numbers<[1], [0], [0], [1], [0, 0, 1, 1], [], []>} : vector<1x32xf32>, vector<32x32xf32>, vector<1x32xf32> -> vector<1x32xf32>
    %cst_120 = arith.constant dense<0.000000e+00> : vector<1x32xf32>
    %332 = tpu.matmul %215, %16, %cst_120 {dimension_numbers = #tpu.dot_dimension_numbers<[1], [0], [0], [1], [0, 0, 1, 1], [], []>} : vector<1x32xf32>, vector<32x32xf32>, vector<1x32xf32> -> vector<1x32xf32>
    %cst_121 = arith.constant 5.000000e-01 : f32
    %333 = vector.broadcast %cst_121 : f32 to vector<1x32xf32>
    %334 = arith.mulf %333, %332 : vector<1x32xf32>
    %cst_122 = arith.constant 0.000000e+00 : f32
    %335 = vector.broadcast %cst_122 : f32 to vector<1x32xf32>
    %336 = arith.cmpf ogt, %215, %335 : vector<1x32xf32>
    %337 = arith.cmpf olt, %331, %334 : vector<1x32xf32>
    %338 = arith.andi %336, %337 : vector<1x32xi1>
    %cst_123 = arith.constant 1.000000e+00 : f32
    %cst_124 = arith.constant 0.000000e+00 : f32
    %339 = vector.broadcast %cst_123 : f32 to vector<1x32xf32>
    %340 = vector.broadcast %cst_124 : f32 to vector<1x32xf32>
    %341 = arith.select %338, %339, %340 : vector<1x32xi1>, vector<1x32xf32>
    %342 = vector.broadcast %341 : vector<1x32xf32> to vector<32x32xf32>
    %343 = arith.mulf %11, %342 : vector<32x32xf32>
    %cst_125 = arith.constant dense<0.000000e+00> : vector<32x1xf32>
    %344 = tpu.matmul %343, %13, %cst_125 {dimension_numbers = #tpu.dot_dimension_numbers<[1], [0], [0], [1], [0, 0, 1, 1], [], []>} : vector<32x32xf32>, vector<32x1xf32>, vector<32x1xf32> -> vector<32x1xf32>
    %345 = math.tanh %309 : vector<32x1xf32>
    %346 = vector.broadcast %345 : vector<32x1xf32> to vector<32x32xf32>
    %347 = arith.mulf %302, %346 : vector<32x32xf32>
    %348 = vector.broadcast %344 : vector<32x1xf32> to vector<32x32xf32>
    %349 = arith.mulf %347, %348 : vector<32x32xf32>
    %350 = vector.broadcast %341 : vector<1x32xf32> to vector<2x32xf32>
    %351 = arith.mulf %3, %350 : vector<2x32xf32>
    %352 = vector.broadcast %344 : vector<32x1xf32> to vector<32x2xf32>
    %353 = arith.mulf %5, %352 : vector<32x2xf32>
    %cst_126 = arith.constant dense<0.000000e+00> : vector<2x32xf32>
    %354 = tpu.matmul %351, %349, %cst_126 {dimension_numbers = #tpu.dot_dimension_numbers<[1], [0], [0], [1], [0, 0, 1, 1], [], []>} : vector<2x32xf32>, vector<32x32xf32>, vector<2x32xf32> -> vector<2x32xf32>
    %cst_127 = arith.constant dense<0.000000e+00> : vector<2x1xf32>
    %355 = tpu.matmul %351, %13, %cst_127 {dimension_numbers = #tpu.dot_dimension_numbers<[1], [0], [0], [1], [0, 0, 1, 1], [], []>} : vector<2x32xf32>, vector<32x1xf32>, vector<2x1xf32> -> vector<2x1xf32>
    %cst_128 = arith.constant 1.000000e+00 : f32
    %356 = vector.broadcast %cst_128 : f32 to vector<2x1xf32>
    %357 = arith.maximumf %355, %356 : vector<2x1xf32>
    %358 = vector.broadcast %357 : vector<2x1xf32> to vector<2x32xf32>
    %359 = arith.divf %354, %358 : vector<2x32xf32>
    %cst_129 = arith.constant 0.000000e+00 : f32
    %360 = vector.broadcast %cst_129 : f32 to vector<2x32xf32>
    %361 = vector.extract_strided_slice %353 {offsets = [0, 0], sizes = [32, 1], strides = [1, 1]} : vector<32x2xf32> to vector<32x1xf32>
    %cst_130 = arith.constant 0.000000e+00 : f32
    %362 = vector.broadcast %cst_130 : f32 to vector<32x1xf32>
    %363 = arith.cmpf ogt, %361, %362 : vector<32x1xf32>
    %cst_131 = arith.constant -1.000000e+30 : f32
    %364 = vector.shape_cast %363 : vector<32x1xi1> to vector<32x1xi1>
    %365 = vector.broadcast %364 : vector<32x1xi1> to vector<32x32xi1>
    %366 = vector.broadcast %cst_131 : f32 to vector<32x32xf32>
    %367 = arith.select %365, %349, %366 : vector<32x32xi1>, vector<32x32xf32>
    %cst_132 = arith.constant dense<0xFF800000> : vector<32xf32>
    %368 = vector.multi_reduction <maximumf>, %367, %cst_132 [0] : vector<32x32xf32> to vector<32xf32>
    %369 = vector.shape_cast %368 : vector<32xf32> to vector<1x32xf32>
    %c0_i32_133 = arith.constant 0 : i32
    %370 = vector.broadcast %c0_i32_133 : i32 to vector<2x1xi32>
    %371 = arith.cmpi eq, %14, %370 : vector<2x1xi32>
    %372 = vector.shape_cast %371 : vector<2x1xi1> to vector<2x1xi1>
    %373 = vector.broadcast %372 : vector<2x1xi1> to vector<2x32xi1>
    %374 = vector.shape_cast %369 : vector<1x32xf32> to vector<1x32xf32>
    %375 = vector.broadcast %374 : vector<1x32xf32> to vector<2x32xf32>
    %376 = arith.select %373, %375, %360 : vector<2x32xi1>, vector<2x32xf32>
    %377 = vector.extract_strided_slice %353 {offsets = [0, 1], sizes = [32, 1], strides = [1, 1]} : vector<32x2xf32> to vector<32x1xf32>
    %cst_134 = arith.constant 0.000000e+00 : f32
    %378 = vector.broadcast %cst_134 : f32 to vector<32x1xf32>
    %379 = arith.cmpf ogt, %377, %378 : vector<32x1xf32>
    %cst_135 = arith.constant -1.000000e+30 : f32
    %380 = vector.shape_cast %379 : vector<32x1xi1> to vector<32x1xi1>
    %381 = vector.broadcast %380 : vector<32x1xi1> to vector<32x32xi1>
    %382 = vector.broadcast %cst_135 : f32 to vector<32x32xf32>
    %383 = arith.select %381, %349, %382 : vector<32x32xi1>, vector<32x32xf32>
    %cst_136 = arith.constant dense<0xFF800000> : vector<32xf32>
    %384 = vector.multi_reduction <maximumf>, %383, %cst_136 [0] : vector<32x32xf32> to vector<32xf32>
    %385 = vector.shape_cast %384 : vector<32xf32> to vector<1x32xf32>
    %c1_i32_137 = arith.constant 1 : i32
    %386 = vector.broadcast %c1_i32_137 : i32 to vector<2x1xi32>
    %387 = arith.cmpi eq, %14, %386 : vector<2x1xi32>
    %388 = vector.shape_cast %387 : vector<2x1xi1> to vector<2x1xi1>
    %389 = vector.broadcast %388 : vector<2x1xi1> to vector<2x32xi1>
    %390 = vector.shape_cast %385 : vector<1x32xf32> to vector<1x32xf32>
    %391 = vector.broadcast %390 : vector<1x32xf32> to vector<2x32xf32>
    %392 = arith.select %389, %391, %376 : vector<2x32xi1>, vector<2x32xf32>
    %cst_138 = arith.constant 0.000000e+00 : f32
    %393 = vector.broadcast %cst_138 : f32 to vector<2x1xf32>
    %394 = arith.cmpf ogt, %355, %393 : vector<2x1xf32>
    %cst_139 = arith.constant 0.000000e+00 : f32
    %395 = vector.shape_cast %394 : vector<2x1xi1> to vector<2x1xi1>
    %396 = vector.broadcast %395 : vector<2x1xi1> to vector<2x32xi1>
    %397 = vector.broadcast %cst_139 : f32 to vector<2x32xf32>
    %398 = arith.select %396, %392, %397 : vector<2x32xi1>, vector<2x32xf32>
    %399 = arith.addf %273, %398 : vector<2x32xf32>
    %400 = arith.addf %274, %359 : vector<2x32xf32>
    %c104 = arith.constant 104 : index
    %c0_140 = arith.constant 0 : index
    %401 = vector.load %arg5[%c104, %c0_140] : memref<232x32xf32, #tpu.memory_space<vmem>>, vector<32x32xf32>
    %cst_141 = arith.constant dense<0.000000e+00> : vector<2x32xf32>
    %402 = tpu.matmul %399, %401, %cst_141 {dimension_numbers = #tpu.dot_dimension_numbers<[1], [0], [0], [1], [0, 0, 1, 1], [], []>} : vector<2x32xf32>, vector<32x32xf32>, vector<2x32xf32> -> vector<2x32xf32>
    %c136 = arith.constant 136 : index
    %c0_142 = arith.constant 0 : index
    %403 = vector.load %arg5[%c136, %c0_142] : memref<232x32xf32, #tpu.memory_space<vmem>>, vector<32x32xf32>
    %cst_143 = arith.constant dense<0.000000e+00> : vector<2x32xf32>
    %404 = tpu.matmul %400, %403, %cst_143 {dimension_numbers = #tpu.dot_dimension_numbers<[1], [0], [0], [1], [0, 0, 1, 1], [], []>} : vector<2x32xf32>, vector<32x32xf32>, vector<2x32xf32> -> vector<2x32xf32>
    %405 = arith.addf %402, %404 : vector<2x32xf32>
    %c4 = arith.constant 4 : index
    %c0_144 = arith.constant 0 : index
    %406 = vector.load %arg6[%c4, %c0_144] : memref<8x32xf32, #tpu.memory_space<vmem>>, vector<1x32xf32>
    %407 = vector.broadcast %406 : vector<1x32xf32> to vector<2x32xf32>
    %408 = arith.addf %405, %407 : vector<2x32xf32>
    %cst_145 = arith.constant 0.000000e+00 : f32
    %409 = vector.broadcast %cst_145 : f32 to vector<2x32xf32>
    %410 = arith.maximumf %408, %409 : vector<2x32xf32>
    %c168 = arith.constant 168 : index
    %c0_146 = arith.constant 0 : index
    %411 = vector.load %arg5[%c168, %c0_146] : memref<232x32xf32, #tpu.memory_space<vmem>>, vector<32x32xf32>
    %cst_147 = arith.constant dense<0.000000e+00> : vector<2x32xf32>
    %412 = tpu.matmul %410, %411, %cst_147 {dimension_numbers = #tpu.dot_dimension_numbers<[1], [0], [0], [1], [0, 0, 1, 1], [], []>} : vector<2x32xf32>, vector<32x32xf32>, vector<2x32xf32> -> vector<2x32xf32>
    %c5 = arith.constant 5 : index
    %c0_148 = arith.constant 0 : index
    %413 = vector.load %arg6[%c5, %c0_148] : memref<8x32xf32, #tpu.memory_space<vmem>>, vector<1x32xf32>
    %414 = vector.broadcast %413 : vector<1x32xf32> to vector<2x32xf32>
    %415 = arith.addf %412, %414 : vector<2x32xf32>
    %cst_149 = arith.constant 0.000000e+00 : f32
    %416 = vector.broadcast %cst_149 : f32 to vector<2x32xf32>
    %417 = arith.maximumf %415, %416 : vector<2x32xf32>
    %c200 = arith.constant 200 : index
    %c0_150 = arith.constant 0 : index
    %418 = vector.load %arg5[%c200, %c0_150] : memref<232x32xf32, #tpu.memory_space<vmem>>, vector<32x32xf32>
    %cst_151 = arith.constant dense<0.000000e+00> : vector<2x32xf32>
    %419 = tpu.matmul %417, %418, %cst_151 {dimension_numbers = #tpu.dot_dimension_numbers<[1], [0], [0], [1], [0, 0, 1, 1], [], []>} : vector<2x32xf32>, vector<32x32xf32>, vector<2x32xf32> -> vector<2x32xf32>
    %c6 = arith.constant 6 : index
    %c0_152 = arith.constant 0 : index
    %420 = vector.load %arg6[%c6, %c0_152] : memref<8x32xf32, #tpu.memory_space<vmem>>, vector<1x32xf32>
    %421 = vector.broadcast %420 : vector<1x32xf32> to vector<2x32xf32>
    %422 = arith.addf %419, %421 : vector<2x32xf32>
    %423 = vector.extract_strided_slice %422 {offsets = [0, 0], sizes = [2, 4], strides = [1, 1]} : vector<2x32xf32> to vector<2x4xf32>
    %cst_153 = arith.constant dense<0xFF800000> : vector<2xf32>
    %424 = vector.multi_reduction <maximumf>, %423, %cst_153 [1] : vector<2x4xf32> to vector<2xf32>
    %425 = vector.shape_cast %424 : vector<2xf32> to vector<2x1xf32>
    %426 = vector.broadcast %425 : vector<2x1xf32> to vector<2x4xf32>
    %427 = arith.subf %423, %426 : vector<2x4xf32>
    %428 = math.exp %427 : vector<2x4xf32>
    %cst_154 = arith.constant dense<0.000000e+00> : vector<2xf32>
    %429 = vector.multi_reduction <add>, %428, %cst_154 [1] : vector<2x4xf32> to vector<2xf32>
    %430 = vector.shape_cast %429 : vector<2xf32> to vector<2x1xf32>
    %431 = math.log %430 : vector<2x1xf32>
    %432 = arith.addf %425, %431 : vector<2x1xf32>
    %433 = vector.broadcast %432 : vector<2x1xf32> to vector<2x4xf32>
    %434 = arith.subf %423, %433 : vector<2x4xf32>
    %c0_155 = arith.constant 0 : index
    %c0_156 = arith.constant 0 : index
    %c0_157 = arith.constant 0 : index
    %435 = vector.load %arg7[%c0_155, %c0_156, %c0_157] : memref<1x2x4xf32, #tpu.memory_space<vmem>>, vector<1x2x4xf32>
    %436 = vector.shape_cast %435 : vector<1x2x4xf32> to vector<2x4xf32>
    %437 = vector.shape_cast %434 : vector<2x4xf32> to vector<1x2x4xf32>
    tpu.vector_store %arg7[%c0_155, %c0_156, %c0_157], %437 {strides = array<i32>} : memref<1x2x4xf32, #tpu.memory_space<vmem>>, vector<1x2x4xf32>,
    return
  }
  func.func @transform_0(%arg0: i32) -> (i32, i32, i32) {
    %c0_i32 = arith.constant 0 : i32
    %c0_i32_0 = arith.constant 0 : i32
    %c0_i32_1 = arith.constant 0 : i32
    return %arg0, %c0_i32, %c0_i32_0 : i32, i32, i32
  }
  func.func @transform_1(%arg0: i32) -> (i32, i32, i32) {
    %c0_i32 = arith.constant 0 : i32
    %c0_i32_0 = arith.constant 0 : i32
    %c0_i32_1 = arith.constant 0 : i32
    return %arg0, %c0_i32, %c0_i32_0 : i32, i32, i32
  }
  func.func @transform_2(%arg0: i32) -> (i32, i32, i32) {
    %c0_i32 = arith.constant 0 : i32
    %c0_i32_0 = arith.constant 0 : i32
    %c0_i32_1 = arith.constant 0 : i32
    return %arg0, %c0_i32, %c0_i32_0 : i32, i32, i32
  }
  func.func @transform_3(%arg0: i32) -> (i32, i32, i32) {
    %c0_i32 = arith.constant 0 : i32
    %c0_i32_0 = arith.constant 0 : i32
    %c0_i32_1 = arith.constant 0 : i32
    return %arg0, %c0_i32, %c0_i32_0 : i32, i32, i32
  }
  func.func @transform_4(%arg0: i32) -> (i32, i32) {
    %c0_i32 = arith.constant 0 : i32
    %c0_i32_0 = arith.constant 0 : i32
    %c0_i32_1 = arith.constant 0 : i32
    return %c0_i32, %c0_i32_0 : i32, i32
  }
  func.func @transform_5(%arg0: i32) -> (i32, i32) {
    %c0_i32 = arith.constant 0 : i32
    %c0_i32_0 = arith.constant 0 : i32
    %c0_i32_1 = arith.constant 0 : i32
    return %c0_i32, %c0_i32_0 : i32, i32
  }
  func.func @transform_6(%arg0: i32) -> (i32, i32, i32) {
    %c0_i32 = arith.constant 0 : i32
    %c0_i32_0 = arith.constant 0 : i32
    %c0_i32_1 = arith.constant 0 : i32
    return %arg0, %c0_i32, %c0_i32_0 : i32, i32, i32
  }
}

</mosaic_0001>

<bundles_post_ra>
// kernel: sagnet_forward.1
= control target key start
LH: loop header
LB: loop body
LE: loop exit
PB: predicated region body
PF: predicated region fallthrough
CT: control target
= control target key end

     0   :  { %s5815_s21 = smov 0   ;;  %s6886_s0 = inlined_call_operand.vmem [shape: f32[8,32,8], index: 0, kind: input, shape index: {}]   ;;  %s6887_s1 = inlined_call_operand.vmem [shape: f32[8,32,32], index: 1, kind: input, shape index: {}]   ;;  %s6888_s2 = inlined_call_operand.vmem [shape: f32[8,2,32], index: 2, kind: input, shape index: {}]   ;;  %s6889_s3 = inlined_call_operand.vmem [shape: f32[8,32,2], index: 3, kind: input, shape index: {}]   ;;  %s6890_s4 = inlined_call_operand.vmem [shape: f32[232,32], index: 4, kind: input, shape index: {}]   ;;  %s6891_s5 = inlined_call_operand.vmem [shape: f32[8,32], index: 5, kind: input, shape index: {}]   ;;  %s6892_s6 = inlined_call_operand.vmem [shape: f32[8,2,4], index: 6, kind: output, shape index: {}]  }
   0x1 LB: > { %s4768_s22 = sadd.s32 4294967295, %s5770_s21   ;;  %p4772_p0 = scmp.ge.s32.totalorder %s5770_s21, 1  ;;  %s5770_s21 = sphi %s5815_s21, %s16_s21  }
   0x2   : > { %p241_p1 = scmp.lt.s32.totalorder %s5770_s21, 9 }
   0x4   : > { %p242_p2 = pnand %p4772_p0, %p241_p1 }
   0x5   : > { %p284_p3 = scmp.lt.s32.totalorder (!%p242_p2), %s4768_s22, 7  ;;  %s5776_s18 = smov (!%p242_p2), 127  }
   0x6   : > { %245 = sbr.rel (%p242_p2) target bundleno = 6845 (0x1abd), region = 44 }
   0xb   : > { %v316_v0 = vlaneseq  ;;  %v5772_v1 = vmov 1.0   ;;  %s6932_s22 = smov (!%p284_p3, %s4768_s22), 7  ;;  %v5773_v7 = vmov 0.0   ;;  %vm6895_vm1 = vcmask 261120   ;;  %v659_v25 = vld [vmem:[%s6890_s4] sm:$0xff] }
   0xc   : > { %5168 = vmatprep.subr.mxu1 %v5772_v1  ;;  %s5834_s23 = sshll.u32 %s6932_s22, 5  ;;  %s4777_s24 = sshll.u32 %s6932_s22, 1  ;;  %vm348_vm2 = vcmask 1041408   ;;  %vm335_vm6 = vcmask 15360   ;;  %vm6893_vm7 = vmmov 0   ;;  %vm661_vm8 = vcmask 64512  }
   0xd   : > { %5169 = vmatpush3.msra.mxu1 %v5772_v1  ;;  %v5827_v2 = vshrl.u32 %v316_v0, 7  ;;  %v5829_v3 = vand.u32 127, %v316_v0  ;;  %s293_s27 = scalar_lea.vmem %s6887_s1, %s5834_s23  ;;  %s5861_s30 = scalar_lea.vmem %s6888_s2, %s4777_s24  ;;  %v5775_v30 = vmov 0  }
   0xe   : > { %5170 = vmatprep.subr.mxu1 %v5772_v1  ;;  %v307_v9 = vld [vmem:[%s293_s27] sm:$0xff]  ;;  %v308_v10 = vld [vmem:[%s293_s27 + $0x8] sm:$0xff]  ;;  %v309_v11 = vld [vmem:[%s293_s27 + $0x10] sm:$0xff]  ;;  %s5874_s9 = scalar_lea.vmem %s6889_s3, %s5834_s23  ;;  %s288_s12 = scalar_lea.vmem %s6886_s0, %s5834_s23  ;;  %5672 = vset.pattern.permute.xlu0 %v5775_v30 }
   0xf   : > { %5171 = vmatpush3.msra.mxu1 %v5772_v1  ;;  %vm323_vm0 = vcmp.eq.s32.totalorder %v5827_v2, %v5829_v3  ;;  %v5839_v4 = vadd.s32 8, %v5827_v2  ;;  %v5842_v5 = vadd.s32 16, %v5827_v2  ;;  %v5845_v6 = vadd.s32 24, %v5827_v2  ;;  %v310_v15 = vld [vmem:[%s293_s27 + $0x18] sm:$0xff]  ;;  %v5890_v17 = vld [vmem:[%s5861_s30] sm:$0x3]  ;;  %5673 = vset.pattern.permute.xlu1 %v5775_v30 }
  0x10   : > { %5172 = vmatprep.subr.mxu1 %v5772_v1  ;;  %v5854_v8 = vsel %vm323_vm0, 1.0, %v5773_v7  ;;  %5160 = vmatprep.subr.msk.mxu0 %vm348_vm2, %v5890_v17  ;;  %v312_v20 = vld [vmem:[%s5874_s9] sm:$0xff]  ;;  %v313_v21 = vld [vmem:[%s5874_s9 + $0x8] sm:$0xff]  ;;  %v314_v22 = vld [vmem:[%s5874_s9 + $0x10] sm:$0xff]  ;;  %v5952_v54 = vsub.s32 0, %v5827_v2 }
  0x11   : > { %5173 = vmatpush3.msra.mxu1 %v5772_v1  ;;  %vm324_vm3 = vcmp.eq.s32.totalorder %v5839_v4, %v5829_v3  ;;  %vm325_vm4 = vcmp.eq.s32.totalorder %v5842_v5, %v5829_v3  ;;  %vm326_vm5 = vcmp.eq.s32.totalorder %v5845_v6, %v5829_v3  ;;  %v5878_v12 = vadd.f32 %v5854_v8, %v307_v9  ;;  %v315_v24 = vld [vmem:[%s5874_s9 + $0x18] sm:$0xff]  ;;  %v437_v26 = vld [vmem:[%s288_s12] sm:$0xff]  ;;  %v438_v27 = vld [vmem:[%s288_s12 + $0x8] sm:$0xff] }
  0x12   : > { %5174 = vmatprep.subr.mxu1 %v5772_v1  ;;  %v5881_v13 = vsel %vm324_vm3, 1.0, %v5773_v7  ;;  %v5884_v14 = vsel %vm325_vm4, 1.0, %v5773_v7  ;;  %v5887_v16 = vsel %vm326_vm5, 1.0, %v5773_v7  ;;  %5161 = vmatpush3.msk.msra.mxu0 %vm348_vm2, %v5890_v17  ;;  %v439_v28 = vld [vmem:[%s288_s12 + $0x10] sm:$0xff]  ;;  %v440_v29 = vld [vmem:[%s288_s12 + $0x18] sm:$0xff]  ;;  %vm1169_vm14 = vcmp.lt.s32.totalorder %v5845_v6, %v5829_v3 }
  0x13   : > { %5175 = vmatpush3.msra.mxu1 %v5772_v1  ;;  %v5894_v18 = vadd.f32 %v5881_v13, %v308_v10  ;;  %v5897_v19 = vadd.f32 %v5884_v14, %v309_v11  ;;  %5176 = vmatprep.mubr.msk.f32.mxu1 %vm6895_vm1, %v5878_v12  ;;  %v5911_v23 = vadd.f32 %v5887_v16, %v310_v15 }
  0x14   : > { %5162 = vmatprep.mubr.msk.f32.mxu0 %vm335_vm6, %v312_v20  ;;  %5182 = vmatprep.subr.mxu0 %v5773_v7  ;;  %v5967_v20 = vld [vmem:[%s6890_s4 + $0x60] sm:$0xff]  ;;  %vm1168_vm3 = vcmp.lt.s32.totalorder %v5842_v5, %v5829_v3 }
  0x15   : > { %5177 = vmatmul.mubr.msk.f32.vlgmr.msra.gmra.mxu1 %vm6895_vm1, %v5894_v18  ;;  %5163 = vmatmul.mubr.msk.f32.vlgmr.msra.gmra.mxu0 %vm335_vm6, %v313_v21  ;;  %v5974_v21 = vld [vmem:[%s6890_s4 + $0x58] sm:$0xff] }
  0x16   : > { %5179 = vmatprep.mubr.msk.f32.mxu1 %vm6895_vm1, %v5897_v19  ;;  %5165 = vmatprep.mubr.msk.f32.mxu0 %vm335_vm6, %v314_v22  ;;  %v5981_v22 = vld [vmem:[%s6890_s4 + $0x50] sm:$0xff] }
  0x17   : > { %5183 = vmatpush3.msra.mxu0 %v5911_v23 }
  0x18   : > { %5184 = vmatprep.subr.mxu0 %v5773_v7 }
  0x19   : > { %5180 = vmatmul.mubr.msk.f32.gmra.mxu1 %vm6895_vm1, %v5911_v23  ;;  %5185 = vmatpush3.msra.mxu0 %v5897_v19 }
  0x1a   : > { %5166 = vmatmul.mubr.msk.f32.gmra.mxu0 %vm335_vm6, %v315_v24  ;;  %5186 = vmatprep.subr.mxu0 %v5773_v7  ;;  %v5988_v24 = vld [vmem:[%s6890_s4 + $0x48] sm:$0xff] }
  0x1b   : > { %5187 = vmatpush3.msra.mxu0 %v5894_v18  ;;  %5190 = vmatprep.mubr.msk.f32.mxu0 %vm6893_vm7, %v5773_v7 }
  0x1c   : > { %5188 = vmatprep.subr.mxu0 %v5773_v7 }
  0x1d   : > { %5189 = vmatpush3.msra.mxu0 %v5878_v12 }
  0x1e   : > { %5191 = vmatmul.mubr.msk.f32.vlgmr.msra.gmra.mxu0 %vm6895_vm1, %v5772_v1  ;;  %5193 = vmatprep.subr.mxu0 %v659_v25 }
  0x1f   : > { %5194 = vmatpush3.msra.mxu0 %v659_v25  ;;  %5195 = vmatprep.mubr.msk.f32.mxu0 %vm661_vm8, %v437_v26  ;;  %v4795_v25 = vld [vmem:[%s6891_s5] ss:$0 sm:$0xff] }
  0x20   : > { %5215 = vmatprep.subr.mxu0 %v5967_v20 }
  0x22   : > { %5196 = vmatmul.mubr.msk.f32.vlgmr.msra.gmra.mxu0 %vm661_vm8, %v438_v27 }
  0x23   : > { %5198 = vmatprep.mubr.msk.f32.mxu0 %vm661_vm8, %v439_v28  ;;  %5216 = vmatpush3.msra.mxu0 %v5967_v20 }
  0x24   : > { %5217 = vmatprep.subr.mxu0 %v5974_v21 }
  0x25   : > { %5218 = vmatpush3.msra.mxu0 %v5974_v21 }
  0x26   : > { %5199 = vmatmul.mubr.msk.f32.gmra.mxu0 %vm661_vm8, %v440_v29  ;;  %5219 = vmatprep.subr.mxu0 %v5981_v22 }
  0x27   : > { %5220 = vmatpush3.msra.mxu0 %v5981_v22 }
  0x28   : > { %5221 = vmatprep.subr.mxu0 %v5988_v24 }
  0x29   : > { %5222 = vmatpush3.msra.mxu0 %v5988_v24 }
  0x2a   : > { %5243 = vmatprep.subr.mxu0 %v5773_v7 }
  0xd5   : > { %v5178_v31 = vpop.f32.mrf.mxu1  ;;  %v5943_v32 = vpop.f32.mrf.mxu0 }
  0xd6   : > { %vm613_vm10 = vcmp.gt.f32.partialorder %v5178_v31, 0.0 }
  0xd7   : > { %v520_v33 = vpop.f32.mrf.mxu1  ;;  %v5945_v34 = vpop.f32.mrf.mxu0 }
  0xd8   : > { %5690 = vrsqrt.f32 %v520_v33  ;;  %vm612_vm9 = vcmp.gt.f32.partialorder %v520_v33, 0.0 }
  0xd9   : > { %v5181_v35 = vpop.f32.mrf.mxu1  ;;  %5692 = vrsqrt.f32 %v5178_v31 }
  0xda   : > { %v5947_v37 = vpop.f32.mrf.mxu0  ;;  %vm615_vm12 = vcmp.gt.f32.partialorder %v5181_v35, 0.0 }
  0xdb   : > { %v530_v36 = vpop.f32.mrf.mxu1 }
  0xdc   : > { %5694 = vrsqrt.f32 %v530_v36  ;;  %v5949_v38 = vpop.f32.mrf.mxu0  ;;  %vm614_vm11 = vcmp.gt.f32.partialorder %v530_v36, 0.0 }
  0xdd   : > { %5696 = vrsqrt.f32 %v5181_v35 }
  0xde   : > { %v608_v39 = vpop.f32.mrf.mxu0 }
  0xdf   : > { %5698 = vrsqrt.f32 %v608_v39  ;;  %vm624_vm13 = vcmp.gt.f32.partialorder %v608_v39, 0.0 }
  0xe0   : > { %v5192_v40 = vpop.f32.mrf.mxu0 }
  0xe2   : > { %v5197_v41 = vpop.f32.mrf.mxu0 }
  0xe4   : > { %v740_v43 = vpop.f32.mrf.mxu0 }
  0xe5   : > { %v5691_v42 = vpop.eup %5690 }
  0xe6   : > { %v620_v44 = vsel %vm612_vm9, %v5691_v42, 0.0  ;;  %v5693_v45 = vpop.eup %5692  ;;  %v5200_v46 = vpop.f32.mrf.mxu0  ;;  %vm1167_vm9 = vcmp.lt.s32.totalorder %v5839_v4, %v5829_v3 }
  0xe7   : > { %629 = vperm.xlu0 %5672, %v620_v44   ;;  %5201 = vmatprep.subr.mxu1 %v5200_v46  ;;  %v621_v49 = vsel %vm613_vm10, %v5693_v45, 0.0 }
  0xe8   : > { %v750_v48 = vpop.f32.mrf.mxu0  ;;  %5202 = vmatpush3.msra.mxu1 %v5200_v46 }
  0xe9   : > { %v5695_v47 = vpop.eup %5694  ;;  %5203 = vmatprep.subr.mxu1 %v750_v48 }
  0xea   : > { %v622_v50 = vsel %vm614_vm11, %v5695_v47, 0.0  ;;  %v5697_v51 = vpop.eup %5696  ;;  %5204 = vmatpush3.msra.mxu1 %v750_v48  ;;  %v6031_v47 = vld [vmem:[%s6891_s5 + $0x3] ss:$0 sm:$0xff] }
  0xeb   : > { %634 = vperm.xlu0 %5672, %v621_v49   ;;  %639 = vperm.xlu1 %5673, %v622_v50   ;;  %v623_v52 = vsel %vm615_vm12, %v5697_v51, 0.0 }
  0xec   : > { %5205 = vmatprep.subr.mxu1 %v5197_v41  ;;  %v5699_v53 = vpop.eup %5698 }
  0xed   : > { %5206 = vmatpush3.msra.mxu1 %v5197_v41  ;;  %v626_v55 = vsel %vm624_vm13, %v5699_v53, 0.0 }
  0xee   : > { %5207 = vmatprep.subr.mxu1 %v740_v43  ;;  %v654_v57 = vrot.slane %v626_v55, %v5952_v54 }
  0xef   : > { %644 = vperm.xlu1 %5673, %v623_v52   ;;  %5208 = vmatpush3.msra.mxu1 %v740_v43 }
 0x162   : > { %v630_v56 = vpop.permute.xlu0 %629 }
 0x163   : > { %v647_v58 = vmul.f32 %v630_v56, %v5878_v12 }
 0x165   : > { %v655_v59 = vmul.f32 %v654_v57, %v647_v58 }
 0x166   : > { %v635_v60 = vpop.permute.xlu0 %634  ;;  %v640_v61 = vpop.permute.xlu1 %639 }
 0x167   : > { %v648_v62 = vmul.f32 %v635_v60, %v5894_v18  ;;  %v649_v63 = vmul.f32 %v640_v61, %v5897_v19  ;;  %5209 = vmatprep.mubr.msk.f32.mxu1 %vm6895_vm1, %v655_v59 }
 0x169   : > { %v656_v0 = vmul.f32 %v654_v57, %v648_v62  ;;  %v657_v9 = vmul.f32 %v654_v57, %v649_v63 }
 0x16a   : > { %v645_v10 = vpop.permute.xlu1 %644 }
 0x16b   : > { %v650_v11 = vmul.f32 %v645_v10, %v5911_v23  ;;  %5210 = vmatmul.mubr.msk.f32.vlgmr.msra.gmra.mxu1 %vm6895_vm1, %v656_v0 }
 0x16c   : > { %5212 = vmatprep.mubr.msk.f32.mxu1 %vm6895_vm1, %v657_v9 }
 0x16d   : > { %v658_v15 = vmul.f32 %v654_v57, %v650_v11 }
 0x16f   : > { %5213 = vmatmul.mubr.msk.f32.gmra.mxu1 %vm6895_vm1, %v658_v15 }
 0x170   : > { %5237 = vmatprep.mubr.msk.f32.mxu1 %vm6895_vm1, %v655_v59 }
 0x22b   : > { %v5211_v26 = vpop.f32.mrf.mxu1 }
 0x22c   : > { %v5996_v27 = vadd.f32 %v5211_v26, %v4795_v25 }
 0x22d   : > { %v841_v28 = vpop.f32.mrf.mxu1 }
 0x22e   : > { %v5998_v29 = vadd.f32 %v4795_v25, %v841_v28  ;;  %v861_v35 = vmax.f32 %v5996_v27, 0.0  ;;  %v1951_v27 = vld [vmem:[%s6890_s4 + $0x20] sm:$0xff] }
 0x22f   : > { %v5214_v31 = vpop.f32.mrf.mxu1 }
 0x230   : > { %v860_v33 = vmax.f32 %v5998_v29, 0.0  ;;  %v6002_v36 = vadd.f32 %v5214_v31, %v4795_v25  ;;  %v1950_v29 = vld [vmem:[%s6890_s4 + $0x18] sm:$0xff] }
 0x231   : > { %v851_v39 = vpop.f32.mrf.mxu1 }
 0x232   : > { %v6004_v40 = vadd.f32 %v4795_v25, %v851_v39  ;;  %5223 = vmatprep.mubr.msk.f32.mxu0 %vm6895_vm1, %v860_v33  ;;  %v863_v42 = vmax.f32 %v6002_v36, 0.0 }
 0x233   : > { %5224 = vmatmul.mubr.msk.f32.vlgmr.msra.gmra.mxu0 %vm6895_vm1, %v861_v35 }
 0x234   : > { %v862_v41 = vmax.f32 %v6004_v40, 0.0 }
 0x236   : > { %5226 = vmatprep.mubr.msk.f32.mxu0 %vm6895_vm1, %v862_v41 }
 0x237   : > { %5227 = vmatmul.mubr.msk.f32.gmra.mxu0 %vm6895_vm1, %v863_v42 }
 0x238   : > { %5251 = vmatprep.mubr.msk.f32.mxu0 %vm6893_vm7, %v5773_v7 }
 0x2f3   : > { %v5225_v43 = vpop.f32.mrf.mxu0 }
 0x2f5   : > { %v947_v44 = vpop.f32.mrf.mxu0 }
 0x2f7   : > { %v5228_v45 = vpop.f32.mrf.mxu0 }
 0x2f8   : > { %5229 = vmatprep.subr.mxu1 %v5228_v45 }
 0x2f9   : > { %v957_v46 = vpop.f32.mrf.mxu0  ;;  %5230 = vmatpush3.msra.mxu1 %v5228_v45 }
 0x2fa   : > { %5231 = vmatprep.subr.mxu1 %v957_v46 }
 0x2fb   : > { %5232 = vmatpush3.msra.mxu1 %v957_v46 }
 0x2fc   : > { %5233 = vmatprep.subr.mxu1 %v5225_v43 }
 0x2fd   : > { %5234 = vmatpush3.msra.mxu1 %v5225_v43 }
 0x2fe   : > { %5235 = vmatprep.subr.mxu1 %v947_v44 }
 0x2ff   : > { %5236 = vmatpush3.msra.mxu1 %v947_v44 }
 0x300   : > { %5238 = vmatmul.mubr.msk.f32.vlgmr.msra.gmra.mxu1 %vm6895_vm1, %v656_v0  ;;  %5254 = vmatprep.subr.mxu1 %v5773_v7 }
 0x301   : > { %5240 = vmatprep.mubr.msk.f32.mxu1 %vm6895_vm1, %v657_v9 }
 0x304   : > { %5241 = vmatmul.mubr.msk.f32.gmra.mxu1 %vm6895_vm1, %v658_v15 }
 0x305   : > { %5262 = vmatprep.mubr.msk.f32.mxu1 %vm6893_vm7, %v5773_v7 }
 0x3c0   : > { %v5239_v48 = vpop.f32.mrf.mxu1 }
 0x3c1   : > { %v1042_v49 = vadd.f32 %v5239_v48, %v6031_v47 }
 0x3c2   : > { %v1036_v50 = vpop.f32.mrf.mxu1 }
 0x3c3   : > { %5700 = vtanh.f32 %v1042_v49  ;;  %v1037_v56 = vadd.f32 %v6031_v47, %v1036_v50 }
 0x3c4   : > { %v5242_v51 = vpop.f32.mrf.mxu1 }
 0x3c5   : > { %v1052_v52 = vadd.f32 %v5242_v51, %v6031_v47 }
 0x3c6   : > { %v1046_v53 = vpop.f32.mrf.mxu1 }
 0x3c7   : > { %5702 = vtanh.f32 %v1052_v52  ;;  %v1047_v55 = vadd.f32 %v6031_v47, %v1046_v53  ;;  %1077 = vperm.xlu0 %5672, %v1052_v52  }
 0x3c9   : > { %5704 = vtanh.f32 %v1047_v55  ;;  %1072 = vperm.xlu1 %5673, %v1047_v55  }
 0x3ca   : > { %5706 = vtanh.f32 %v1037_v56 }
 0x3cb   : > { %1067 = vperm.xlu0 %5672, %v1042_v49  }
 0x3cd   : > { %1062 = vperm.xlu1 %5673, %v1037_v56  }
 0x3d0   : > { %v5701_v57 = vpop.eup %5700 }
 0x3d1   : > { %1450 = vperm.xlu1 %5673, %v5701_v57  }
 0x3d4   : > { %v5703_v58 = vpop.eup %5702 }
 0x3d5   : > { %1460 = vperm.xlu0 %5672, %v5703_v58  }
 0x3d6   : > { %v5705_v59 = vpop.eup %5704 }
 0x3d7   : > { %1455 = vperm.xlu1 %5673, %v5705_v59   ;;  %v5707_v60 = vpop.eup %5706 }
 0x3db   : > { %1445 = vperm.xlu1 %5673, %v5707_v60  }
 0x442   : > { %v1078_v61 = vpop.permute.xlu0 %1077 }
 0x443   : > { %v1083_v62 = vmul.f32 %v1078_v61, %v5887_v16 }
 0x444   : > { %v1073_v63 = vpop.permute.xlu1 %1072 }
 0x445   : > { %v1082_v0 = vmul.f32 %v1073_v63, %v5884_v14  ;;  %5244 = vmatpush3.msra.mxu0 %v1083_v62 }
 0x446   : > { %5245 = vmatprep.subr.mxu0 %v5773_v7  ;;  %v1068_v9 = vpop.permute.xlu0 %1067 }
 0x447   : > { %v1081_v10 = vmul.f32 %v1068_v9, %v5881_v13  ;;  %5246 = vmatpush3.msra.mxu0 %v1082_v0 }
 0x448   : > { %5247 = vmatprep.subr.mxu0 %v5773_v7  ;;  %v1063_v11 = vpop.permute.xlu1 %1062 }
 0x449   : > { %v1080_v15 = vmul.f32 %v1063_v11, %v5854_v8  ;;  %5248 = vmatpush3.msra.mxu0 %v1081_v10 }
 0x44a   : > { %5249 = vmatprep.subr.mxu0 %v5773_v7 }
 0x44b   : > { %5250 = vmatpush3.msra.mxu0 %v1080_v15 }
 0x44c   : > { %5252 = vmatmul.mubr.msk.f32.vlgmr.msra.gmra.mxu0 %vm6895_vm1, %v5772_v1  ;;  %5265 = vmatprep.subr.mxu0 %v5773_v7 }
 0x44d   : > { %5266 = vmatpush3.msra.mxu0 %v5947_v37  ;;  %5273 = vmatprep.mubr.msk.f32.mxu0 %vm6893_vm7, %v5773_v7 }
 0x44e   : > { %5267 = vmatprep.subr.mxu0 %v5773_v7 }
 0x44f   : > { %5268 = vmatpush3.msra.mxu0 %v5949_v38 }
 0x450   : > { %5269 = vmatprep.subr.mxu0 %v5773_v7 }
 0x451   : > { %5270 = vmatpush3.msra.mxu0 %v5943_v32 }
 0x452   : > { %5271 = vmatprep.subr.mxu0 %v5773_v7 }
 0x453   : > { %5272 = vmatpush3.msra.mxu0 %v5945_v34 }
 0x454   : > { %5274 = vmatmul.mubr.msk.f32.vlgmr.msra.gmra.mxu0 %vm6895_vm1, %v5772_v1  ;;  %5290 = vmatprep.subr.mxu0 %v5773_v7 }
 0x455   : > { %5298 = vmatprep.mubr.msk.f32.mxu0 %vm6893_vm7, %v5773_v7 }
 0x50c   : > { %v1150_v25 = vpop.f32.mrf.mxu0 }
 0x50d   : > { %v1157_v26 = vrot.slane %v1150_v25, %v5952_v54 }
 0x50e   : > { %v5253_v28 = vpop.f32.mrf.mxu0 }
 0x50f   : > { %vm1161_vm15 = vcmp.gt.f32.partialorder %v1078_v61, %v1157_v26  ;;  %vm1165_vm0 = vcmp.eq.f32.partialorder %v1078_v61, %v1157_v26  ;;  %vm1164_vm2 = vcmp.eq.f32.partialorder %v1073_v63, %v1157_v26  ;;  %vm1160_vm5 = vcmp.gt.f32.partialorder %v1073_v63, %v1157_v26  ;;  %v1461_v28 = vpop.permute.xlu0 %1460 }
 0x510   : > { %vm1173_vm4 = vmand %vm1165_vm0, %vm1169_vm14  ;;  %vm1163_vm8 = vcmp.eq.f32.partialorder %v1068_v9, %v1157_v26  ;;  %vm1159_vm11 = vcmp.gt.f32.partialorder %v1068_v9, %v1157_v26  ;;  %vm1162_vm13 = vcmp.eq.f32.partialorder %v1063_v11, %v1157_v26  ;;  %vm1166_vm0 = vcmp.lt.s32.totalorder %v5827_v2, %v5829_v3 }
 0x511   : > { %vm1177_vm6 = vmor %vm1161_vm15, %vm1173_vm4  ;;  %vm1158_vm4 = vcmp.gt.f32.partialorder %v1063_v11, %v1157_v26  ;;  %v1451_v26 = vpop.permute.xlu1 %1450 }
 0x512   : > { %v4813_v31 = vsel %vm1177_vm6, 1.0, %v5773_v7  ;;  %vm1172_vm10 = vmand %vm1164_vm2, %vm1168_vm3  ;;  %v1464_v36 = vmul.f32 %v1451_v26, %v861_v35  ;;  %v1948_v35 = vld [vmem:[%s6890_s4 + $0x8] sm:$0xff] }
 0x513   : > { %v1189_v39 = vmul.f32 %v5947_v37, %v4813_v31  ;;  %vm1176_vm12 = vmor %vm1160_vm5, %vm1172_vm10 }
 0x514   : > { %v4812_v43 = vsel %vm1176_vm12, 1.0, %v5773_v7  ;;  %vm1171_vm15 = vmand %vm1163_vm8, %vm1167_vm9  ;;  %v1326_v44 = vpop.f32.mrf.mxu0 }
 0x515   : > { %5255 = vmatpush3.msra.mxu1 %v1189_v39  ;;  %v1188_v45 = vmul.f32 %v4812_v43, %v5949_v38  ;;  %vm1175_vm2 = vmor %vm1159_vm11, %vm1171_vm15  ;;  %v1330_v52 = vmul.f32 0.5, %v1326_v44  ;;  %v1456_v31 = vpop.permute.xlu1 %1455  ;;  %v1466_v39 = vmul.f32 %v1461_v28, %v863_v42 }
 0x516   : > { %5256 = vmatprep.subr.mxu1 %v5773_v7  ;;  %v4811_v46 = vsel %vm1175_vm2, 1.0, %v5773_v7  ;;  %vm1170_vm5 = vmand %vm1162_vm13, %vm1166_vm0  ;;  %v5275_v48 = vpop.f32.mrf.mxu0 }
 0x517   : > { %5257 = vmatpush3.msra.mxu1 %v1188_v45  ;;  %v1187_v49 = vmul.f32 %v5943_v32, %v4811_v46  ;;  %vm1174_vm6 = vmor %vm1158_vm4, %vm1170_vm5  ;;  %v1465_v45 = vmul.f32 %v1456_v31, %v862_v41 }
 0x518   : > { %5258 = vmatprep.subr.mxu1 %v5773_v7  ;;  %v4810_v50 = vsel %vm1174_vm6, 1.0, %v5773_v7 }
 0x519   : > { %5259 = vmatpush3.msra.mxu1 %v1187_v49  ;;  %v1186_v51 = vmul.f32 %v4810_v50, %v5945_v34  ;;  %v1446_v46 = vpop.permute.xlu1 %1445 }
 0x51a   : > { %5260 = vmatprep.subr.mxu1 %v5773_v7  ;;  %v1463_v40 = vmul.f32 %v1446_v46, %v860_v33  ;;  %v1949_v33 = vld [vmem:[%s6890_s4 + $0x10] sm:$0xff] }
 0x51b   : > { %5261 = vmatpush3.msra.mxu1 %v1186_v51 }
 0x51c   : > { %5263 = vmatmul.mubr.msk.f32.vlgmr.msra.gmra.mxu1 %vm6895_vm1, %v5772_v1  ;;  %5276 = vmatprep.subr.mxu1 %v5772_v1 }
 0x51d   : > { %5277 = vmatpush3.msra.mxu1 %v5772_v1 }
 0x51e   : > { %5278 = vmatprep.subr.mxu1 %v5772_v1 }
 0x51f   : > { %5279 = vmatpush3.msra.mxu1 %v5772_v1 }
 0x520   : > { %5280 = vmatprep.subr.mxu1 %v5772_v1 }
 0x521   : > { %5281 = vmatpush3.msra.mxu1 %v5772_v1 }
 0x522   : > { %5282 = vmatprep.subr.mxu1 %v5772_v1 }
 0x523   : > { %5283 = vmatpush3.msra.mxu1 %v5772_v1 }
 0x524   : > { %5301 = vmatprep.subr.mxu1 %v5773_v7 }
 0x5dc   : > { %v1256_v53 = vpop.f32.mrf.mxu1 }
 0x5dd   : > { %vm1331_vm8 = vcmp.lt.f32.partialorder %v1256_v53, %v1330_v52 }
 0x5de   : > { %v6105_v55 = vsel %vm1331_vm8, 1.0, %v5773_v7  ;;  %v5264_v56 = vpop.f32.mrf.mxu1 }
 0x5df   : > { %v1337_v57 = vrot.slane %v6105_v55, %v5952_v54 }
 0x5e1   : > { %v1338_v58 = vmul.f32 %v1337_v57, %v5854_v8  ;;  %v1339_v59 = vmul.f32 %v1337_v57, %v5881_v13  ;;  %v1340_v60 = vmul.f32 %v1337_v57, %v5884_v14  ;;  %v1341_v61 = vmul.f32 %v1337_v57, %v5887_v16 }
 0x5e2   : > { %v1491_v62 = vmul.f32 %v1337_v57, %v5890_v17 }
 0x5e3   : > { %5284 = vmatprep.mubr.msk.f32.mxu1 %vm6895_vm1, %v1338_v58 }
 0x5e4   : > { %5285 = vmatmul.mubr.msk.f32.vlgmr.msra.gmra.mxu1 %vm6895_vm1, %v1339_v59 }
 0x5e5   : > { %5302 = vmatpush3.msra.mxu1 %v5772_v1  ;;  %5287 = vmatprep.mubr.msk.f32.mxu1 %vm6895_vm1, %v1340_v60 }
 0x5e6   : > { %5303 = vmatprep.subr.mxu1 %v5773_v7 }
 0x5e7   : > { %5304 = vmatpush3.msra.mxu1 %v5772_v1 }
 0x5e8   : > { %5305 = vmatprep.subr.mxu1 %v5773_v7  ;;  %5288 = vmatmul.mubr.msk.f32.gmra.mxu1 %vm6895_vm1, %v1341_v61 }
 0x5e9   : > { %5306 = vmatpush3.msra.mxu1 %v5772_v1  ;;  %5309 = vmatprep.mubr.msk.f32.mxu1 %vm6893_vm7, %v5773_v7 }
 0x5ea   : > { %5307 = vmatprep.subr.mxu1 %v5773_v7 }
 0x5eb   : > { %5308 = vmatpush3.msra.mxu1 %v5772_v1 }
 0x5ec   : > { %5326 = vmatprep.subr.mxu1 %v5773_v7  ;;  %5310 = vmatmul.mubr.msk.f32.vlgmr.msra.gmra.mxu1 %vm6895_vm1, %v1491_v62 }
 0x5ed   : > { %5327 = vmatpush3.msra.mxu1 %v5911_v23  ;;  %5334 = vmatprep.mubr.msk.f32.mxu1 %vm6893_vm7, %v5773_v7 }
 0x5ee   : > { %5328 = vmatprep.subr.mxu1 %v5773_v7 }
 0x5ef   : > { %5329 = vmatpush3.msra.mxu1 %v5897_v19 }
 0x5f0   : > { %5330 = vmatprep.subr.mxu1 %v5773_v7 }
 0x5f1   : > { %5331 = vmatpush3.msra.mxu1 %v5894_v18 }
 0x5f2   : > { %5332 = vmatprep.subr.mxu1 %v5773_v7 }
 0x5f3   : > { %5333 = vmatpush3.msra.mxu1 %v5878_v12 }
 0x5f4   : > { %5335 = vmatmul.mubr.msk.f32.vlgmr.msra.gmra.mxu1 %vm6895_vm1, %v6105_v55 }
 0x6a4   : > { %v6140_v17 = vpop.f32.mrf.mxu1 }
 0x6a5   : > { %vm2342_vm5 = vcmp.gt.f32.partialorder %v6140_v17, 0.0 }
 0x6a6   : > { %v6142_v63 = vpop.f32.mrf.mxu1 }
 0x6a7   : > { %1469 = vperm.xlu1 %5673, %v6142_v63   ;;  %vm2341_vm6 = vcmp.gt.f32.partialorder %v6142_v63, 0.0 }
 0x6a8   : > { %v6145_v0 = vpop.f32.mrf.mxu1 }
 0x6a9   : > { %1484 = vperm.xlu0 %5672, %v6145_v0   ;;  %vm2344_vm4 = vcmp.gt.f32.partialorder %v6145_v0, 0.0 }
 0x6aa   : > { %v6148_v9 = vpop.f32.mrf.mxu1 }
 0x6ab   : > { %vm2343_vm2 = vcmp.gt.f32.partialorder %v6148_v9, 0.0 }
 0x6ac   : > { %v6150_v10 = vpop.f32.mrf.mxu1 }
 0x6ad   : > { %1479 = vperm.xlu0 %5672, %v6148_v9  }
 0x6ae   : > { %v5311_v11 = vpop.f32.mrf.mxu1 }
 0x6b1   : > { %1474 = vperm.xlu0 %5672, %v6140_v17  }
 0x6b4   : > { %v6154_v15 = vpop.f32.mrf.mxu1 }
 0x6b6   : > { %v5336_v25 = vpop.f32.mrf.mxu1 }
 0x722   : > { %v6175_v42 = vpop.permute.xlu1 %1469 }
 0x723   : > { %v6186_v51 = vmul.f32 %v6175_v42, %v1463_v40  ;;  %v1900_v40 = vmul.f32 %v6154_v15, %v6105_v55 }
 0x724   : > { %v6158_v43 = vpop.permute.xlu0 %1484 }
 0x725   : > { %v6161_v44 = vmul.f32 %v6158_v43, %v1466_v39  ;;  %vm1913_vm15 = vcmp.gt.f32.partialorder %v1900_v40, 0.0 }
 0x727   : > { %5291 = vmatpush3.msra.mxu0 %v6161_v44 }
 0x728   : > { %v6166_v48 = vpop.permute.xlu0 %1479  ;;  %5292 = vmatprep.subr.mxu0 %v5773_v7 }
 0x729   : > { %v6170_v49 = vmul.f32 %v6166_v48, %v1465_v45 }
 0x72b   : > { %5293 = vmatpush3.msra.mxu0 %v6170_v49 }
 0x72c   : > { %v6177_v50 = vpop.permute.xlu0 %1474  ;;  %5294 = vmatprep.subr.mxu0 %v5773_v7 }
 0x72d   : > { %v6183_v41 = vmul.f32 %v6177_v50, %v1464_v36 }
 0x72f   : > { %5295 = vmatpush3.msra.mxu0 %v6183_v41 }
 0x730   : > { %5296 = vmatprep.subr.mxu0 %v5773_v7 }
 0x731   : > { %5297 = vmatpush3.msra.mxu0 %v6186_v51 }
 0x732   : > { %5299 = vmatmul.mubr.msk.f32.vlgmr.msra.gmra.mxu0 %vm6895_vm1, %v1491_v62  ;;  %5312 = vmatprep.subr.mxu0 %v6145_v0 }
 0x733   : > { %5313 = vmatpush3.msra.mxu0 %v6145_v0  ;;  %5320 = vmatprep.mubr.msk.f32.mxu0 %vm6895_vm1, %v5878_v12 }
 0x734   : > { %5314 = vmatprep.subr.mxu0 %v6148_v9 }
 0x735   : > { %5315 = vmatpush3.msra.mxu0 %v6148_v9 }
 0x736   : > { %5316 = vmatprep.subr.mxu0 %v6140_v17 }
 0x737   : > { %5317 = vmatpush3.msra.mxu0 %v6140_v17 }
 0x738   : > { %5318 = vmatprep.subr.mxu0 %v6142_v63 }
 0x739   : > { %5319 = vmatpush3.msra.mxu0 %v6142_v63 }
 0x73a   : > { %5321 = vmatmul.mubr.msk.f32.vlgmr.msra.gmra.mxu0 %vm6895_vm1, %v5894_v18  ;;  %5337 = vmatprep.subr.mxu0 %v1951_v27 }
 0x73b   : > { %5338 = vmatpush3.msra.mxu0 %v1951_v27  ;;  %5323 = vmatprep.mubr.msk.f32.mxu0 %vm6895_vm1, %v5897_v19 }
 0x73c   : > { %5339 = vmatprep.subr.mxu0 %v1950_v29 }
 0x73d   : > { %5340 = vmatpush3.msra.mxu0 %v1950_v29 }
 0x73e   : > { %5324 = vmatmul.mubr.msk.f32.gmra.mxu0 %vm6895_vm1, %v5911_v23  ;;  %5341 = vmatprep.subr.mxu0 %v1949_v33 }
 0x73f   : > { %5342 = vmatpush3.msra.mxu0 %v1949_v33  ;;  %5345 = vmatprep.mubr.msk.f32.mxu0 %vm6895_vm1, %v6186_v51 }
 0x740   : > { %5343 = vmatprep.subr.mxu0 %v1948_v35 }
 0x741   : > { %5344 = vmatpush3.msra.mxu0 %v1948_v35 }
 0x742   : > { %5346 = vmatmul.mubr.msk.f32.vlgmr.msra.gmra.mxu0 %vm6895_vm1, %v6183_v41  ;;  %5365 = vmatprep.subr.mxu0 %v5967_v20 }
 0x743   : > { %5348 = vmatprep.mubr.msk.f32.mxu0 %vm6895_vm1, %v6170_v49  ;;  %5366 = vmatpush3.msra.mxu0 %v5967_v20 }
 0x744   : > { %5367 = vmatprep.subr.mxu0 %v5974_v21 }
 0x745   : > { %5368 = vmatpush3.msra.mxu0 %v5974_v21 }
 0x746   : > { %5349 = vmatmul.mubr.msk.f32.gmra.mxu0 %vm6895_vm1, %v6161_v44  ;;  %5369 = vmatprep.subr.mxu0 %v5981_v22 }
 0x747   : > { %5370 = vmatpush3.msra.mxu0 %v5981_v22 }
 0x748   : > { %5371 = vmatprep.subr.mxu0 %v5988_v24 }
 0x749   : > { %5372 = vmatpush3.msra.mxu0 %v5988_v24 }
 0x74a   : > { %5393 = vmatprep.subr.mxu0 %v5773_v7 }
 0x7f2   : > { %v6237_v52 = vpop.f32.mrf.mxu0 }
 0x7f4   : > { %v5300_v20 = vpop.f32.mrf.mxu0 }
 0x7fa   : > { %v5322_v53 = vpop.f32.mrf.mxu0 }
 0x7fb   : > { %v1824_v56 = vmul.f32 %v5322_v53, %v6140_v17 }
 0x7fc   : > { %v1804_v21 = vpop.f32.mrf.mxu0 }
 0x7fd   : > { %5708 = vrsqrt.f32 %v1824_v56  ;;  %v1823_v57 = vmul.f32 %v1804_v21, %v6142_v63  ;;  %vm1902_vm10 = vcmp.gt.f32.partialorder %v1824_v56, 0.0 }
 0x7fe   : > { %v5325_v58 = vpop.f32.mrf.mxu0 }
 0x7ff   : > { %5710 = vrsqrt.f32 %v1823_v57  ;;  %v1826_v22 = vmul.f32 %v5325_v58, %v6145_v0  ;;  %vm1901_vm11 = vcmp.gt.f32.partialorder %v1823_v57, 0.0 }
 0x800   : > { %v1814_v59 = vpop.f32.mrf.mxu0 }
 0x801   : > { %5712 = vrsqrt.f32 %v1826_v22  ;;  %v1825_v24 = vmul.f32 %v1814_v59, %v6148_v9  ;;  %vm1904_vm12 = vcmp.gt.f32.partialorder %v1826_v22, 0.0 }
 0x802   : > { %v5347_v60 = vpop.f32.mrf.mxu0 }
 0x803   : > { %5714 = vrsqrt.f32 %v1825_v24  ;;  %vm1903_vm13 = vcmp.gt.f32.partialorder %v1825_v24, 0.0 }
 0x804   : > { %v2031_v61 = vpop.f32.mrf.mxu0  ;;  %5716 = vrsqrt.f32 %v1900_v40 }
 0x806   : > { %v5350_v62 = vpop.f32.mrf.mxu0 }
 0x807   : > { %5351 = vmatprep.subr.mxu1 %v5350_v62 }
 0x808   : > { %v2041_v11 = vpop.f32.mrf.mxu0  ;;  %5352 = vmatpush3.msra.mxu1 %v5350_v62 }
 0x809   : > { %5353 = vmatprep.subr.mxu1 %v2041_v11 }
 0x80a   : > { %v5709_v25 = vpop.eup %5708  ;;  %5354 = vmatpush3.msra.mxu1 %v2041_v11 }
 0x80b   : > { %5355 = vmatprep.subr.mxu1 %v5347_v60  ;;  %v1910_v26 = vsel %vm1902_vm10, %v5709_v25, 0.0 }
 0x80c   : > { %v5711_v28 = vpop.eup %5710  ;;  %1923 = vperm.xlu1 %5673, %v1910_v26   ;;  %5356 = vmatpush3.msra.mxu1 %v5347_v60 }
 0x80d   : > { %5357 = vmatprep.subr.mxu1 %v2031_v61  ;;  %v1909_v31 = vsel %vm1901_vm11, %v5711_v28, 0.0 }
 0x80e   : > { %v5713_v39 = vpop.eup %5712  ;;  %1918 = vperm.xlu0 %5672, %v1909_v31   ;;  %5358 = vmatpush3.msra.mxu1 %v2031_v61  ;;  %v4831_v61 = vld [vmem:[%s6891_s5 + $0x1] ss:$0 sm:$0xff] }
 0x80f   : > { %v1912_v45 = vsel %vm1904_vm12, %v5713_v39, 0.0 }
 0x810   : > { %v5715_v46 = vpop.eup %5714  ;;  %1933 = vperm.xlu1 %5673, %v1912_v45  }
 0x811   : > { %v1911_v36 = vsel %vm1903_vm13, %v5715_v46, 0.0  ;;  %v5717_v27 = vpop.eup %5716 }
 0x812   : > { %1928 = vperm.xlu0 %5672, %v1911_v36   ;;  %v1915_v29 = vsel %vm1913_vm15, %v5717_v27, 0.0 }
 0x813   : > { %v1943_v53 = vrot.slane %v1915_v29, %v5952_v54 }
 0x887   : > { %v1924_v33 = vpop.permute.xlu1 %1923 }
 0x888   : > { %v1937_v35 = vmul.f32 %v1924_v33, %v5894_v18 }
 0x889   : > { %v1919_v20 = vpop.permute.xlu0 %1918 }
 0x88a   : > { %v1936_v56 = vmul.f32 %v1919_v20, %v5878_v12  ;;  %v1945_v58 = vmul.f32 %v1943_v53, %v1937_v35 }
 0x88b   : > { %v1934_v21 = vpop.permute.xlu1 %1933 }
 0x88c   : > { %v1944_v57 = vmul.f32 %v1943_v53, %v1936_v56  ;;  %v1939_v22 = vmul.f32 %v1934_v21, %v5911_v23 }
 0x88d   : > { %v1929_v59 = vpop.permute.xlu0 %1928 }
 0x88e   : > { %v1938_v15 = vmul.f32 %v1929_v59, %v5897_v19  ;;  %5359 = vmatprep.mubr.msk.f32.mxu1 %vm6895_vm1, %v1944_v57  ;;  %v1947_v60 = vmul.f32 %v1943_v53, %v1939_v22 }
 0x88f   : > { %5360 = vmatmul.mubr.msk.f32.vlgmr.msra.gmra.mxu1 %vm6895_vm1, %v1945_v58 }
 0x890   : > { %v1946_v24 = vmul.f32 %v1943_v53, %v1938_v15 }
 0x892   : > { %5362 = vmatprep.mubr.msk.f32.mxu1 %vm6895_vm1, %v1946_v24 }
 0x893   : > { %5363 = vmatmul.mubr.msk.f32.gmra.mxu1 %vm6895_vm1, %v1947_v60 }
 0x894   : > { %5387 = vmatprep.mubr.msk.f32.mxu1 %vm6895_vm1, %v1944_v57 }
 0x94f   : > { %v5361_v62 = vpop.f32.mrf.mxu1 }
 0x950   : > { %v2138_v11 = vadd.f32 %v5361_v62, %v4831_v61 }
 0x951   : > { %v2132_v25 = vpop.f32.mrf.mxu1 }
 0x952   : > { %v2133_v26 = vadd.f32 %v4831_v61, %v2132_v25  ;;  %v2152_v28 = vmax.f32 %v2138_v11, 0.0 }
 0x953   : > { %v5364_v31 = vpop.f32.mrf.mxu1 }
 0x954   : > { %v2151_v39 = vmax.f32 %v2133_v26, 0.0  ;;  %v2148_v45 = vadd.f32 %v5364_v31, %v4831_v61  ;;  %v6262_v27 = vmul.f32 %v2152_v28, %v6177_v50 }
 0x955   : > { %v2142_v46 = vpop.f32.mrf.mxu1 }
 0x956   : > { %v6259_v36 = vmul.f32 %v2151_v39, %v6175_v42  ;;  %v2143_v40 = vadd.f32 %v4831_v61, %v2142_v46  ;;  %v2154_v29 = vmax.f32 %v2148_v45, 0.0  ;;  %v5777_v46 = vmov 1  }
 0x958   : > { %v2153_v33 = vmax.f32 %v2143_v40, 0.0  ;;  %5373 = vmatprep.mubr.msk.f32.mxu0 %vm6895_vm1, %v6259_v36  ;;  %v6272_v20 = vmul.f32 %v2154_v29, %v6158_v43 }
 0x959   : > { %5374 = vmatmul.mubr.msk.f32.vlgmr.msra.gmra.mxu0 %vm6895_vm1, %v6262_v27 }
 0x95a   : > { %v6269_v35 = vmul.f32 %v2153_v33, %v6166_v48 }
 0x95c   : > { %5376 = vmatprep.mubr.msk.f32.mxu0 %vm6895_vm1, %v6269_v35 }
 0x95d   : > { %5377 = vmatmul.mubr.msk.f32.gmra.mxu0 %vm6895_vm1, %v6272_v20 }
 0x95e   : > { %5401 = vmatprep.mubr.msk.f32.mxu0 %vm6893_vm7, %v5773_v7 }
 0xa19   : > { %v5375_v53 = vpop.f32.mrf.mxu0 }
 0xa1b   : > { %v2237_v56 = vpop.f32.mrf.mxu0 }
 0xa1d   : > { %v5378_v21 = vpop.f32.mrf.mxu0 }
 0xa1e   : > { %5379 = vmatprep.subr.mxu1 %v5378_v21 }
 0xa1f   : > { %v2247_v57 = vpop.f32.mrf.mxu0  ;;  %5380 = vmatpush3.msra.mxu1 %v5378_v21 }
 0xa20   : > { %5381 = vmatprep.subr.mxu1 %v2247_v57 }
 0xa21   : > { %5382 = vmatpush3.msra.mxu1 %v2247_v57 }
 0xa22   : > { %5383 = vmatprep.subr.mxu1 %v5375_v53 }
 0xa23   : > { %5384 = vmatpush3.msra.mxu1 %v5375_v53 }
 0xa24   : > { %5385 = vmatprep.subr.mxu1 %v2237_v56 }
 0xa25   : > { %5386 = vmatpush3.msra.mxu1 %v2237_v56 }
 0xa26   : > { %5388 = vmatmul.mubr.msk.f32.vlgmr.msra.gmra.mxu1 %vm6895_vm1, %v1945_v58  ;;  %5404 = vmatprep.subr.mxu1 %v5773_v7 }
 0xa27   : > { %5390 = vmatprep.mubr.msk.f32.mxu1 %vm6895_vm1, %v1946_v24 }
 0xa2a   : > { %5391 = vmatmul.mubr.msk.f32.gmra.mxu1 %vm6895_vm1, %v1947_v60 }
 0xa2b   : > { %5412 = vmatprep.mubr.msk.f32.mxu1 %vm6893_vm7, %v5773_v7 }
 0xae6   : > { %v5389_v22 = vpop.f32.mrf.mxu1 }
 0xae7   : > { %v2328_v58 = vadd.f32 %v5389_v22, %v6031_v47 }
 0xae8   : > { %v2322_v59 = vpop.f32.mrf.mxu1 }
 0xae9   : > { %v2323_v24 = vadd.f32 %v6031_v47, %v2322_v59 }
 0xaea   : > { %v5392_v15 = vpop.f32.mrf.mxu1 }
 0xaeb   : > { %v2338_v61 = vadd.f32 %v5392_v15, %v6031_v47 }
 0xaec   : > { %v2332_v62 = vpop.f32.mrf.mxu1 }
 0xaed   : > { %v2333_v11 = vadd.f32 %v6031_v47, %v2332_v62  ;;  %2355 = vrot.lane.b32.xlu0 %v2338_v61, %s5776_s18  ;;  %5718 = vtanh.f32 %v2338_v61  ;;  %v2490_v62 = vmul.f32 %v5947_v37, %v6158_v43 }
 0xaef   : > { %2353 = vrot.lane.b32.xlu1 %v2333_v11, %s5776_s18  ;;  %5720 = vtanh.f32 %v2333_v11 }
 0xaf0   : > { %5722 = vtanh.f32 %v2328_v58 }
 0xaf1   : > { %2351 = vrot.lane.b32.xlu0 %v2328_v58, %s5776_s18  ;;  %5724 = vtanh.f32 %v2323_v24  ;;  %v2489_v58 = vmul.f32 %v6166_v48, %v5949_v38 }
 0xaf3   : > { %2349 = vrot.lane.b32.xlu1 %v2323_v24, %s5776_s18  ;;  %s306_s18 = scalar_lea.vmem %s6892_s6, %s4777_s24 }
 0xafa   : > { %v5719_v0 = vpop.eup %5718 }
 0xafc   : > { %v5721_v9 = vpop.eup %5720 }
 0xafd   : > { %v5723_v17 = vpop.eup %5722 }
 0xafe   : > { %v5725_v40 = vpop.eup %5724 }
 0xb5f   : > { %v2356_v60 = vpop.permute.xlu0 %2355 }
 0xb60   : > { %v2364_v25 = vsel %vm2344_vm4, %v2356_v60, -1e+30 }
 0xb61   : > { %2382 = vperm.xlu0 %5672, %v2364_v25   ;;  %v2354_v26 = vpop.permute.xlu1 %2353 }
 0xb62   : > { %v2363_v28 = vsel %vm2343_vm2, %v2354_v26, -1e+30  ;;  %v2488_v26 = vmul.f32 %v5943_v32, %v6177_v50 }
 0xb63   : > { %v2352_v31 = vpop.permute.xlu0 %2351  ;;  %2377 = vperm.xlu1 %5673, %v2363_v28  }
 0xb64   : > { %v2362_v47 = vsel %vm2342_vm5, %v2352_v31, -1e+30 }
 0xb65   : > { %2372 = vperm.xlu0 %5672, %v2362_v47   ;;  %v2350_v39 = vpop.permute.xlu1 %2349 }
 0xb66   : > { %v2361_v45 = vsel %vm2341_vm6, %v2350_v39, -1e+30  ;;  %v2487_v39 = vmul.f32 %v6175_v42, %v5945_v34 }
 0xb67   : > { %2367 = vperm.xlu1 %5673, %v2361_v45  }
 0xb69   : > { %5674 = vset.pattern.permute.xlu0 %v5777_v46 }
 0xb6a   : > { %2766 = vperm.xlu0 %5674, %v5719_v0  }
 0xb6b   : > { %5675 = vset.pattern.permute.xlu1 %v5777_v46 }
 0xb6c   : > { %2761 = vperm.xlu1 %5675, %v5721_v9  }
 0xb6e   : > { %2756 = vperm.xlu0 %5674, %v5723_v17  }
 0xb70   : > { %5676 = vset.pattern.permute.xlu1 %v5775_v30 }
 0xb72   : > { %2751 = vperm.xlu0 %5674, %v5725_v40  }
 0xb76   : > { %5677 = vset.pattern.permute.xlu0 %v5775_v30 }
 0xbdc   : > { %v2383_v63 = vpop.permute.xlu0 %2382 }
 0xbdd   : > { %v2388_v29 = vmul.f32 %v2383_v63, %v5887_v16 }
 0xbde   : > { %v2378_v33 = vpop.permute.xlu1 %2377 }
 0xbdf   : > { %v2387_v53 = vmul.f32 %v2378_v33, %v5884_v14  ;;  %5394 = vmatpush3.msra.mxu0 %v2388_v29 }
 0xbe0   : > { %5395 = vmatprep.subr.mxu0 %v5773_v7  ;;  %v2373_v56 = vpop.permute.xlu0 %2372 }
 0xbe1   : > { %v2386_v21 = vmul.f32 %v2373_v56, %v5881_v13  ;;  %5396 = vmatpush3.msra.mxu0 %v2387_v53 }
 0xbe2   : > { %5397 = vmatprep.subr.mxu0 %v5773_v7  ;;  %v2368_v57 = vpop.permute.xlu1 %2367 }
 0xbe3   : > { %v2385_v22 = vmul.f32 %v2368_v57, %v5854_v8  ;;  %5398 = vmatpush3.msra.mxu0 %v2386_v21 }
 0xbe4   : > { %5399 = vmatprep.subr.mxu0 %v5773_v7 }
 0xbe5   : > { %5400 = vmatpush3.msra.mxu0 %v2385_v22 }
 0xbe6   : > { %5402 = vmatmul.mubr.msk.f32.vlgmr.msra.gmra.mxu0 %vm6895_vm1, %v5772_v1  ;;  %5415 = vmatprep.subr.mxu0 %v5773_v7 }
 0xbe7   : > { %5416 = vmatpush3.msra.mxu0 %v5947_v37  ;;  %5423 = vmatprep.mubr.msk.f32.mxu0 %vm6893_vm7, %v5773_v7 }
 0xbe8   : > { %5417 = vmatprep.subr.mxu0 %v5773_v7 }
 0xbe9   : > { %5418 = vmatpush3.msra.mxu0 %v5949_v38 }
 0xbea   : > { %5419 = vmatprep.subr.mxu0 %v5773_v7 }
 0xbeb   : > { %5420 = vmatpush3.msra.mxu0 %v5943_v32 }
 0xbec   : > { %5421 = vmatprep.subr.mxu0 %v5773_v7 }
 0xbed   : > { %5422 = vmatpush3.msra.mxu0 %v5945_v34 }
 0xbee   : > { %5424 = vmatmul.mubr.msk.f32.vlgmr.msra.gmra.mxu0 %vm6895_vm1, %v6105_v55  ;;  %5440 = vmatprep.subr.mxu0 %v5773_v7 }
 0xbef   : > { %5448 = vmatprep.mubr.msk.f32.mxu0 %vm6893_vm7, %v5773_v7 }
 0xca6   : > { %v2455_v59 = vpop.f32.mrf.mxu0 }
 0xca7   : > { %v2462_v15 = vrot.slane %v2455_v59, %v5952_v54 }
 0xca8   : > { %v5403_v61 = vpop.f32.mrf.mxu0 }
 0xca9   : > { %vm2466_vm8 = vcmp.gt.f32.partialorder %v2383_v63, %v2462_v15  ;;  %vm2470_vm10 = vcmp.eq.f32.partialorder %v2383_v63, %v2462_v15  ;;  %vm2469_vm11 = vcmp.eq.f32.partialorder %v2378_v33, %v2462_v15  ;;  %vm2465_vm13 = vcmp.gt.f32.partialorder %v2378_v33, %v2462_v15 }
 0xcaa   : > { %vm2474_vm12 = vmand %vm2470_vm10, %vm1169_vm14  ;;  %vm2468_vm4 = vcmp.eq.f32.partialorder %v2373_v56, %v2462_v15  ;;  %vm2464_vm5 = vcmp.gt.f32.partialorder %v2373_v56, %v2462_v15  ;;  %vm2467_vm7 = vcmp.eq.f32.partialorder %v2368_v57, %v2462_v15  ;;  %vm2463_vm10 = vcmp.gt.f32.partialorder %v2368_v57, %v2462_v15  ;;  %v6384_v57 = vld [vmem:[%s5861_s30] sm:$0x3]  ;;  %s5778_s30 = smov 126  }
 0xcab   : > { %vm2478_vm15 = vmor %vm2466_vm8, %vm2474_vm12 }
 0xcac   : > { %v4848_v11 = vsel %vm2478_vm15, 1.0, %v5773_v7  ;;  %vm2473_vm2 = vmand %vm2469_vm11, %vm1168_vm3 }
 0xcad   : > { %v2494_v24 = vmul.f32 %v4848_v11, %v2490_v62  ;;  %vm2477_vm6 = vmor %vm2465_vm13, %vm2473_vm2  ;;  %vm6896_vm2 = vmmov 0  }
 0xcae   : > { %v2631_v60 = vpop.f32.mrf.mxu0  ;;  %v4847_v25 = vsel %vm2477_vm6, 1.0, %v5773_v7  ;;  %vm2472_vm8 = vmand %vm2468_vm4, %vm1167_vm9 }
 0xcaf   : > { %5405 = vmatpush3.msra.mxu1 %v2494_v24  ;;  %v2493_v28 = vmul.f32 %v4847_v25, %v2489_v58  ;;  %vm2476_vm11 = vmor %vm2464_vm5, %vm2472_vm8  ;;  %v2635_v17 = vmul.f32 0.5, %v2631_v60  ;;  %v2767_v25 = vpop.permute.xlu0 %2766 }
 0xcb0   : > { %5406 = vmatprep.subr.mxu1 %v5773_v7  ;;  %v5425_v31 = vpop.f32.mrf.mxu0  ;;  %v4846_v47 = vsel %vm2476_vm11, 1.0, %v5773_v7  ;;  %vm2471_vm12 = vmand %vm2467_vm7, %vm1166_vm0  ;;  %vm2636_vm7 = vcmp.gt.f32.partialorder %v6105_v55, 0.0 }
 0xcb1   : > { %5407 = vmatpush3.msra.mxu1 %v2493_v28  ;;  %v2492_v45 = vmul.f32 %v4846_v47, %v2488_v26  ;;  %vm2475_vm13 = vmor %vm2463_vm10, %vm2471_vm12  ;;  %v2762_v26 = vpop.permute.xlu1 %2761  ;;  %v2772_v31 = vmul.f32 %v2767_v25, %v6272_v20 }
 0xcb2   : > { %5408 = vmatprep.subr.mxu1 %v5773_v7  ;;  %v4845_v0 = vsel %vm2475_vm13, 1.0, %v5773_v7 }
 0xcb3   : > { %5409 = vmatpush3.msra.mxu1 %v2492_v45  ;;  %v2491_v9 = vmul.f32 %v4845_v0, %v2487_v39  ;;  %v2757_v28 = vpop.permute.xlu0 %2756  ;;  %v2771_v45 = vmul.f32 %v2762_v26, %v6269_v35 }
 0xcb4   : > { %5410 = vmatprep.subr.mxu1 %v5773_v7 }
 0xcb5   : > { %5411 = vmatpush3.msra.mxu1 %v2491_v9 }
 0xcb6   : > { %5413 = vmatmul.mubr.msk.f32.vlgmr.msra.gmra.mxu1 %vm6895_vm1, %v5772_v1  ;;  %5426 = vmatprep.subr.mxu1 %v5772_v1 }
 0xcb7   : > { %5427 = vmatpush3.msra.mxu1 %v5772_v1  ;;  %v2752_v0 = vpop.permute.xlu0 %2751 }
 0xcb8   : > { %5428 = vmatprep.subr.mxu1 %v5772_v1  ;;  %v2769_v35 = vmul.f32 %v2752_v0, %v6259_v36  ;;  %v3251_v36 = vld [vmem:[%s6890_s4 + $0x40] sm:$0xff] }
 0xcb9   : > { %5429 = vmatpush3.msra.mxu1 %v5772_v1 }
 0xcba   : > { %5430 = vmatprep.subr.mxu1 %v5772_v1 }
 0xcbb   : > { %5431 = vmatpush3.msra.mxu1 %v5772_v1 }
 0xcbc   : > { %5432 = vmatprep.subr.mxu1 %v5772_v1 }
 0xcbd   : > { %5433 = vmatpush3.msra.mxu1 %v5772_v1 }
 0xcbe   : > { %5451 = vmatprep.subr.mxu1 %v5773_v7 }
 0xd76   : > { %v2561_v40 = vpop.f32.mrf.mxu1 }
 0xd77   : > { %vm2637_vm15 = vcmp.lt.f32.partialorder %v2561_v40, %v2635_v17  ;;  %v2770_v40 = vmul.f32 %v2757_v28, %v6262_v27  ;;  %v3250_v27 = vld [vmem:[%s6890_s4 + $0x38] sm:$0xff] }
 0xd78   : > { %vm2638_vm4 = vmand %vm2636_vm7, %vm2637_vm15  ;;  %v5414_v63 = vpop.f32.mrf.mxu1 }
 0xd79   : > { %v6363_v29 = vsel %vm2638_vm4, 1.0, %v5773_v7 }
 0xd7a   : > { %v2643_v33 = vrot.slane %v6363_v29, %v5952_v54 }
 0xd7c   : > { %v2644_v53 = vmul.f32 %v2643_v33, %v5854_v8  ;;  %v2645_v56 = vmul.f32 %v2643_v33, %v5881_v13  ;;  %v2646_v21 = vmul.f32 %v2643_v33, %v5884_v14  ;;  %v2647_v55 = vmul.f32 %v2643_v33, %v5887_v16 }
 0xd7d   : > { %v2797_v22 = vmul.f32 %v6384_v57, %v2643_v33 }
 0xd7e   : > { %5434 = vmatprep.mubr.msk.f32.mxu1 %vm6895_vm1, %v2644_v53 }
 0xd7f   : > { %5435 = vmatmul.mubr.msk.f32.vlgmr.msra.gmra.mxu1 %vm6895_vm1, %v2645_v56  ;;  %v3249_v56 = vld [vmem:[%s6890_s4 + $0x30] sm:$0xff] }
 0xd80   : > { %5452 = vmatpush3.msra.mxu1 %v5772_v1  ;;  %5437 = vmatprep.mubr.msk.f32.mxu1 %vm6895_vm1, %v2646_v21  ;;  %v3248_v21 = vld [vmem:[%s6890_s4 + $0x28] sm:$0xff] }
 0xd81   : > { %5453 = vmatprep.subr.mxu1 %v5773_v7 }
 0xd82   : > { %5454 = vmatpush3.msra.mxu1 %v5772_v1 }
 0xd83   : > { %5455 = vmatprep.subr.mxu1 %v5773_v7  ;;  %5438 = vmatmul.mubr.msk.f32.gmra.mxu1 %vm6895_vm1, %v2647_v55  ;;  %v5755_v55 = vld [vmem:[%s6890_s4 + $0x60] sm:$0xff] }
 0xd84   : > { %5456 = vmatpush3.msra.mxu1 %v5772_v1  ;;  %5459 = vmatprep.mubr.msk.f32.mxu1 %vm6896_vm2, %v5773_v7 }
 0xd85   : > { %5457 = vmatprep.subr.mxu1 %v5773_v7 }
 0xd86   : > { %5458 = vmatpush3.msra.mxu1 %v5772_v1 }
 0xd87   : > { %5476 = vmatprep.subr.mxu1 %v5773_v7  ;;  %5460 = vmatmul.mubr.msk.f32.vlgmr.msra.gmra.mxu1 %vm6895_vm1, %v2797_v22 }
 0xd88   : > { %5477 = vmatpush3.msra.mxu1 %v5911_v23  ;;  %5484 = vmatprep.mubr.msk.f32.mxu1 %vm6896_vm2, %v5773_v7 }
 0xd89   : > { %5478 = vmatprep.subr.mxu1 %v5773_v7 }
 0xd8a   : > { %5479 = vmatpush3.msra.mxu1 %v5897_v19 }
 0xd8b   : > { %5480 = vmatprep.subr.mxu1 %v5773_v7 }
 0xd8c   : > { %5481 = vmatpush3.msra.mxu1 %v5894_v18 }
 0xd8d   : > { %5482 = vmatprep.subr.mxu1 %v5773_v7 }
 0xd8e   : > { %5483 = vmatpush3.msra.mxu1 %v5878_v12 }
 0xd8f   : > { %5485 = vmatmul.mubr.msk.f32.vlgmr.msra.gmra.mxu1 %vm6895_vm1, %v6363_v29 }
 0xe3f   : > { %v6401_v59 = vpop.f32.mrf.mxu1 }
 0xe40   : > { %vm3642_vm7 = vcmp.gt.f32.partialorder %v6401_v59, 0.0 }
 0xe41   : > { %v6403_v15 = vpop.f32.mrf.mxu1 }
 0xe42   : > { %2775 = vperm.xlu0 %5677, %v6403_v15   ;;  %vm3641_vm15 = vcmp.gt.f32.partialorder %v6403_v15, 0.0 }
 0xe43   : > { %v6406_v61 = vpop.f32.mrf.mxu1 }
 0xe44   : > { %2790 = vperm.xlu1 %5676, %v6406_v61   ;;  %vm3644_vm12 = vcmp.gt.f32.partialorder %v6406_v61, 0.0 }
 0xe45   : > { %v6409_v62 = vpop.f32.mrf.mxu1 }
 0xe46   : > { %vm3643_vm13 = vcmp.gt.f32.partialorder %v6409_v62, 0.0 }
 0xe47   : > { %v6411_v11 = vpop.f32.mrf.mxu1 }
 0xe48   : > { %2785 = vperm.xlu1 %5676, %v6409_v62  }
 0xe49   : > { %v5461_v58 = vpop.f32.mrf.mxu1 }
 0xe4a   : > { %v5757_v58 = vld [vmem:[%s6890_s4 + $0x50] sm:$0xff] }
 0xe4c   : > { %2780 = vperm.xlu1 %5676, %v6401_v59  }
 0xe4f   : > { %v6415_v24 = vpop.f32.mrf.mxu1 }
 0xe51   : > { %v5486_v60 = vpop.f32.mrf.mxu1 }
 0xe52   : > { %v5758_v60 = vld [vmem:[%s6890_s4 + $0x48] sm:$0xff] }
 0xebd   : > { %v6433_v20 = vpop.permute.xlu0 %2775 }
 0xebe   : > { %v6443_v53 = vmul.f32 %v6433_v20, %v2769_v35  ;;  %v3787_v4 = vmul.f32 %v6433_v20, %v5945_v34 }
 0xebf   : > { %v6418_v47 = vpop.permute.xlu1 %2790 }
 0xec0   : > { %v6421_v39 = vmul.f32 %v6418_v47, %v2772_v31 }
 0xec2   : > { %5441 = vmatpush3.msra.mxu0 %v6421_v39 }
 0xec3   : > { %v6425_v9 = vpop.permute.xlu1 %2785  ;;  %5442 = vmatprep.subr.mxu0 %v5773_v7 }
 0xec4   : > { %v6429_v17 = vmul.f32 %v6425_v9, %v2771_v45 }
 0xec6   : > { %5443 = vmatpush3.msra.mxu0 %v6429_v17 }
 0xec7   : > { %v6435_v63 = vpop.permute.xlu1 %2780  ;;  %5444 = vmatprep.subr.mxu0 %v5773_v7 }
 0xec8   : > { %v6440_v33 = vmul.f32 %v6435_v63, %v2770_v40 }
 0xeca   : > { %5445 = vmatpush3.msra.mxu0 %v6440_v33 }
 0xecb   : > { %5446 = vmatprep.subr.mxu0 %v5773_v7 }
 0xecc   : > { %5447 = vmatpush3.msra.mxu0 %v6443_v53 }
 0xecd   : > { %5449 = vmatmul.mubr.msk.f32.vlgmr.msra.gmra.mxu0 %vm6895_vm1, %v2797_v22  ;;  %5462 = vmatprep.subr.mxu0 %v6406_v61  ;;  %v5756_v22 = vld [vmem:[%s6890_s4 + $0x58] sm:$0xff] }
 0xece   : > { %5463 = vmatpush3.msra.mxu0 %v6406_v61  ;;  %5470 = vmatprep.mubr.msk.f32.mxu0 %vm6895_vm1, %v5878_v12 }
 0xecf   : > { %5464 = vmatprep.subr.mxu0 %v6409_v62 }
 0xed0   : > { %5465 = vmatpush3.msra.mxu0 %v6409_v62 }
 0xed1   : > { %5466 = vmatprep.subr.mxu0 %v6401_v59 }
 0xed2   : > { %5467 = vmatpush3.msra.mxu0 %v6401_v59 }
 0xed3   : > { %5468 = vmatprep.subr.mxu0 %v6403_v15 }
 0xed4   : > { %5469 = vmatpush3.msra.mxu0 %v6403_v15 }
 0xed5   : > { %5471 = vmatmul.mubr.msk.f32.vlgmr.msra.gmra.mxu0 %vm6895_vm1, %v5894_v18  ;;  %5487 = vmatprep.subr.mxu0 %v3251_v36 }
 0xed6   : > { %5488 = vmatpush3.msra.mxu0 %v3251_v36  ;;  %5473 = vmatprep.mubr.msk.f32.mxu0 %vm6895_vm1, %v5897_v19 }
 0xed7   : > { %5489 = vmatprep.subr.mxu0 %v3250_v27 }
 0xed8   : > { %5490 = vmatpush3.msra.mxu0 %v3250_v27 }
 0xed9   : > { %5474 = vmatmul.mubr.msk.f32.gmra.mxu0 %vm6895_vm1, %v5911_v23  ;;  %5491 = vmatprep.subr.mxu0 %v3249_v56 }
 0xeda   : > { %5492 = vmatpush3.msra.mxu0 %v3249_v56  ;;  %5495 = vmatprep.mubr.msk.f32.mxu0 %vm6895_vm1, %v6443_v53 }
 0xedb   : > { %5493 = vmatprep.subr.mxu0 %v3248_v21 }
 0xedc   : > { %5494 = vmatpush3.msra.mxu0 %v3248_v21 }
 0xedd   : > { %5496 = vmatmul.mubr.msk.f32.vlgmr.msra.gmra.mxu0 %vm6895_vm1, %v6440_v33  ;;  %5515 = vmatprep.subr.mxu0 %v5755_v55 }
 0xede   : > { %5498 = vmatprep.mubr.msk.f32.mxu0 %vm6895_vm1, %v6429_v17  ;;  %5516 = vmatpush3.msra.mxu0 %v5755_v55 }
 0xedf   : > { %5517 = vmatprep.subr.mxu0 %v5756_v22 }
 0xee0   : > { %5518 = vmatpush3.msra.mxu0 %v5756_v22 }
 0xee1   : > { %5499 = vmatmul.mubr.msk.f32.gmra.mxu0 %vm6895_vm1, %v6421_v39  ;;  %5519 = vmatprep.subr.mxu0 %v5757_v58 }
 0xee2   : > { %5520 = vmatpush3.msra.mxu0 %v5757_v58 }
 0xee3   : > { %5521 = vmatprep.subr.mxu0 %v5758_v60 }
 0xee4   : > { %5522 = vmatpush3.msra.mxu0 %v5758_v60 }
 0xee5   : > { %5543 = vmatprep.subr.mxu0 %v5773_v7 }
 0xf8d   : > { %v6498_v25 = vpop.f32.mrf.mxu0 }
 0xf8f   : > { %v5450_v26 = vpop.f32.mrf.mxu0 }
 0xf95   : > { %v5472_v28 = vpop.f32.mrf.mxu0 }
 0xf96   : > { %v3124_v45 = vmul.f32 %v5472_v28, %v6401_v59 }
 0xf97   : > { %v3104_v31 = vpop.f32.mrf.mxu0 }
 0xf98   : > { %v3123_v0 = vmul.f32 %v3104_v31, %v6403_v15  ;;  %vm3202_vm6 = vcmp.gt.f32.partialorder %v3124_v45, 0.0 }
 0xf99   : > { %v5475_v40 = vpop.f32.mrf.mxu0 }
 0xf9a   : > { %5726 = vrsqrt.f32 %v3123_v0  ;;  %v3126_v36 = vmul.f32 %v5475_v40, %v6406_v61  ;;  %vm3201_vm5 = vcmp.gt.f32.partialorder %v3123_v0, 0.0  ;;  %v3200_v0 = vmul.f32 %v6415_v24, %v6363_v29 }
 0xf9b   : > { %v3114_v35 = vpop.f32.mrf.mxu0  ;;  %5728 = vrsqrt.f32 %v3124_v45 }
 0xf9c   : > { %v3125_v27 = vmul.f32 %v3114_v35, %v6409_v62  ;;  %vm3204_vm10 = vcmp.gt.f32.partialorder %v3126_v36, 0.0  ;;  %vm3213_vm11 = vcmp.gt.f32.partialorder %v3200_v0, 0.0 }
 0xf9d   : > { %v5497_v56 = vpop.f32.mrf.mxu0 }
 0xf9e   : > { %5730 = vrsqrt.f32 %v3125_v27  ;;  %vm3203_vm8 = vcmp.gt.f32.partialorder %v3125_v27, 0.0 }
 0xf9f   : > { %v3331_v21 = vpop.f32.mrf.mxu0  ;;  %5732 = vrsqrt.f32 %v3126_v36 }
 0xfa0   : > { %5734 = vrsqrt.f32 %v3200_v0 }
 0xfa1   : > { %v5500_v55 = vpop.f32.mrf.mxu0 }
 0xfa2   : > { %5501 = vmatprep.subr.mxu1 %v5500_v55 }
 0xfa3   : > { %v3341_v22 = vpop.f32.mrf.mxu0  ;;  %5502 = vmatpush3.msra.mxu1 %v5500_v55 }
 0xfa4   : > { %5503 = vmatprep.subr.mxu1 %v3341_v22 }
 0xfa5   : > { %5504 = vmatpush3.msra.mxu1 %v3341_v22 }
 0xfa6   : > { %5505 = vmatprep.subr.mxu1 %v5497_v56 }
 0xfa7   : > { %v5727_v58 = vpop.eup %5726  ;;  %5506 = vmatpush3.msra.mxu1 %v5497_v56 }
 0xfa8   : > { %5507 = vmatprep.subr.mxu1 %v3331_v21  ;;  %v3209_v60 = vsel %vm3201_vm5, %v5727_v58, 0.0  ;;  %v5729_v26 = vpop.eup %5728 }
 0xfa9   : > { %3218 = vperm.xlu1 %5676, %v3209_v60   ;;  %5508 = vmatpush3.msra.mxu1 %v3331_v21  ;;  %v3210_v31 = vsel %vm3202_vm6, %v5729_v26, 0.0 }
 0xfab   : > { %v5731_v28 = vpop.eup %5730 }
 0xfac   : > { %v3211_v40 = vsel %vm3203_vm8, %v5731_v28, 0.0  ;;  %v5733_v35 = vpop.eup %5732 }
 0xfad   : > { %3223 = vperm.xlu1 %5676, %v3210_v31   ;;  %3228 = vperm.xlu0 %5677, %v3211_v40   ;;  %v3212_v55 = vsel %vm3204_vm10, %v5733_v35, 0.0  ;;  %v5735_v56 = vpop.eup %5734 }
 0xfae   : > { %v3215_v22 = vsel %vm3213_vm11, %v5735_v56, 0.0 }
 0xfaf   : > { %v3243_v21 = vrot.slane %v3215_v22, %v5952_v54 }
 0xfb1   : > { %3233 = vperm.xlu1 %5676, %v3212_v55  }
0x1024   : > { %v3219_v58 = vpop.permute.xlu1 %3218 }
0x1025   : > { %v3236_v45 = vmul.f32 %v3219_v58, %v5878_v12  ;;  %v4866_v12 = vld [vmem:[%s6891_s5 + $0x2] ss:$0 sm:$0xff] }
0x1027   : > { %v3244_v27 = vmul.f32 %v3243_v21, %v3236_v45 }
0x1028   : > { %v3224_v60 = vpop.permute.xlu1 %3223  ;;  %v3229_v26 = vpop.permute.xlu0 %3228 }
0x1029   : > { %v3237_v28 = vmul.f32 %v3224_v60, %v5894_v18  ;;  %v3238_v36 = vmul.f32 %v3229_v26, %v5897_v19  ;;  %5509 = vmatprep.mubr.msk.f32.mxu1 %vm6895_vm1, %v3244_v27 }
0x102b   : > { %v3245_v31 = vmul.f32 %v3243_v21, %v3237_v28  ;;  %v3246_v24 = vmul.f32 %v3243_v21, %v3238_v36 }
0x102c   : > { %v3234_v40 = vpop.permute.xlu1 %3233 }
0x102d   : > { %v3239_v35 = vmul.f32 %v3234_v40, %v5911_v23  ;;  %5510 = vmatmul.mubr.msk.f32.vlgmr.msra.gmra.mxu1 %vm6895_vm1, %v3245_v31 }
0x102e   : > { %5512 = vmatprep.mubr.msk.f32.mxu1 %vm6895_vm1, %v3246_v24 }
0x102f   : > { %v3247_v55 = vmul.f32 %v3243_v21, %v3239_v35 }
0x1031   : > { %5513 = vmatmul.mubr.msk.f32.gmra.mxu1 %vm6895_vm1, %v3247_v55 }
0x1032   : > { %5537 = vmatprep.mubr.msk.f32.mxu1 %vm6895_vm1, %v3244_v27 }
0x10ed   : > { %v5511_v18 = vpop.f32.mrf.mxu1 }
0x10ee   : > { %v3438_v19 = vadd.f32 %v5511_v18, %v4866_v12 }
0x10ef   : > { %v3432_v0 = vpop.f32.mrf.mxu1 }
0x10f0   : > { %v3433_v56 = vadd.f32 %v4866_v12, %v3432_v0  ;;  %v3452_v22 = vmax.f32 %v3438_v19, 0.0 }
0x10f1   : > { %v5514_v58 = vpop.f32.mrf.mxu1 }
0x10f2   : > { %v3451_v23 = vmax.f32 %v3433_v56, 0.0  ;;  %v3448_v45 = vadd.f32 %v5514_v58, %v4866_v12  ;;  %v6523_v28 = vmul.f32 %v3452_v22, %v6435_v63 }
0x10f3   : > { %v3442_v60 = vpop.f32.mrf.mxu1 }
0x10f4   : > { %v6520_v26 = vmul.f32 %v3451_v23, %v6433_v20  ;;  %v3443_v21 = vadd.f32 %v4866_v12, %v3442_v60  ;;  %v3454_v27 = vmax.f32 %v3448_v45, 0.0  ;;  %v5759_v23 = vld [vmem:[%s6891_s5 + $0x3] ss:$0 sm:$0xff] }
0x10f6   : > { %v3453_v36 = vmax.f32 %v3443_v21, 0.0  ;;  %5523 = vmatprep.mubr.msk.f32.mxu0 %vm6895_vm1, %v6520_v26  ;;  %v6533_v35 = vmul.f32 %v3454_v27, %v6418_v47 }
0x10f7   : > { %5524 = vmatmul.mubr.msk.f32.vlgmr.msra.gmra.mxu0 %vm6895_vm1, %v6523_v28 }
0x10f8   : > { %v6530_v40 = vmul.f32 %v3453_v36, %v6425_v9 }
0x10fa   : > { %5526 = vmatprep.mubr.msk.f32.mxu0 %vm6895_vm1, %v6530_v40 }
0x10fb   : > { %5527 = vmatmul.mubr.msk.f32.gmra.mxu0 %vm6895_vm1, %v6533_v35 }
0x10fc   : > { %5551 = vmatprep.mubr.msk.f32.mxu0 %vm6896_vm2, %v5773_v7 }
0x11b7   : > { %v5525_v12 = vpop.f32.mrf.mxu0 }
0x11b9   : > { %v3537_v18 = vpop.f32.mrf.mxu0 }
0x11bb   : > { %v5528_v19 = vpop.f32.mrf.mxu0 }
0x11bc   : > { %5529 = vmatprep.subr.mxu1 %v5528_v19 }
0x11bd   : > { %v3547_v0 = vpop.f32.mrf.mxu0  ;;  %5530 = vmatpush3.msra.mxu1 %v5528_v19 }
0x11be   : > { %5531 = vmatprep.subr.mxu1 %v3547_v0 }
0x11bf   : > { %5532 = vmatpush3.msra.mxu1 %v3547_v0 }
0x11c0   : > { %5533 = vmatprep.subr.mxu1 %v5525_v12 }
0x11c1   : > { %5534 = vmatpush3.msra.mxu1 %v5525_v12 }
0x11c2   : > { %5535 = vmatprep.subr.mxu1 %v3537_v18 }
0x11c3   : > { %5536 = vmatpush3.msra.mxu1 %v3537_v18 }
0x11c4   : > { %5538 = vmatmul.mubr.msk.f32.vlgmr.msra.gmra.mxu1 %vm6895_vm1, %v3245_v31  ;;  %5554 = vmatprep.subr.mxu1 %v5773_v7 }
0x11c5   : > { %5540 = vmatprep.mubr.msk.f32.mxu1 %vm6895_vm1, %v3246_v24 }
0x11c8   : > { %5541 = vmatmul.mubr.msk.f32.gmra.mxu1 %vm6895_vm1, %v3247_v55 }
0x11c9   : > { %5562 = vmatprep.mubr.msk.f32.mxu1 %vm6896_vm2, %v5773_v7 }
0x1284   : > { %v5539_v56 = vpop.f32.mrf.mxu1 }
0x1285   : > { %v3628_v31 = vadd.f32 %v5759_v23, %v5539_v56 }
0x1286   : > { %v3622_v22 = vpop.f32.mrf.mxu1 }
0x1287   : > { %v3623_v24 = vadd.f32 %v5759_v23, %v3622_v22  ;;  %v5779_v22 = vmov 2  }
0x1288   : > { %v5542_v58 = vpop.f32.mrf.mxu1 }
0x1289   : > { %v3638_v45 = vadd.f32 %v5759_v23, %v5542_v58 }
0x128a   : > { %v3632_v60 = vpop.f32.mrf.mxu1 }
0x128b   : > { %v3633_v21 = vadd.f32 %v5759_v23, %v3632_v60  ;;  %3655 = vrot.lane.b32.xlu0 %v3638_v45, %s5778_s30  ;;  %5736 = vtanh.f32 %v3638_v45 }
0x128d   : > { %3653 = vrot.lane.b32.xlu1 %v3633_v21, %s5778_s30  ;;  %5738 = vtanh.f32 %v3633_v21 }
0x128e   : > { %5740 = vtanh.f32 %v3628_v31 }
0x128f   : > { %3651 = vrot.lane.b32.xlu0 %v3628_v31, %s5778_s30  ;;  %5742 = vtanh.f32 %v3623_v24 }
0x1291   : > { %3649 = vrot.lane.b32.xlu1 %v3623_v24, %s5778_s30 }
0x1298   : > { %v5737_v61 = vpop.eup %5736 }
0x129a   : > { %v5739_v58 = vpop.eup %5738 }
0x129b   : > { %v5741_v62 = vpop.eup %5740 }
0x129c   : > { %v5743_v59 = vpop.eup %5742 }
0x12fd   : > { %v3656_v55 = vpop.permute.xlu0 %3655 }
0x12fe   : > { %v3664_v27 = vsel %vm3644_vm12, %v3656_v55, -1e+30 }
0x12ff   : > { %3682 = vperm.xlu0 %5677, %v3664_v27   ;;  %v3654_v36 = vpop.permute.xlu1 %3653 }
0x1300   : > { %v3663_v12 = vsel %vm3643_vm13, %v3654_v36, -1e+30 }
0x1301   : > { %v3652_v18 = vpop.permute.xlu0 %3651  ;;  %3677 = vperm.xlu1 %5676, %v3663_v12  }
0x1302   : > { %v3662_v19 = vsel %vm3642_vm7, %v3652_v18, -1e+30  ;;  %v3790_v18 = vmul.f32 %v5947_v37, %v6418_v47 }
0x1303   : > { %3672 = vperm.xlu0 %5677, %v3662_v19   ;;  %v3650_v0 = vpop.permute.xlu1 %3649 }
0x1304   : > { %v3661_v56 = vsel %vm3641_vm15, %v3650_v0, -1e+30  ;;  %v3789_v0 = vmul.f32 %v6425_v9, %v5949_v38 }
0x1305   : > { %3667 = vperm.xlu1 %5676, %v3661_v56  }
0x1307   : > { %5678 = vset.pattern.permute.xlu0 %v5779_v22 }
0x1308   : > { %4066 = vperm.xlu0 %5678, %v5737_v61  }
0x1309   : > { %5679 = vset.pattern.permute.xlu1 %v5779_v22 }
0x130a   : > { %4061 = vperm.xlu1 %5679, %v5739_v58  }
0x130c   : > { %4056 = vperm.xlu0 %5678, %v5741_v62  }
0x130e   : > { %5680 = vset.pattern.permute.xlu1 %v5775_v30 }
0x1310   : > { %4051 = vperm.xlu0 %5678, %v5743_v59  }
0x1314   : > { %5681 = vset.pattern.permute.xlu0 %v5775_v30 }
0x137a   : > { %v3683_v23 = vpop.permute.xlu0 %3682 }
0x137b   : > { %v3688_v15 = vmul.f32 %v3683_v23, %v5887_v16 }
0x137c   : > { %v3678_v45 = vpop.permute.xlu1 %3677 }
0x137d   : > { %v3687_v60 = vmul.f32 %v3678_v45, %v5884_v14  ;;  %5544 = vmatpush3.msra.mxu0 %v3688_v15 }
0x137e   : > { %5545 = vmatprep.subr.mxu0 %v5773_v7  ;;  %v3673_v21 = vpop.permute.xlu0 %3672 }
0x137f   : > { %v3686_v31 = vmul.f32 %v3673_v21, %v5881_v13  ;;  %5546 = vmatpush3.msra.mxu0 %v3687_v60 }
0x1380   : > { %5547 = vmatprep.subr.mxu0 %v5773_v7  ;;  %v3668_v24 = vpop.permute.xlu1 %3667 }
0x1381   : > { %v3685_v55 = vmul.f32 %v3668_v24, %v5854_v8  ;;  %5548 = vmatpush3.msra.mxu0 %v3686_v31 }
0x1382   : > { %5549 = vmatprep.subr.mxu0 %v5773_v7 }
0x1383   : > { %5550 = vmatpush3.msra.mxu0 %v3685_v55 }
0x1384   : > { %5552 = vmatmul.mubr.msk.f32.vlgmr.msra.gmra.mxu0 %vm6895_vm1, %v5772_v1  ;;  %5565 = vmatprep.subr.mxu0 %v5773_v7 }
0x1385   : > { %5566 = vmatpush3.msra.mxu0 %v5947_v37  ;;  %5573 = vmatprep.mubr.msk.f32.mxu0 %vm6896_vm2, %v5773_v7  ;;  %v3788_v37 = vmul.f32 %v5943_v32, %v6435_v63 }
0x1386   : > { %5567 = vmatprep.subr.mxu0 %v5773_v7 }
0x1387   : > { %5568 = vmatpush3.msra.mxu0 %v5949_v38 }
0x1388   : > { %5569 = vmatprep.subr.mxu0 %v5773_v7 }
0x1389   : > { %5570 = vmatpush3.msra.mxu0 %v5943_v32 }
0x138a   : > { %5571 = vmatprep.subr.mxu0 %v5773_v7 }
0x138b   : > { %5572 = vmatpush3.msra.mxu0 %v5945_v34 }
0x138c   : > { %5574 = vmatmul.mubr.msk.f32.vlgmr.msra.gmra.mxu0 %vm6895_vm1, %v6363_v29  ;;  %5590 = vmatprep.subr.mxu0 %v5773_v7 }
0x138d   : > { %5598 = vmatprep.mubr.msk.f32.mxu0 %vm6896_vm2, %v5773_v7 }
0x1444   : > { %v3755_v27 = vpop.f32.mrf.mxu0 }
0x1445   : > { %v3762_v36 = vrot.slane %v3755_v27, %v5952_v54 }
0x1446   : > { %v5553_v12 = vpop.f32.mrf.mxu0 }
0x1447   : > { %vm3766_vm4 = vcmp.gt.f32.partialorder %v3683_v23, %v3762_v36  ;;  %vm3770_vm5 = vcmp.eq.f32.partialorder %v3683_v23, %v3762_v36  ;;  %vm3769_vm6 = vcmp.eq.f32.partialorder %v3678_v45, %v3762_v36  ;;  %vm3765_vm10 = vcmp.gt.f32.partialorder %v3678_v45, %v3762_v36 }
0x1448   : > { %vm3774_vm8 = vmand %vm3770_vm5, %vm1169_vm14  ;;  %vm3768_vm12 = vcmp.eq.f32.partialorder %v3673_v21, %v3762_v36  ;;  %vm3764_vm7 = vcmp.gt.f32.partialorder %v3673_v21, %v3762_v36  ;;  %vm3767_vm1 = vcmp.eq.f32.partialorder %v3668_v24, %v3762_v36 }
0x1449   : > { %vm3778_vm11 = vmor %vm3766_vm4, %vm3774_vm8  ;;  %vm3763_vm4 = vcmp.gt.f32.partialorder %v3668_v24, %v3762_v36 }
0x144a   : > { %v4883_v19 = vsel %vm3778_vm11, 1.0, %v5773_v7  ;;  %vm3773_vm13 = vmand %vm3769_vm6, %vm1168_vm3  ;;  %vm6897_vm6 = vcmask 261120  }
0x144b   : > { %v3794_v56 = vmul.f32 %v4883_v19, %v3790_v18  ;;  %vm3777_vm15 = vmor %vm3765_vm10, %vm3773_vm13 }
0x144c   : > { %v3931_v6 = vpop.f32.mrf.mxu0  ;;  %v4882_v61 = vsel %vm3777_vm15, 1.0, %v5773_v7  ;;  %vm3772_vm14 = vmand %vm3768_vm12, %vm1167_vm9 }
0x144d   : > { %5555 = vmatpush3.msra.mxu1 %v3794_v56  ;;  %v3793_v5 = vmul.f32 %v4882_v61, %v3789_v0  ;;  %vm3776_vm3 = vmor %vm3764_vm7, %vm3772_vm14  ;;  %v3935_v3 = vmul.f32 0.5, %v3931_v6  ;;  %v6669_v56 = vld [vmem:[%s5874_s9 + $0x10] sm:$0xff] }
0x144e   : > { %5556 = vmatprep.subr.mxu1 %v5773_v7  ;;  %v5575_v38 = vpop.f32.mrf.mxu0  ;;  %v4881_v22 = vsel %vm3776_vm3, 1.0, %v5773_v7  ;;  %vm3771_vm5 = vmand %vm3767_vm1, %vm1166_vm0  ;;  %vm3936_vm1 = vcmp.gt.f32.partialorder %v6363_v29, 0.0 }
0x144f   : > { %5557 = vmatpush3.msra.mxu1 %v3793_v5  ;;  %v3792_v58 = vmul.f32 %v4881_v22, %v3788_v37  ;;  %vm3775_vm9 = vmor %vm3763_vm4, %vm3771_vm5  ;;  %v4062_v38 = vpop.permute.xlu1 %4061 }
0x1450   : > { %5558 = vmatprep.subr.mxu1 %v5773_v7  ;;  %v4880_v32 = vsel %vm3775_vm9, 1.0, %v5773_v7  ;;  %vm6898_vm10 = vmmov %vm6897_vm6 }
0x1451   : > { %5559 = vmatpush3.msra.mxu1 %v3792_v58  ;;  %v3791_v62 = vmul.f32 %v4880_v32, %v3787_v4  ;;  %vm6899_vm11 = vmmov %vm6897_vm6  ;;  %v4071_v32 = vmul.f32 %v4062_v38, %v6530_v40 }
0x1452   : > { %5560 = vmatprep.subr.mxu1 %v5773_v7  ;;  %vm6900_vm12 = vmmov %vm6897_vm6 }
0x1453   : > { %5561 = vmatpush3.msra.mxu1 %v3791_v62  ;;  %vm6901_vm13 = vmmov %vm6897_vm6 }
0x1454   : > { %5563 = vmatmul.mubr.msk.f32.vlgmr.msra.gmra.mxu1 %vm6897_vm6, %v5772_v1  ;;  %5576 = vmatprep.subr.mxu1 %v5772_v1  ;;  %vm6902_vm7 = vmmov %vm6897_vm6 }
0x1455   : > { %5577 = vmatpush3.msra.mxu1 %v5772_v1 }
0x1456   : > { %5578 = vmatprep.subr.mxu1 %v5772_v1 }
0x1457   : > { %5579 = vmatpush3.msra.mxu1 %v5772_v1 }
0x1458   : > { %5580 = vmatprep.subr.mxu1 %v5772_v1 }
0x1459   : > { %5581 = vmatpush3.msra.mxu1 %v5772_v1 }
0x145a   : > { %5582 = vmatprep.subr.mxu1 %v5772_v1 }
0x145b   : > { %5583 = vmatpush3.msra.mxu1 %v5772_v1 }
0x145c   : > { %5601 = vmatprep.subr.mxu1 %v5773_v7 }
0x1514   : > { %v3861_v34 = vpop.f32.mrf.mxu1 }
0x1515   : > { %vm3937_vm0 = vcmp.lt.f32.partialorder %v3861_v34, %v3935_v3 }
0x1516   : > { %vm3938_vm8 = vmand %vm3936_vm1, %vm3937_vm0  ;;  %v5564_v59 = vpop.f32.mrf.mxu1 }
0x1517   : > { %v3939_v23 = vsel %vm3938_vm8, 1.0, %v5773_v7 }
0x1518   : > { %v3943_v15 = vrot.slane %v3939_v23, %v5952_v54 }
0x151a   : > { %v3944_v45 = vmul.f32 %v3943_v15, %v5854_v8  ;;  %v3945_v60 = vmul.f32 %v3943_v15, %v5881_v13  ;;  %v3946_v21 = vmul.f32 %v3943_v15, %v5884_v14  ;;  %v3947_v29 = vmul.f32 %v3943_v15, %v5887_v16  ;;  %v6648_v14 = vld [vmem:[%s5874_s9] sm:$0xff] }
0x151b   : > { %v6638_v8 = vmul.f32 %v6384_v57, %v3943_v15  ;;  %v1492_v16 = vmul.f32 %v6648_v14, %v6175_v42  ;;  %v5762_v42 = vld [vmem:[%s5874_s9 + $0x8] sm:$0xff] }
0x151c   : > { %5584 = vmatprep.mubr.msk.f32.mxu1 %vm6898_vm10, %v3944_v45  ;;  %v2799_v36 = vmul.f32 %v5762_v42, %v6435_v63  ;;  %v1493_v19 = vmul.f32 %v5762_v42, %v6177_v50  ;;  %v1494_v63 = vmul.f32 %v6669_v56, %v6166_v48  ;;  %v2798_v50 = vmul.f32 %v6648_v14, %v6433_v20  ;;  %v4067_v20 = vpop.permute.xlu0 %4066  ;;  %vm6903_vm10 = vmmov %vm6902_vm7 }
0x151d   : > { %5585 = vmatmul.mubr.msk.f32.vlgmr.msra.gmra.mxu1 %vm6899_vm11, %v3945_v60  ;;  %vm1647_vm15 = vcmp.gt.f32.partialorder %v1492_v16, 0.0  ;;  %v2800_v48 = vmul.f32 %v6669_v56, %v6425_v9  ;;  %v4072_v9 = vmul.f32 %v4067_v20, %v6533_v35 }
0x151e   : > { %5587 = vmatprep.mubr.msk.f32.mxu1 %vm6900_vm12, %v3946_v21  ;;  %5602 = vmatpush3.msra.mxu1 %v5772_v1  ;;  %v1651_v55 = vsel %vm1647_vm15, 1, %v5775_v30  ;;  %vm2954_vm4 = vcmp.gt.f32.partialorder %v2799_v36, 0.0  ;;  %vm1648_vm5 = vcmp.gt.f32.partialorder %v1493_v19, 0.0  ;;  %vm1649_vm9 = vcmp.gt.f32.partialorder %v1494_v63, 0.0  ;;  %v4343_v36 = vld [vmem:[%s6890_s4 + $0x90] sm:$0xff] }
0x151f   : > { %5603 = vmatprep.subr.mxu1 %v5773_v7  ;;  %v2958_v0 = vsel %vm2954_vm4, 1, %v5775_v30  ;;  %v1652_v61 = vsel %vm1648_vm5, 1, %v5775_v30  ;;  %vm2953_vm6 = vcmp.gt.f32.partialorder %v2798_v50, 0.0  ;;  %vm2955_vm1 = vcmp.gt.f32.partialorder %v2800_v48, 0.0 }
0x1520   : > { %5604 = vmatpush3.msra.mxu1 %v5772_v1  ;;  %v2957_v37 = vsel %vm2953_vm6, 1, %v5775_v30  ;;  %v2959_v5 = vsel %vm2955_vm1, 1, %v5775_v30  ;;  %v4057_v22 = vpop.permute.xlu0 %4056 }
0x1521   : > { %5588 = vmatmul.mubr.msk.f32.gmra.mxu1 %vm6901_vm13, %v3947_v29  ;;  %5605 = vmatprep.subr.mxu1 %v5773_v7  ;;  %v4070_v59 = vmul.f32 %v4057_v22, %v6523_v28  ;;  %vm3029_vm13 = vcmp.gt.f32.partialorder %v6411_v11, 0.0 }
0x1522   : > { %5606 = vmatpush3.msra.mxu1 %v5772_v1  ;;  %5609 = vmatprep.mubr.msk.f32.mxu1 %vm6896_vm2, %v5773_v7 }
0x1523   : > { %5607 = vmatprep.subr.mxu1 %v5773_v7 }
0x1524   : > { %5608 = vmatpush3.msra.mxu1 %v5772_v1  ;;  %v6653_v1 = vld [vmem:[%s5874_s9 + $0x18] sm:$0xff]  ;;  %v4052_v62 = vpop.permute.xlu0 %4051 }
0x1525   : > { %5610 = vmatmul.mubr.msk.f32.vlgmr.msra.gmra.mxu1 %vm6902_vm7, %v6638_v8  ;;  %5623 = vmatprep.subr.mxu1 %v5773_v7  ;;  %v1495_v31 = vmul.f32 %v6653_v1, %v6158_v43  ;;  %v2801_v43 = vmul.f32 %v6653_v1, %v6418_v47  ;;  %v1653_v47 = vsel %vm1649_vm9, 1, %v5775_v30  ;;  %v4069_v40 = vmul.f32 %v4052_v62, %v6520_v26 }
0x1526   : > { %5631 = vmatprep.mubr.msk.f32.mxu1 %vm6896_vm2, %v5773_v7  ;;  %vm1729_vm7 = vcmp.gt.f32.partialorder %v6150_v10, 0.0 }
0x1527   : > { %vm1650_vm14 = vcmp.gt.f32.partialorder %v1495_v31, 0.0  ;;  %vm2956_vm3 = vcmp.gt.f32.partialorder %v2801_v43, 0.0 }
0x1528   : > { %v1654_v18 = vsel %vm1650_vm14, 1, %v5775_v30  ;;  %v2960_v6 = vsel %vm2956_vm3, 1, %v5775_v30 }
0x15dd   : > { %v5586_v13 = vpop.f32.mrf.mxu1 }
0x15df   : > { %v4026_v54 = vpop.f32.mrf.mxu1 }
0x15e0   : > { %4075 = vperm.xlu0 %5681, %v4026_v54   ;;  %v3030_v54 = vsel %vm3029_vm13, 1, %v5775_v30 }
0x15e1   : > { %v5589_v57 = vpop.f32.mrf.mxu1 }
0x15e2   : > { %4090 = vperm.xlu1 %5680, %v5589_v57   ;;  %v1639_v57 = vmax.f32 %v6150_v10, 1.0  ;;  %v4340_v10 = vld [vmem:[%s6890_s4 + $0x78] sm:$0xff] }
0x15e3   : > { %v4036_v24 = vpop.f32.mrf.mxu1 }
0x15e4   : > { %5682 = vset.pattern.permute.xlu0 %v5777_v46 }
0x15e5   : > { %v6659_v27 = vpop.f32.mrf.mxu1  ;;  %1693 = vperm.xlu0 %5682, %v1651_v55  }
0x15e6   : > { %4085 = vperm.xlu1 %5680, %v4036_v24   ;;  %vm4329_vm15 = vcmp.gt.f32.partialorder %v6659_v27, 0.0  ;;  %v4339_v24 = vld [vmem:[%s6890_s4 + $0x70] sm:$0xff] }
0x15e7   : > { %v5611_v12 = vpop.f32.mrf.mxu1  ;;  %v4330_v31 = vsel %vm4329_vm15, 1, %v5775_v30 }
0x15e8   : > { %v4342_v12 = vld [vmem:[%s6890_s4 + $0x88] sm:$0xff] }
0x15e9   : > { %1702 = vperm.xlu0 %5682, %v1654_v18  }
0x15ea   : > { %4080 = vperm.xlu1 %5680, %v5586_v13  }
0x15ed   : > { %2999 = vperm.xlu0 %5682, %v2958_v0  }
0x15ee   : > { %1656 = vperm.xlu1 %5680, %v1651_v55   ;;  %v4338_v55 = vld [vmem:[%s6890_s4 + $0x68] sm:$0xff] }
0x15f1   : > { %3005 = vperm.xlu0 %5682, %v2960_v6  }
0x15f2   : > { %1659 = vperm.xlu1 %5680, %v1652_v61  }
0x15f5   : > { %5684 = vset.pattern.permute.xlu0 %v5775_v30 }
0x15f6   : > { %1665 = vperm.xlu1 %5680, %v1654_v18   ;;  %1662 = vperm.xlu0 %5684, %v1653_v47  }
0x15fa   : > { %2965 = vperm.xlu1 %5680, %v2958_v0   ;;  %2962 = vperm.xlu0 %5684, %v2957_v37  }
0x15fe   : > { %2971 = vperm.xlu1 %5680, %v2960_v6   ;;  %2968 = vperm.xlu0 %5684, %v2959_v5  }
0x1602   : > { %5683 = vset.pattern.permute.xlu1 %v5777_v46 }
0x1603   : > { %1696 = vperm.xlu1 %5683, %v1652_v61  }
0x1607   : > { %1699 = vperm.xlu1 %5683, %v1653_v47  }
0x160b   : > { %2996 = vperm.xlu1 %5683, %v2957_v37  }
0x160f   : > { %3002 = vperm.xlu1 %5683, %v2959_v5  }
0x165b   : > { %v4076_v23 = vpop.permute.xlu0 %4075 }
0x165c   : > { %v4098_v60 = vmul.f32 %v6648_v14, %v4076_v23  ;;  %v6700_v21 = vmul.f32 %v4076_v23, %v4069_v40 }
0x165d   : > { %v4091_v4 = vpop.permute.xlu1 %4090 }
0x165e   : > { %v6685_v58 = vmul.f32 %v4091_v4, %v4072_v9  ;;  %vm4253_vm8 = vcmp.gt.f32.partialorder %v4098_v60, 0.0  ;;  %v4101_v29 = vmul.f32 %v6653_v1, %v4091_v4  ;;  %v4245_v1 = vmax.f32 %v6659_v27, 1.0 }
0x165f   : > { %v4257_v26 = vsel %vm4253_vm8, 1, %v5775_v30 }
0x1660   : > { %5591 = vmatpush3.msra.mxu0 %v6685_v58  ;;  %vm4256_vm11 = vcmp.gt.f32.partialorder %v4101_v29, 0.0  ;;  %v1694_v43 = vpop.permute.xlu0 %1693 }
0x1661   : > { %v4086_v3 = vpop.permute.xlu1 %4085  ;;  %5592 = vmatprep.subr.mxu0 %v5773_v7  ;;  %v4260_v14 = vsel %vm4256_vm11, 1, %v5775_v30  ;;  %vm1704_vm6 = vcmp.eq.s32.totalorder %v1694_v43, 1  ;;  %vm6904_vm11 = vcmask 261120  }
0x1662   : > { %v6690_v34 = vmul.f32 %v4086_v3, %v4071_v32  ;;  %v4100_v13 = vmul.f32 %v6669_v56, %v4086_v3  ;;  %vm6906_vm13 = vmmov %vm6904_vm11 }
0x1664   : > { %5593 = vmatpush3.msra.mxu0 %v6690_v34  ;;  %vm4255_vm12 = vcmp.gt.f32.partialorder %v4100_v13, 0.0  ;;  %v1703_v0 = vpop.permute.xlu0 %1702 }
0x1665   : > { %v4081_v15 = vpop.permute.xlu1 %4080  ;;  %5594 = vmatprep.subr.mxu0 %v5773_v7  ;;  %v4259_v16 = vsel %vm4255_vm12, 1, %v5775_v30  ;;  %vm1707_vm5 = vcmp.eq.s32.totalorder %v1703_v0, 1  ;;  %vm6905_vm12 = vmmov %vm6904_vm11 }
0x1666   : > { %v6695_v35 = vmul.f32 %v4081_v15, %v4070_v59  ;;  %v4099_v45 = vmul.f32 %v5762_v42, %v4081_v15  ;;  %v4344_v42 = vld [vmem:[%s6890_s4 + $0x98] sm:$0xff]  ;;  %v1711_v32 = vsel %vm1707_vm5, %v6161_v44, -1e+30 }
0x1668   : > { %vm4254_vm0 = vcmp.gt.f32.partialorder %v4099_v45, 0.0  ;;  %5595 = vmatpush3.msra.mxu0 %v6695_v35  ;;  %v3000_v63 = vpop.permute.xlu0 %2999 }
0x1669   : > { %5596 = vmatprep.subr.mxu0 %v5773_v7  ;;  %v4258_v28 = vsel %vm4254_vm0, 1, %v5775_v30  ;;  %v1657_v27 = vpop.permute.xlu1 %1656 }
0x166a   : > { %4299 = vperm.xlu1 %5683, %v4258_v28   ;;  %4265 = vperm.xlu0 %5684, %v4258_v28   ;;  %vm1667_vm9 = vcmp.eq.s32.totalorder %v1657_v27, 1 }
0x166b   : > { %5597 = vmatpush3.msra.mxu0 %v6700_v21  ;;  %v1671_v62 = vsel %vm1667_vm9, %v6186_v51, -1e+30  ;;  %vm6907_vm9 = vmmov %vm6904_vm11 }
0x166c   : > { %5599 = vmatmul.mubr.msk.f32.vlgmr.msra.gmra.mxu0 %vm6903_vm10, %v6638_v8  ;;  %5612 = vmatprep.subr.mxu0 %v5773_v7  ;;  %v2945_v8 = vmax.f32 %v6411_v11, 1.0  ;;  %v4341_v11 = vld [vmem:[%s6890_s4 + $0x80] sm:$0xff]  ;;  %v3006_v61 = vpop.permute.xlu0 %3005  ;;  %v1675_v40 = vsel %vm6907_vm9, %v1671_v62, -inf }
0x166d   : > { %5620 = vmatprep.mubr.msk.f32.mxu0 %vm6896_vm2, %v5773_v7  ;;  %5624 = vmatpush3.msra.mxu1 %v4341_v11  ;;  %v1660_v18 = vpop.permute.xlu1 %1659  ;;  %vm3010_vm0 = vcmp.eq.s32.totalorder %v3006_v61, 1 }
0x166e   : > { %5685 = vset.pattern.permute.xlu1 %v5775_v30  ;;  %5686 = vset.pattern.permute.xlu0 %v5777_v46  ;;  %vm1668_vm14 = vcmp.eq.s32.totalorder %v1660_v18, 1  ;;  %v3014_v60 = vsel %vm3010_vm0, %v6421_v39, -1e+30 }
0x166f   : > { %4296 = vperm.xlu0 %5686, %v4257_v26   ;;  %4262 = vperm.xlu1 %5685, %v4257_v26   ;;  %v1672_v38 = vsel %vm1668_vm14, %v6183_v41, -1e+30 }
0x1670   : > { %5625 = vmatprep.subr.mxu1 %v5773_v7  ;;  %v1676_v3 = vsel %vm6904_vm11, %v1672_v38, -inf }
0x1671   : > { %5626 = vmatpush3.msra.mxu1 %v4340_v10  ;;  %v1666_v19 = vpop.permute.xlu1 %1665  ;;  %v1663_v47 = vpop.permute.xlu0 %1662  ;;  %v1679_v26 = vmax.f32 %v1675_v40, %v1676_v3 }
0x1672   : > { %5627 = vmatprep.subr.mxu1 %v5773_v7  ;;  %vm1670_vm4 = vcmp.eq.s32.totalorder %v1666_v19, 1  ;;  %vm1669_vm3 = vcmp.eq.s32.totalorder %v1663_v47, 1 }
0x1673   : > { %4305 = vperm.xlu0 %5686, %v4260_v14   ;;  %4271 = vperm.xlu1 %5685, %v4260_v14   ;;  %v1674_v22 = vsel %vm1670_vm4, %v6161_v44, -1e+30  ;;  %v1673_v9 = vsel %vm1669_vm3, %v6170_v49, -1e+30  ;;  %vm3008_vm3 = vcmp.eq.s32.totalorder %v3000_v63, 1 }
0x1674   : > { %5628 = vmatpush3.msra.mxu1 %v4339_v24  ;;  %v1678_v59 = vsel %vm6905_vm12, %v1674_v22, -inf  ;;  %v1677_v23 = vsel %vm6906_vm13, %v1673_v9, -inf }
0x1675   : > { %5629 = vmatprep.subr.mxu1 %v5773_v7  ;;  %v2966_v56 = vpop.permute.xlu1 %2965  ;;  %v2963_v37 = vpop.permute.xlu0 %2962  ;;  %v1680_v28 = vmax.f32 %v1677_v23, %v1678_v59 }
0x1676   : > { %5630 = vmatpush3.msra.mxu1 %v4338_v55  ;;  %vm2974_vm15 = vcmp.eq.s32.totalorder %v2966_v56, 1  ;;  %vm2973_vm14 = vcmp.eq.s32.totalorder %v2963_v37, 1 }
0x1677   : > { %5689 = vset.pattern.permute.xlu0 %v5775_v30  ;;  %4268 = vperm.xlu1 %5685, %v4259_v16   ;;  %v2978_v13 = vsel %vm2974_vm15, %v6440_v33, -1e+30  ;;  %v2977_v14 = vsel %vm2973_vm14, %v6443_v53, -1e+30 }
0x1678   : > { %2948 = vperm.xlu0 %5689, %v2945_v8   ;;  %5645 = vmatprep.subr.mxu1 %v5773_v7 }
0x1679   : > { %v2972_v6 = vpop.permute.xlu1 %2971  ;;  %v2969_v20 = vpop.permute.xlu0 %2968 }
0x167a   : > { %vm2976_vm1 = vcmp.eq.s32.totalorder %v2972_v6, 1  ;;  %vm2975_vm8 = vcmp.eq.s32.totalorder %v2969_v20, 1 }
0x167b   : > { %5687 = vset.pattern.permute.xlu1 %v5777_v46  ;;  %v1730_v46 = vsel %vm1729_vm7, 1, %v5775_v30  ;;  %v2980_v15 = vsel %vm2976_vm1, %v6421_v39, -1e+30  ;;  %v2979_v44 = vsel %vm2975_vm8, %v6429_v17, -1e+30  ;;  %vm6908_vm1 = vmmov %vm6907_vm9 }
0x167c   : > { %3032 = vperm.xlu0 %5689, %v3030_v54   ;;  %4302 = vperm.xlu1 %5687, %v4259_v16   ;;  %v2984_v16 = vsel %vm6908_vm1, %v2980_v15, -inf  ;;  %vm6909_vm8 = vmmov %vm6908_vm1  ;;  %v1708_v39 = vsel %vm1704_vm6, %v6186_v51, -1e+30 }
0x167d   : > { %vm6911_vm0 = vmmov %vm6908_vm1 }
0x167e   : > { %v1697_v50 = vpop.permute.xlu1 %1696  ;;  %vm6912_vm11 = vmmov %vm6911_vm0 }
0x167f   : > { %vm1705_vm4 = vcmp.eq.s32.totalorder %v1697_v50, 1  ;;  %vm6913_vm12 = vmmov %vm6911_vm0 }
0x1680   : > { %5688 = vset.pattern.permute.xlu1 %v5775_v30  ;;  %v4345_v30 = vld [vmem:[%s6890_s4 + $0xa0] sm:$0xff]  ;;  %v1709_v8 = vsel %vm1705_vm4, %v6183_v41, -1e+30  ;;  %v2982_v10 = vsel %vm6913_vm12, %v2978_v13, -inf  ;;  %vm6914_vm13 = vmmov %vm6911_vm0 }
0x1681   : > { %1642 = vperm.xlu1 %5688, %v1639_v57   ;;  %5613 = vmatpush3.msra.mxu0 %v4345_v30  ;;  %v2981_v24 = vsel %vm6914_vm13, %v2977_v14, -inf  ;;  %vm6916_vm15 = vmmov %vm6911_vm0 }
0x1682   : > { %5614 = vmatprep.subr.mxu0 %v5773_v7  ;;  %v1700_v48 = vpop.permute.xlu1 %1699  ;;  %vm6917_vm6 = vmmov %vm6911_vm0 }
0x1683   : > { %5615 = vmatpush3.msra.mxu0 %v4344_v42  ;;  %vm1706_vm10 = vcmp.eq.s32.totalorder %v1700_v48, 1  ;;  %vm6918_vm14 = vmmov %vm6911_vm0 }
0x1684   : > { %5616 = vmatprep.subr.mxu0 %v5773_v7  ;;  %v1710_v45 = vsel %vm1706_vm10, %v6170_v49, -1e+30  ;;  %v2983_v49 = vsel %vm6909_vm8, %v2979_v44, -inf  ;;  %vm6910_vm10 = vmmov %vm6908_vm1  ;;  %v1712_v42 = vsel %vm6918_vm14, %v1708_v39, -inf }
0x1685   : > { %4248 = vperm.xlu1 %5688, %v4245_v1   ;;  %5617 = vmatpush3.msra.mxu0 %v4343_v36  ;;  %v1714_v54 = vsel %vm6910_vm10, %v1710_v45, -inf  ;;  %v3012_v1 = vsel %vm3008_vm3, %v6440_v33, -1e+30  ;;  %v2986_v30 = vmax.f32 %v2983_v49, %v2984_v16  ;;  %vm6919_vm4 = vmmov %vm6911_vm0 }
0x1686   : > { %5618 = vmatprep.subr.mxu0 %v5773_v7  ;;  %v2997_v5 = vpop.permute.xlu1 %2996  ;;  %v3016_v36 = vsel %vm6919_vm4, %v3012_v1, -inf  ;;  %vm6920_vm8 = vmmov %vm6911_vm0 }
0x1687   : > { %5619 = vmatpush3.msra.mxu0 %v4342_v12  ;;  %vm3007_vm5 = vcmp.eq.s32.totalorder %v2997_v5, 1  ;;  %v2985_v12 = vmax.f32 %v2981_v24, %v2982_v10  ;;  %vm6921_vm12 = vmmov %vm6919_vm4 }
0x1688   : > { %5634 = vmatprep.subr.mxu0 %v5773_v7  ;;  %v3011_v57 = vsel %vm3007_vm5, %v6443_v53, -1e+30  ;;  %v3018_v53 = vsel %vm6916_vm15, %v3014_v60, -inf  ;;  %vm6922_vm13 = vmmov %vm6919_vm4 }
0x1689   : > { %1732 = vperm.xlu1 %5688, %v1730_v46   ;;  %v3015_v27 = vsel %vm6917_vm6, %v3011_v57, -inf  ;;  %v2987_v56 = vmax.f32 %v2985_v12, %v2986_v30  ;;  %vm6924_vm15 = vmmov %vm6919_vm4 }
0x168a   : > { %v3003_v4 = vpop.permute.xlu1 %3002  ;;  %v3019_v19 = vmax.f32 %v3015_v27, %v3016_v36  ;;  %vm6925_vm14 = vmmov %vm6919_vm4 }
0x168b   : > { %vm3009_vm7 = vcmp.eq.s32.totalorder %v3003_v4, 1  ;;  %v2988_v48 = vrot.slane %v2987_v56, 4 }
0x168c   : > { %v3013_v29 = vsel %vm3009_vm7, %v6429_v17, -1e+30  ;;  %v1715_v17 = vsel %vm6911_vm0, %v1711_v32, -inf  ;;  %vm6915_vm7 = vmmov %vm6911_vm0 }
0x168d   : > { %4332 = vperm.xlu1 %5688, %v4330_v31   ;;  %v3017_v11 = vsel %vm6912_vm11, %v3013_v29, -inf  ;;  %v1681_v31 = vmax.f32 %v1679_v26, %v1680_v28  ;;  %v1713_v55 = vsel %vm6915_vm7, %v1709_v8, -inf  ;;  %v1717_v51 = vmax.f32 %v1714_v54, %v1715_v17  ;;  %vm6923_vm7 = vmmov %vm6919_vm4 }
0x168e   : > { %v3020_v33 = vmax.f32 %v3017_v11, %v3018_v53  ;;  %v1716_v18 = vmax.f32 %v1712_v42, %v1713_v55  ;;  %v2989_v62 = vmax.f32 %v2987_v56, %v2988_v48 }
0x168f   : > { %v1682_v43 = vrot.slane %v1681_v31, 4 }
0x1690   : > { %v1718_v63 = vmax.f32 %v1716_v18, %v1717_v51  ;;  %v3021_v61 = vmax.f32 %v3019_v19, %v3020_v33  ;;  %v2990_v16 = vrot.slane %v2989_v62, 2 }
0x1691   : > { %v1683_v50 = vmax.f32 %v1681_v31, %v1682_v43 }
0x1692   : > { %v1719_v37 = vrot.slane %v1718_v63, 4  ;;  %v3022_v5 = vrot.slane %v3021_v61, 4  ;;  %v2991_v10 = vmax.f32 %v2989_v62, %v2990_v16 }
0x1693   : > { %v1684_v22 = vrot.slane %v1683_v50, 2 }
0x1694   : > { %v1720_v3 = vmax.f32 %v1718_v63, %v1719_v37  ;;  %v3023_v23 = vmax.f32 %v3021_v61, %v3022_v5  ;;  %v2992_v33 = vrot.slane %v2991_v10, 1 }
0x1695   : > { %v1685_v39 = vmax.f32 %v1683_v50, %v1684_v22 }
0x1696   : > { %v1721_v26 = vrot.slane %v1720_v3, 2  ;;  %v3024_v57 = vrot.slane %v3023_v23, 2 }
0x1697   : > { %v1686_v27 = vrot.slane %v1685_v39, 1 }
0x1698   : > { %v3025_v53 = vmax.f32 %v3023_v23, %v3024_v57  ;;  %v4499_v57 = vld [vmem:[%s6890_s4 + $0xa8] sm:$0xff] }
0x1699   : > { %v1687_v19 = vmax.f32 %v1685_v39, %v1686_v27  ;;  %v4897_v27 = vld [vmem:[%s6891_s5 + $0x6] ss:$0 sm:$0xff] }
0x169a   : > { %v3026_v43 = vrot.slane %v3025_v53, 1 }
0x16e5   : > { %v4300_v46 = vpop.permute.xlu1 %4299  ;;  %v4266_v41 = vpop.permute.xlu0 %4265 }
0x16e6   : > { %vm4274_vm5 = vcmp.eq.s32.totalorder %v4266_v41, 1  ;;  %vm4308_vm0 = vcmp.eq.s32.totalorder %v4300_v46, 1 }
0x16e7   : > { %v4278_v9 = vsel %vm4274_vm5, %v6695_v35, -1e+30  ;;  %v4312_v13 = vsel %vm4308_vm0, %v6695_v35, -1e+30  ;;  %vm1688_vm5 = vcmp.eq.s32.totalorder %v5827_v2, 0 }
0x16e8   : > { %v4282_v44 = vsel %vm6921_vm12, %v4278_v9, -inf  ;;  %v4316_v17 = vsel %vm6925_vm14, %v4312_v13, -inf  ;;  %v1691_v37 = vsel %vm1688_vm5, %v1687_v19, 0.0 }
0x16ea   : > { %v4263_v0 = vpop.permute.xlu1 %4262  ;;  %v4297_v6 = vpop.permute.xlu0 %4296 }
0x16eb   : > { %vm4273_vm3 = vcmp.eq.s32.totalorder %v4263_v0, 1  ;;  %vm4307_vm1 = vcmp.eq.s32.totalorder %v4297_v6, 1  ;;  %v2993_v6 = vmax.f32 %v2991_v10, %v2992_v33  ;;  %v4582_v10 = vld [vmem:[%s6890_s4 + $0xc8] sm:$0xff] }
0x16ec   : > { %v4277_v20 = vsel %vm4273_vm3, %v6700_v21, -1e+30  ;;  %v4311_v45 = vsel %vm4307_vm1, %v6700_v21, -1e+30  ;;  %vm6926_vm3 = vmmov %vm6919_vm4 }
0x16ed   : > { %v4281_v59 = vsel %vm6920_vm8, %v4277_v20, -inf  ;;  %v4315_v49 = vsel %vm6924_vm15, %v4311_v45, -inf  ;;  %v2994_v22 = vsel %vm1688_vm5, %v2993_v6, 0.0  ;;  %vm6927_vm0 = vmmov %vm6926_vm3 }
0x16ee   : > { %v4272_v47 = vpop.permute.xlu1 %4271  ;;  %v4306_v38 = vpop.permute.xlu0 %4305  ;;  %v4285_v28 = vmax.f32 %v4281_v59, %v4282_v44  ;;  %v4319_v35 = vmax.f32 %v4315_v49, %v4316_v17  ;;  %v4502_v49 = vld [vmem:[%s6890_s4 + $0xc0] sm:$0xff]  ;;  %vm6930_vm12 = vmmov %vm6927_vm0 }
0x16ef   : > { %vm4276_vm9 = vcmp.eq.s32.totalorder %v4272_v47, 1  ;;  %vm4310_vm11 = vcmp.eq.s32.totalorder %v4306_v38, 1  ;;  %v3027_v47 = vmax.f32 %v3025_v53, %v3026_v43 }
0x16f0   : > { %v4280_v4 = vsel %vm4276_vm9, %v6685_v58, -1e+30  ;;  %v4314_v14 = vsel %vm4310_vm11, %v6685_v58, -1e+30  ;;  %v1722_v58 = vmax.f32 %v1720_v3, %v1721_v26  ;;  %vm1725_vm9 = vcmp.eq.s32.totalorder %v5827_v2, 1  ;;  %vm6928_vm11 = vmmov %vm6927_vm0 }
0x16f1   : > { %v4284_v40 = vsel %vm6922_vm13, %v4280_v4, -inf  ;;  %v4318_v1 = vsel %vm6919_vm4, %v4314_v14, -inf  ;;  %vm4664_vm13 = vcmask 25600  }
0x16f2   : > { %v4269_v32 = vpop.permute.xlu1 %4268  ;;  %v1723_v42 = vrot.slane %v1722_v58, 1 }
0x16f3   : > { %vm4275_vm10 = vcmp.eq.s32.totalorder %v4269_v32, 1  ;;  %v2949_v51 = vpop.permute.xlu0 %2948  ;;  %v3028_v32 = vsel %vm1725_vm9, %v3027_v47, %v2994_v22 }
0x16f4   : > { %v4279_v15 = vsel %vm4275_vm10, %v6690_v34, -1e+30  ;;  %v1724_v63 = vmax.f32 %v1722_v58, %v1723_v42  ;;  %v4584_v58 = vld [vmem:[%s6890_s4 + $0xd8] sm:$0xff] }
0x16f5   : > { %v4283_v60 = vsel %vm6923_vm7, %v4279_v15, -inf }
0x16f6   : > { %v4286_v29 = vmax.f32 %v4283_v60, %v4284_v40  ;;  %v1728_v20 = vsel %vm1725_vm9, %v1724_v63, %v1691_v37 }
0x16f7   : > { %v4303_v8 = vpop.permute.xlu1 %4302  ;;  %v3033_v61 = vpop.permute.xlu0 %3032 }
0x16f8   : > { %v4287_v54 = vmax.f32 %v4285_v28, %v4286_v29  ;;  %vm4309_vm6 = vcmp.eq.s32.totalorder %v4303_v8, 1  ;;  %vm3034_vm8 = vcmp.eq.s32.totalorder %v3033_v61, 1 }
0x16f9   : > { %v4313_v21 = vsel %vm4309_vm6, %v6690_v34, -1e+30  ;;  %v3035_v3 = vsel %vm3034_vm8, %v3028_v32, 0.0 }
0x16fa   : > { %v4288_v11 = vrot.slane %v4287_v54, 4  ;;  %v4317_v46 = vsel %vm6926_vm3, %v4313_v21, -inf }
0x16fb   : > { %v4320_v41 = vmax.f32 %v4317_v46, %v4318_v1  ;;  %v4894_v1 = vld [vmem:[%s6891_s5 + $0x4] ss:$0 sm:$0xff] }
0x16fc   : > { %v4289_v31 = vmax.f32 %v4287_v54, %v4288_v11  ;;  %v1643_v24 = vpop.permute.xlu1 %1642  ;;  %v4585_v54 = vld [vmem:[%s6890_s4 + $0xe0] sm:$0xff] }
0x16fd   : > { %v4321_v55 = vmax.f32 %v4319_v35, %v4320_v41  ;;  %5744 = vrcp.f32 %v1643_v24  ;;  %v4895_v24 = vld [vmem:[%s6891_s5 + $0x5] ss:$0 sm:$0xff] }
0x16fe   : > { %v4290_v30 = vrot.slane %v4289_v31, 2  ;;  %5746 = vrcp.f32 %v2949_v51 }
0x16ff   : > { %v4322_v34 = vrot.slane %v4321_v55, 4 }
0x1700   : > { %v4249_v36 = vpop.permute.xlu1 %4248  ;;  %v4291_v12 = vmax.f32 %v4289_v31, %v4290_v30  ;;  %v4583_v31 = vld [vmem:[%s6890_s4 + $0xd0] sm:$0xff] }
0x1701   : > { %v4323_v18 = vmax.f32 %v4321_v55, %v4322_v34  ;;  %5748 = vrcp.f32 %v4249_v36 }
0x1702   : > { %v4292_v0 = vrot.slane %v4291_v12, 1 }
0x1703   : > { %v4324_v56 = vrot.slane %v4323_v18, 2 }
0x1704   : > { %v1733_v50 = vpop.permute.xlu1 %1732  ;;  %v4293_v5 = vmax.f32 %v4291_v12, %v4292_v0 }
0x1705   : > { %vm1734_vm1 = vcmp.eq.s32.totalorder %v1733_v50, 1  ;;  %v4325_v48 = vmax.f32 %v4323_v18, %v4324_v56 }
0x1706   : > { %v1735_v9 = vsel %vm1734_vm1, %v1728_v20, 0.0  ;;  %v4294_v59 = vsel %vm1688_vm5, %v4293_v5, 0.0 }
0x1707   : > { %v4326_v38 = vrot.slane %v4325_v48, 1  ;;  %v3036_v23 = vadd.f32 %v3035_v3, %v1735_v9 }
0x1708   : > { %v4333_v4 = vpop.permute.xlu1 %4332 }
0x1709   : > { %v4327_v62 = vmax.f32 %v4325_v48, %v4326_v38  ;;  %vm4334_vm10 = vcmp.eq.s32.totalorder %v4333_v4, 1 }
0x170a   : > { %v5745_v40 = vpop.eup %5744 }
0x170b   : > { %v4328_v15 = vsel %vm1725_vm9, %v4327_v62, %v4294_v59  ;;  %v5747_v60 = vpop.eup %5746  ;;  %v1646_v28 = vmul.f32 %v5745_v40, %v6237_v52  ;;  %v4501_v52 = vld [vmem:[%s6890_s4 + $0xb8] sm:$0xff] }
0x170c   : > { %v4335_v44 = vsel %vm4334_vm10, %v4328_v15, 0.0  ;;  %v2952_v29 = vmul.f32 %v5747_v60, %v6498_v25  ;;  %v4500_v25 = vld [vmem:[%s6890_s4 + $0xb0] sm:$0xff] }
0x170d   : > { %v4336_v45 = vadd.f32 %v4335_v44, %v3036_v23 }
0x170e   : > { %v5749_v26 = vpop.eup %5748  ;;  %v3037_v13 = vadd.f32 %v2952_v29, %v1646_v28 }
0x170f   : > { %5632 = vmatmul.mubr.msk.f32.vlgmr.msra.gmra.mxu1 %vm6927_vm0, %v4336_v45 }
0x1710   : > { %5653 = vmatprep.mubr.msk.f32.mxu1 %vm6896_vm2, %v5773_v7  ;;  %5646 = vmatpush3.msra.mxu1 %v4585_v54 }
0x1711   : > { %5647 = vmatprep.subr.mxu1 %v5773_v7 }
0x1712   : > { %5648 = vmatpush3.msra.mxu1 %v4584_v58 }
0x1713   : > { %5649 = vmatprep.subr.mxu1 %v5773_v7 }
0x1714   : > { %5650 = vmatpush3.msra.mxu1 %v4583_v31 }
0x1715   : > { %5651 = vmatprep.subr.mxu1 %v5773_v7 }
0x1716   : > { %5652 = vmatpush3.msra.mxu1 %v4582_v10 }
0x172c   : > { %v4171_v2 = vpop.f32.mrf.mxu0 }
0x172d   : > { %v4252_v14 = vmul.f32 %v5749_v26, %v4171_v2 }
0x172e   : > { %v5600_v8 = vpop.f32.mrf.mxu0 }
0x172f   : > { %v4337_v16 = vadd.f32 %v4252_v14, %v3037_v13 }
0x1731   : > { %5621 = vmatmul.mubr.msk.f32.vlgmr.msra.gmra.mxu0 %vm6928_vm11, %v4337_v16 }
0x1732   : > { %5642 = vmatprep.mubr.msk.f32.mxu0 %vm6896_vm2, %v5773_v7  ;;  %5635 = vmatpush3.msra.mxu0 %v4502_v49  ;;  %vm6929_vm2 = vmmov %vm6927_vm0 }
0x1733   : > { %5636 = vmatprep.subr.mxu0 %v5773_v7 }
0x1734   : > { %5637 = vmatpush3.msra.mxu0 %v4501_v52 }
0x1735   : > { %5638 = vmatprep.subr.mxu0 %v5773_v7 }
0x1736   : > { %5639 = vmatpush3.msra.mxu0 %v4500_v25 }
0x1737   : > { %5640 = vmatprep.subr.mxu0 %v5773_v7 }
0x1738   : > { %5641 = vmatpush3.msra.mxu0 %v4499_v57 }
0x17cf   : > { %v4488_v21 = vpop.f32.mrf.mxu1 }
0x17d1   : > { %v5633_v39 = vpop.f32.mrf.mxu1 }
0x17f1   : > { %v4415_v17 = vpop.f32.mrf.mxu0 }
0x17f2   : > { %v4489_v11 = vadd.f32 %v4488_v21, %v4415_v17 }
0x17f3   : > { %v5622_v46 = vpop.f32.mrf.mxu0 }
0x17f4   : > { %v4497_v35 = vadd.f32 %v4894_v1, %v4489_v11 }
0x17f6   : > { %v4498_v41 = vmax.f32 %v4497_v35, 0.0 }
0x17f8   : > { %5643 = vmatmul.mubr.msk.f32.vlgmr.msra.gmra.mxu0 %vm6929_vm2, %v4498_v41 }
0x18b8   : > { %v4577_v55 = vpop.f32.mrf.mxu0 }
0x18b9   : > { %v4578_v53 = vadd.f32 %v4895_v24, %v4577_v55 }
0x18ba   : > { %v5644_v30 = vpop.f32.mrf.mxu0 }
0x18bb   : > { %v4581_v51 = vmax.f32 %v4578_v53, 0.0 }
0x18bd   : > { %5654 = vmatmul.mubr.msk.f32.vlgmr.msra.gmra.mxu1 %vm6930_vm12, %v4581_v51 }
0x197d   : > { %v4660_v34 = vpop.f32.mrf.mxu1 }
0x197e   : > { %v4661_v42 = vadd.f32 %v4897_v27, %v4660_v34 }
0x197f   : > { %v5655_v7 = vpop.f32.mrf.mxu1 }
0x1980   : > { %v4665_v33 = vsel %vm4664_vm13, %v4661_v42, -inf }
0x1981   : > { %4666 = vmax.xlane.f32.xlu0 %v4665_v33 }
0x1a0a   : > { %v4667_v36 = vpop.xlane.xlu0 %4666 }
0x1a0b   : > { %v4668_v12 = vsub.f32 %v4661_v42, %v4667_v36 }
0x1a0d   : > { %v4669_v18 = vmul.f32 1.442695, %v4668_v12 }
0x1a0f   : > { %5750 = vpow2.f32 %v4669_v18 }
0x1a1c   : > { %v5751_v43 = vpop.eup %5750 }
0x1a1d   : > { %v4671_v19 = vsel %vm4664_vm13, %v5751_v43, 0.0 }
0x1a1e   : > { %4672 = vadd.xlane.f32.xlu1 %v4671_v19 }
0x1aa7   : > { %v4673_v0 = vpop.xlane.xlu1 %4672 }
0x1aa8   : > { %5752 = vlog2.f32 %v4673_v0 }
0x1ab5   : > { %v5753_v56 = vpop.eup %5752 }
0x1ab6   : > { %v4675_v63 = vmul.f32 0.6931472, %v5753_v56 }
0x1ab8   : > { %v4676_v6 = vadd.f32 %v4675_v63, %v4667_v36 }
0x1aba   : > { %v4677_v61 = vsub.f32 %v4661_v42, %v4676_v6 }
0x1abc   : > { %4678 = vst.msk [vmem:[%s306_s18] sm:$0x3] %vm4664_vm13, %v4677_v61 }
0x1abd PF: > { %s16_s21 = sadd.s32 1, %s5770_s21  }
0x1abe   : > { %p13_p4 = scmp.ge.s32.totalorder %s16_s21, 10  }
0x1ac0   :  { %15 = sbr.rel (!%p13_p4) target bundleno = 1 (0x1), region = 83 }

</bundles_post_ra>
